<compile_context>
chip_gen: v7x
topology: tpu7x:2x2x1
jax: 0.10.0
libtpu: 0.0.40
codegen_flags: <defaults>
</compile_context>

<pallas_src>
import jax
import jax.numpy as jnp
from jax import lax
from jax.experimental import pallas as pl
from jax.experimental.pallas import tpu as pltpu


# ----------------------------------------------------------------------------
# Pallas kernel: one fused bidirectional LSTM layer (optionally + decoder)
# ----------------------------------------------------------------------------
def _make_bilstm_kernel(T, B, H, with_decoder):
    """Fused bi-LSTM layer kernel.

    Gate-column layout (per direction, width 4H): [i, f, o, g].
    The 8H-wide gate axis is [fwd 4H | bwd 4H].

    Inputs : x (T*B, D) bf16, W_ih_cat (D, 8H) bf16,
             W_hh_blk (2H, 8H) bf16 (block-diagonal: rows 0:H feed the fwd
             columns, rows H:2H feed the bwd columns), b_cat (1, 8H) f32,
             [dec_w (4H, 2) bf16, dec_b (1, 2) f32].
    Outputs: out (T*B, 2H) bf16  (intermediate layers)
             logits (B, 2) f32   (last layer; sequence output never materialized)
    Scratch: pre (T*B, 8H) f32, [hseq (T*B, 2H) f32].
    """
    G = 4 * H

    def kernel(*refs):
        if with_decoder:
            (x_ref, wih_ref, whh_ref, b_ref, dec_w_ref, dec_b_ref,
             logits_ref, pre_scr) = refs
        else:
            (x_ref, wih_ref, whh_ref, b_ref, out_ref, pre_scr, hseq) = refs

        # ---- Hoisted input projection for BOTH directions: one big MXU matmul,
        #      bias folded in, staged in VMEM (off the recurrent critical path).
        pre_scr[...] = (
            jnp.dot(x_ref[...], wih_ref[...], preferred_element_type=jnp.float32)
            + b_ref[...]
        )

        # ---- Hoist the (tiny) recurrent weight load out of the unrolled loop.
        whh = whh_ref[...]                                   # (2H, 8H) bf16

        def cell(gates, c_prev):
            # gates: (B, 4H) with columns [i | f | o | g]; only the lanes that
            # need each transcendental are activated.
            ifo = jax.nn.sigmoid(gates[:, 0:3 * H])
            g = jnp.tanh(gates[:, 3 * H:4 * H])
            c_new = ifo[:, H:2 * H] * c_prev + ifo[:, 0:H] * g
            h_new = ifo[:, 2 * H:3 * H] * jnp.tanh(c_new)
            return h_new, c_new

        def step(t, carry):
            if with_decoder:
                h_f, h_b, c_f, c_b, h0_f, h0_b = carry
            else:
                h_f, h_b, c_f, c_b = carry

            # One merged recurrent matmul for both directions (block-diag W_hh).
            h_cat = jnp.concatenate([h_f, h_b], axis=1).astype(jnp.bfloat16)
            rec = jnp.dot(h_cat, whh, preferred_element_type=jnp.float32)  # (B, 8H)

            tb = T - 1 - t                                   # backward time index
            row_f = pl.multiple_of(t * B, B)
            row_b = pl.multiple_of(tb * B, B)
            gates_f = rec[:, 0:G] + pre_scr[pl.ds(row_f, B), 0:G]
            gates_b = rec[:, G:2 * G] + pre_scr[pl.ds(row_b, B), G:2 * G]

            h_f, c_f = cell(gates_f, c_f)
            h_b, c_b = cell(gates_b, c_b)

            if with_decoder:
                # Only out[0] / out[-1] feed the decoder; keep them in registers
                # (no per-step stores and no sequence writeback at all).
                first = t == 0
                h0_f = jnp.where(first, h_f, h0_f)
                h0_b = jnp.where(first, h_b, h0_b)
                return h_f, h_b, c_f, c_b, h0_f, h0_b

            # Stage per-step outputs in f32 scratch (8-row aligned stores); a
            # single lane-dense bf16 cast+store flushes everything after the loop.
            hseq[pl.ds(row_f, B), 0:H] = h_f
            hseq[pl.ds(row_b, B), H:2 * H] = h_b
            return h_f, h_b, c_f, c_b

        z = jnp.zeros((B, H), jnp.float32)
        init = (z, z, z, z, z, z) if with_decoder else (z, z, z, z)
        # Small static T -> fully unroll for LLO scheduling.
        # TODO(synk): switch to a partial unroll (unroll=2..4) for long sequences
        #             to bound code size / vreg pressure.
        final = lax.fori_loop(0, T, step, init, unroll=True)

        if with_decoder:
            h_f, h_b, _, _, h0_f, h0_b = final
            # encoding = cat(outputs[0], outputs[-1], dim=1):
            #   out[0]  = [fwd state after pos 0 | bwd final state         ]
            #   out[-1] = [fwd final state       | bwd state after pos T-1 ]
            enc = jnp.concatenate([h0_f, h_b, h_f, h0_b], axis=1)       # (B, 4H)
            logits_ref[...] = (
                jnp.dot(enc.astype(jnp.bfloat16), dec_w_ref[...],
                        preferred_element_type=jnp.float32)
                + dec_b_ref[...]
            )
        else:
            out_ref[...] = hseq[...].astype(out_ref.dtype)

    return kernel


# ----------------------------------------------------------------------------
# Wrappers
# ----------------------------------------------------------------------------
def bilstm_layer(x, T, B, layer_params, dec=None):
    """One fused bidirectional LSTM layer.

    x: (T*B, D_in) bf16, time-major flattened.  Returns (T*B, 2H) bf16, or
    (B, 2) f32 logits when `dec=(dec_w, dec_b)` is supplied (last layer:
    decoder fused, sequence output never written to HBM).
    """
    wih_cat, whh_blk, b_cat = layer_params
    H = whh_blk.shape[0] // 2
    vmem = pl.BlockSpec(memory_space=pltpu.MemorySpace.VMEM)

    if dec is None:
        return pl.pallas_call(
            _make_bilstm_kernel(T, B, H, with_decoder=False),
            out_shape=jax.ShapeDtypeStruct((T * B, 2 * H), jnp.bfloat16),
            in_specs=[vmem] * 4,
            out_specs=vmem,
            scratch_shapes=[
                pltpu.VMEM((T * B, 8 * H), jnp.float32),   # hoisted pre-gates
                pltpu.VMEM((T * B, 2 * H), jnp.float32),   # staged seq output
            ],
        )(x, wih_cat, whh_blk, b_cat)

    dec_w, dec_b = dec
    return pl.pallas_call(
        _make_bilstm_kernel(T, B, H, with_decoder=True),
        out_shape=jax.ShapeDtypeStruct((B, 2), jnp.float32),
        in_specs=[vmem] * 6,
        out_specs=vmem,
        scratch_shapes=[pltpu.VMEM((T * B, 8 * H), jnp.float32)],
    )(x, wih_cat, whh_blk, b_cat, dec_w, dec_b)


def _reorder_gates(w, H):
    """PyTorch LSTM gate order [i, f, g, o] -> kernel order [i, f, o, g] (last axis)."""
    return jnp.concatenate(
        [w[..., 0:H], w[..., H:2 * H], w[..., 3 * H:4 * H], w[..., 2 * H:3 * H]],
        axis=-1)


def init_params(key, vocab_size, embed_size, num_hiddens, num_layers):
    """Deterministic synthetic parameters with PyTorch-equivalent shapes/semantics.

    Per layer/direction PyTorch stores weight_ih (4H, D_in), weight_hh (4H, H),
    bias_ih + bias_hh.  Here they are pre-transposed, gate-reordered to
    [i, f, o, g], and packed so the kernel does a single (T*B,D)@(D,8H) input
    projection and a single block-diagonal (B,2H)@(2H,8H) recurrent matmul/step.
    """
    H = num_hiddens
    params = {}

    k_emb, key = jax.random.split(key)
    params["embedding"] = jax.random.normal(
        k_emb, (vocab_size, embed_size), jnp.float32)

    scale = 1.0 / jnp.sqrt(jnp.float32(H))
    layers = []
    for layer in range(num_layers):
        d_in = embed_size if layer == 0 else 2 * H
        w_ihs, w_hhs, biases = [], [], []
        for _ in range(2):  # forward, backward
            key, k1, k2, k3, k4 = jax.random.split(key, 5)
            w_ih = jax.random.uniform(k1, (d_in, 4 * H), jnp.float32, -scale, scale)
            w_hh = jax.random.uniform(k2, (H, 4 * H), jnp.float32, -scale, scale)
            b_ih = jax.random.uniform(k3, (4 * H,), jnp.float32, -scale, scale)
            b_hh = jax.random.uniform(k4, (4 * H,), jnp.float32, -scale, scale)
            w_ihs.append(_reorder_gates(w_ih, H))
            w_hhs.append(_reorder_gates(w_hh, H))
            biases.append(_reorder_gates(b_ih + b_hh, H))
        wih_cat = jnp.concatenate(w_ihs, axis=1).astype(jnp.bfloat16)      # (D_in, 8H)
        zeros = jnp.zeros((H, 4 * H), jnp.float32)
        whh_blk = jnp.concatenate(
            [jnp.concatenate([w_hhs[0], zeros], axis=1),
             jnp.concatenate([zeros, w_hhs[1]], axis=1)],
            axis=0).astype(jnp.bfloat16)                                    # (2H, 8H)
        b_cat = jnp.concatenate(biases, axis=0).reshape(1, 8 * H)           # (1, 8H)
        layers.append((wih_cat, whh_blk, b_cat))
    params["lstm"] = layers

    key, kd1, kd2 = jax.random.split(key, 3)
    dscale = 1.0 / jnp.sqrt(jnp.float32(4 * H))
    params["dec_w"] = jax.random.uniform(
        kd1, (4 * H, 2), jnp.float32, -dscale, dscale).astype(jnp.bfloat16)
    params["dec_b"] = jax.random.uniform(kd2, (1, 2), jnp.float32, -dscale, dscale)
    return params


def birnn_forward(params, inputs):
    """inputs: (batch, seq) int32 token ids -> (batch, 2) logits."""
    tokens_t = inputs.T                                    # (T, B) time-major
    T, B = tokens_t.shape
    # Embedding gather stays in XLA (jnp.take); cast to bf16 once so every layer's
    # matmul operands arrive pre-cast and the input DMA is halved.
    x = jnp.take(params["embedding"], tokens_t.reshape(-1), axis=0)   # (T*B, E)
    x = x.astype(jnp.bfloat16)

    layers = params["lstm"]
    logits = None
    for li, lp in enumerate(layers):
        if li < len(layers) - 1:
            x = bilstm_layer(x, T, B, lp)
        else:
            logits = bilstm_layer(x, T, B, lp,
                                  dec=(params["dec_w"], params["dec_b"]))
    return logits


if __name__ == "__main__":
    vocab_size = 50
    embed_size = 32
    num_hiddens = 32
    num_layers = 2
    batch = 8
    seq = 8

    key = jax.random.PRNGKey(0)
    k_tok, k_par = jax.random.split(key)
    tokens = jax.random.randint(k_tok, (batch, seq), 0, vocab_size, dtype=jnp.int32)
    params = init_params(k_par, vocab_size, embed_size, num_hiddens, num_layers)

    birnn = jax.jit(birnn_forward)
    out = jax.block_until_ready(birnn(params, tokens))
    assert out.shape == (batch, 2), out.shape
    print("KERNEL_OK")
</pallas_src>

<mosaic_0001>
module attributes {stable_mosaic.version = 11 : i64} {
  func.func @kernel(%arg0: memref<64x32xbf16, #tpu.memory_space<vmem>>, %arg1: memref<32x256xbf16, #tpu.memory_space<vmem>>, %arg2: memref<64x256xbf16, #tpu.memory_space<vmem>>, %arg3: memref<1x256xf32, #tpu.memory_space<vmem>>, %arg4: memref<64x64xbf16, #tpu.memory_space<vmem>>, %arg5: memref<64x256xf32, #tpu.memory_space<vmem>>, %arg6: memref<64x64xf32, #tpu.memory_space<vmem>>) attributes {dimension_semantics = [], scalar_prefetch = 0 : i64, scratch_operands = 2 : i64, tpu.core_type = #tpu.core_type<tc>} {
    %c0 = arith.constant 0 : index
    %c0_0 = arith.constant 0 : index
    %0 = vector.load %arg0[%c0, %c0_0] : memref<64x32xbf16, #tpu.memory_space<vmem>>, vector<64x32xbf16>
    %c0_1 = arith.constant 0 : index
    %c0_2 = arith.constant 0 : index
    %1 = vector.load %arg1[%c0_1, %c0_2] : memref<32x256xbf16, #tpu.memory_space<vmem>>, vector<32x256xbf16>
    %cst = arith.constant dense<0.000000e+00> : vector<64x256xf32>
    %2 = tpu.matmul %0, %1, %cst {dimension_numbers = #tpu.dot_dimension_numbers<[1], [0], [0], [1], [0, 0, 1, 1], [], []>} : vector<64x32xbf16>, vector<32x256xbf16>, vector<64x256xf32> -> vector<64x256xf32>
    %c0_3 = arith.constant 0 : index
    %c0_4 = arith.constant 0 : index
    %3 = vector.load %arg3[%c0_3, %c0_4] : memref<1x256xf32, #tpu.memory_space<vmem>>, vector<1x256xf32>
    %4 = vector.broadcast %3 : vector<1x256xf32> to vector<64x256xf32>
    %5 = arith.addf %2, %4 : vector<64x256xf32>
    %c0_5 = arith.constant 0 : index
    %c0_6 = arith.constant 0 : index
    %6 = vector.load %arg5[%c0_5, %c0_6] : memref<64x256xf32, #tpu.memory_space<vmem>>, vector<64x256xf32>
    tpu.vector_store %arg5[%c0_5, %c0_6], %5 {strides = array<i32>} : memref<64x256xf32, #tpu.memory_space<vmem>>, vector<64x256xf32>,
    %c0_7 = arith.constant 0 : index
    %c0_8 = arith.constant 0 : index
    %7 = vector.load %arg2[%c0_7, %c0_8] : memref<64x256xbf16, #tpu.memory_space<vmem>>, vector<64x256xbf16>
    %cst_9 = arith.constant 0.000000e+00 : f32
    %8 = vector.broadcast %cst_9 : f32 to vector<8x32xf32>
    %c0_i32 = arith.constant 0 : i32
    %9 = tpu.concatenate %8, %8 in 1 : vector<8x32xf32>, vector<8x32xf32> -> vector<8x64xf32>
    %10 = arith.truncf %9 : vector<8x64xf32> to vector<8x64xbf16>
    %cst_10 = arith.constant dense<0.000000e+00> : vector<8x256xf32>
    %11 = tpu.matmul %10, %7, %cst_10 {dimension_numbers = #tpu.dot_dimension_numbers<[1], [0], [0], [1], [0, 0, 1, 1], [], []>} : vector<8x64xbf16>, vector<64x256xbf16>, vector<8x256xf32> -> vector<8x256xf32>
    %c7_i32 = arith.constant 7 : i32
    %12 = arith.subi %c7_i32, %c0_i32 : i32
    %c8_i32 = arith.constant 8 : i32
    %13 = arith.muli %c0_i32, %c8_i32 : i32
    %14 = tpu.assume_multiple %13, 8 : i32
    %c8_i32_11 = arith.constant 8 : i32
    %15 = arith.muli %12, %c8_i32_11 : i32
    %16 = tpu.assume_multiple %15, 8 : i32
    %17 = vector.extract_strided_slice %11 {offsets = [0, 0], sizes = [8, 128], strides = [1, 1]} : vector<8x256xf32> to vector<8x128xf32>
    %18 = arith.index_cast %14 : i32 to index
    %c0_12 = arith.constant 0 : index
    %19 = vector.load %arg5[%18, %c0_12] : memref<64x256xf32, #tpu.memory_space<vmem>>, vector<8x128xf32>
    %20 = arith.addf %17, %19 : vector<8x128xf32>
    %21 = vector.extract_strided_slice %11 {offsets = [0, 128], sizes = [8, 128], strides = [1, 1]} : vector<8x256xf32> to vector<8x128xf32>
    %22 = arith.index_cast %16 : i32 to index
    %c128 = arith.constant 128 : index
    %23 = vector.load %arg5[%22, %c128] : memref<64x256xf32, #tpu.memory_space<vmem>>, vector<8x128xf32>
    %24 = arith.addf %21, %23 : vector<8x128xf32>
    %25 = vector.extract_strided_slice %20 {offsets = [0, 0], sizes = [8, 96], strides = [1, 1]} : vector<8x128xf32> to vector<8x96xf32>
    %26 = arith.negf %25 : vector<8x96xf32>
    %27 = math.exp %26 : vector<8x96xf32>
    %cst_13 = arith.constant 1.000000e+00 : f32
    %28 = vector.broadcast %cst_13 : f32 to vector<8x96xf32>
    %29 = arith.addf %28, %27 : vector<8x96xf32>
    %30 = arith.divf %28, %29 : vector<8x96xf32>
    %31 = vector.extract_strided_slice %20 {offsets = [0, 96], sizes = [8, 32], strides = [1, 1]} : vector<8x128xf32> to vector<8x32xf32>
    %32 = math.tanh %31 : vector<8x32xf32>
    %33 = vector.extract_strided_slice %30 {offsets = [0, 32], sizes = [8, 32], strides = [1, 1]} : vector<8x96xf32> to vector<8x32xf32>
    %34 = arith.mulf %33, %8 : vector<8x32xf32>
    %35 = vector.extract_strided_slice %30 {offsets = [0, 0], sizes = [8, 32], strides = [1, 1]} : vector<8x96xf32> to vector<8x32xf32>
    %36 = arith.mulf %35, %32 : vector<8x32xf32>
    %37 = arith.addf %34, %36 : vector<8x32xf32>
    %38 = vector.extract_strided_slice %30 {offsets = [0, 64], sizes = [8, 32], strides = [1, 1]} : vector<8x96xf32> to vector<8x32xf32>
    %39 = math.tanh %37 : vector<8x32xf32>
    %40 = arith.mulf %38, %39 : vector<8x32xf32>
    %41 = vector.extract_strided_slice %24 {offsets = [0, 0], sizes = [8, 96], strides = [1, 1]} : vector<8x128xf32> to vector<8x96xf32>
    %42 = arith.negf %41 : vector<8x96xf32>
    %43 = math.exp %42 : vector<8x96xf32>
    %cst_14 = arith.constant 1.000000e+00 : f32
    %44 = vector.broadcast %cst_14 : f32 to vector<8x96xf32>
    %45 = arith.addf %44, %43 : vector<8x96xf32>
    %46 = arith.divf %44, %45 : vector<8x96xf32>
    %47 = vector.extract_strided_slice %24 {offsets = [0, 96], sizes = [8, 32], strides = [1, 1]} : vector<8x128xf32> to vector<8x32xf32>
    %48 = math.tanh %47 : vector<8x32xf32>
    %49 = vector.extract_strided_slice %46 {offsets = [0, 32], sizes = [8, 32], strides = [1, 1]} : vector<8x96xf32> to vector<8x32xf32>
    %50 = arith.mulf %49, %8 : vector<8x32xf32>
    %51 = vector.extract_strided_slice %46 {offsets = [0, 0], sizes = [8, 32], strides = [1, 1]} : vector<8x96xf32> to vector<8x32xf32>
    %52 = arith.mulf %51, %48 : vector<8x32xf32>
    %53 = arith.addf %50, %52 : vector<8x32xf32>
    %54 = vector.extract_strided_slice %46 {offsets = [0, 64], sizes = [8, 32], strides = [1, 1]} : vector<8x96xf32> to vector<8x32xf32>
    %55 = math.tanh %53 : vector<8x32xf32>
    %56 = arith.mulf %54, %55 : vector<8x32xf32>
    %57 = arith.index_cast %14 : i32 to index
    %c0_15 = arith.constant 0 : index
    %58 = vector.load %arg6[%57, %c0_15] : memref<64x64xf32, #tpu.memory_space<vmem>>, vector<8x32xf32>
    tpu.vector_store %arg6[%57, %c0_15], %40 {strides = array<i32>} : memref<64x64xf32, #tpu.memory_space<vmem>>, vector<8x32xf32>,
    %59 = arith.index_cast %16 : i32 to index
    %c32 = arith.constant 32 : index
    %60 = vector.load %arg6[%59, %c32] : memref<64x64xf32, #tpu.memory_space<vmem>>, vector<8x32xf32>
    tpu.vector_store %arg6[%59, %c32], %56 {strides = array<i32>} : memref<64x64xf32, #tpu.memory_space<vmem>>, vector<8x32xf32>,
    %c1_i32 = arith.constant 1 : i32
    %61 = tpu.concatenate %40, %56 in 1 : vector<8x32xf32>, vector<8x32xf32> -> vector<8x64xf32>
    %62 = arith.truncf %61 : vector<8x64xf32> to vector<8x64xbf16>
    %cst_16 = arith.constant dense<0.000000e+00> : vector<8x256xf32>
    %63 = tpu.matmul %62, %7, %cst_16 {dimension_numbers = #tpu.dot_dimension_numbers<[1], [0], [0], [1], [0, 0, 1, 1], [], []>} : vector<8x64xbf16>, vector<64x256xbf16>, vector<8x256xf32> -> vector<8x256xf32>
    %c7_i32_17 = arith.constant 7 : i32
    %64 = arith.subi %c7_i32_17, %c1_i32 : i32
    %c8_i32_18 = arith.constant 8 : i32
    %65 = arith.muli %c1_i32, %c8_i32_18 : i32
    %66 = tpu.assume_multiple %65, 8 : i32
    %c8_i32_19 = arith.constant 8 : i32
    %67 = arith.muli %64, %c8_i32_19 : i32
    %68 = tpu.assume_multiple %67, 8 : i32
    %69 = vector.extract_strided_slice %63 {offsets = [0, 0], sizes = [8, 128], strides = [1, 1]} : vector<8x256xf32> to vector<8x128xf32>
    %70 = arith.index_cast %66 : i32 to index
    %c0_20 = arith.constant 0 : index
    %71 = vector.load %arg5[%70, %c0_20] : memref<64x256xf32, #tpu.memory_space<vmem>>, vector<8x128xf32>
    %72 = arith.addf %69, %71 : vector<8x128xf32>
    %73 = vector.extract_strided_slice %63 {offsets = [0, 128], sizes = [8, 128], strides = [1, 1]} : vector<8x256xf32> to vector<8x128xf32>
    %74 = arith.index_cast %68 : i32 to index
    %c128_21 = arith.constant 128 : index
    %75 = vector.load %arg5[%74, %c128_21] : memref<64x256xf32, #tpu.memory_space<vmem>>, vector<8x128xf32>
    %76 = arith.addf %73, %75 : vector<8x128xf32>
    %77 = vector.extract_strided_slice %72 {offsets = [0, 0], sizes = [8, 96], strides = [1, 1]} : vector<8x128xf32> to vector<8x96xf32>
    %78 = arith.negf %77 : vector<8x96xf32>
    %79 = math.exp %78 : vector<8x96xf32>
    %cst_22 = arith.constant 1.000000e+00 : f32
    %80 = vector.broadcast %cst_22 : f32 to vector<8x96xf32>
    %81 = arith.addf %80, %79 : vector<8x96xf32>
    %82 = arith.divf %80, %81 : vector<8x96xf32>
    %83 = vector.extract_strided_slice %72 {offsets = [0, 96], sizes = [8, 32], strides = [1, 1]} : vector<8x128xf32> to vector<8x32xf32>
    %84 = math.tanh %83 : vector<8x32xf32>
    %85 = vector.extract_strided_slice %82 {offsets = [0, 32], sizes = [8, 32], strides = [1, 1]} : vector<8x96xf32> to vector<8x32xf32>
    %86 = arith.mulf %85, %37 : vector<8x32xf32>
    %87 = vector.extract_strided_slice %82 {offsets = [0, 0], sizes = [8, 32], strides = [1, 1]} : vector<8x96xf32> to vector<8x32xf32>
    %88 = arith.mulf %87, %84 : vector<8x32xf32>
    %89 = arith.addf %86, %88 : vector<8x32xf32>
    %90 = vector.extract_strided_slice %82 {offsets = [0, 64], sizes = [8, 32], strides = [1, 1]} : vector<8x96xf32> to vector<8x32xf32>
    %91 = math.tanh %89 : vector<8x32xf32>
    %92 = arith.mulf %90, %91 : vector<8x32xf32>
    %93 = vector.extract_strided_slice %76 {offsets = [0, 0], sizes = [8, 96], strides = [1, 1]} : vector<8x128xf32> to vector<8x96xf32>
    %94 = arith.negf %93 : vector<8x96xf32>
    %95 = math.exp %94 : vector<8x96xf32>
    %cst_23 = arith.constant 1.000000e+00 : f32
    %96 = vector.broadcast %cst_23 : f32 to vector<8x96xf32>
    %97 = arith.addf %96, %95 : vector<8x96xf32>
    %98 = arith.divf %96, %97 : vector<8x96xf32>
    %99 = vector.extract_strided_slice %76 {offsets = [0, 96], sizes = [8, 32], strides = [1, 1]} : vector<8x128xf32> to vector<8x32xf32>
    %100 = math.tanh %99 : vector<8x32xf32>
    %101 = vector.extract_strided_slice %98 {offsets = [0, 32], sizes = [8, 32], strides = [1, 1]} : vector<8x96xf32> to vector<8x32xf32>
    %102 = arith.mulf %101, %53 : vector<8x32xf32>
    %103 = vector.extract_strided_slice %98 {offsets = [0, 0], sizes = [8, 32], strides = [1, 1]} : vector<8x96xf32> to vector<8x32xf32>
    %104 = arith.mulf %103, %100 : vector<8x32xf32>
    %105 = arith.addf %102, %104 : vector<8x32xf32>
    %106 = vector.extract_strided_slice %98 {offsets = [0, 64], sizes = [8, 32], strides = [1, 1]} : vector<8x96xf32> to vector<8x32xf32>
    %107 = math.tanh %105 : vector<8x32xf32>
    %108 = arith.mulf %106, %107 : vector<8x32xf32>
    %109 = arith.index_cast %66 : i32 to index
    %c0_24 = arith.constant 0 : index
    %110 = vector.load %arg6[%109, %c0_24] : memref<64x64xf32, #tpu.memory_space<vmem>>, vector<8x32xf32>
    tpu.vector_store %arg6[%109, %c0_24], %92 {strides = array<i32>} : memref<64x64xf32, #tpu.memory_space<vmem>>, vector<8x32xf32>,
    %111 = arith.index_cast %68 : i32 to index
    %c32_25 = arith.constant 32 : index
    %112 = vector.load %arg6[%111, %c32_25] : memref<64x64xf32, #tpu.memory_space<vmem>>, vector<8x32xf32>
    tpu.vector_store %arg6[%111, %c32_25], %108 {strides = array<i32>} : memref<64x64xf32, #tpu.memory_space<vmem>>, vector<8x32xf32>,
    %c2_i32 = arith.constant 2 : i32
    %113 = tpu.concatenate %92, %108 in 1 : vector<8x32xf32>, vector<8x32xf32> -> vector<8x64xf32>
    %114 = arith.truncf %113 : vector<8x64xf32> to vector<8x64xbf16>
    %cst_26 = arith.constant dense<0.000000e+00> : vector<8x256xf32>
    %115 = tpu.matmul %114, %7, %cst_26 {dimension_numbers = #tpu.dot_dimension_numbers<[1], [0], [0], [1], [0, 0, 1, 1], [], []>} : vector<8x64xbf16>, vector<64x256xbf16>, vector<8x256xf32> -> vector<8x256xf32>
    %c7_i32_27 = arith.constant 7 : i32
    %116 = arith.subi %c7_i32_27, %c2_i32 : i32
    %c8_i32_28 = arith.constant 8 : i32
    %117 = arith.muli %c2_i32, %c8_i32_28 : i32
    %118 = tpu.assume_multiple %117, 8 : i32
    %c8_i32_29 = arith.constant 8 : i32
    %119 = arith.muli %116, %c8_i32_29 : i32
    %120 = tpu.assume_multiple %119, 8 : i32
    %121 = vector.extract_strided_slice %115 {offsets = [0, 0], sizes = [8, 128], strides = [1, 1]} : vector<8x256xf32> to vector<8x128xf32>
    %122 = arith.index_cast %118 : i32 to index
    %c0_30 = arith.constant 0 : index
    %123 = vector.load %arg5[%122, %c0_30] : memref<64x256xf32, #tpu.memory_space<vmem>>, vector<8x128xf32>
    %124 = arith.addf %121, %123 : vector<8x128xf32>
    %125 = vector.extract_strided_slice %115 {offsets = [0, 128], sizes = [8, 128], strides = [1, 1]} : vector<8x256xf32> to vector<8x128xf32>
    %126 = arith.index_cast %120 : i32 to index
    %c128_31 = arith.constant 128 : index
    %127 = vector.load %arg5[%126, %c128_31] : memref<64x256xf32, #tpu.memory_space<vmem>>, vector<8x128xf32>
    %128 = arith.addf %125, %127 : vector<8x128xf32>
    %129 = vector.extract_strided_slice %124 {offsets = [0, 0], sizes = [8, 96], strides = [1, 1]} : vector<8x128xf32> to vector<8x96xf32>
    %130 = arith.negf %129 : vector<8x96xf32>
    %131 = math.exp %130 : vector<8x96xf32>
    %cst_32 = arith.constant 1.000000e+00 : f32
    %132 = vector.broadcast %cst_32 : f32 to vector<8x96xf32>
    %133 = arith.addf %132, %131 : vector<8x96xf32>
    %134 = arith.divf %132, %133 : vector<8x96xf32>
    %135 = vector.extract_strided_slice %124 {offsets = [0, 96], sizes = [8, 32], strides = [1, 1]} : vector<8x128xf32> to vector<8x32xf32>
    %136 = math.tanh %135 : vector<8x32xf32>
    %137 = vector.extract_strided_slice %134 {offsets = [0, 32], sizes = [8, 32], strides = [1, 1]} : vector<8x96xf32> to vector<8x32xf32>
    %138 = arith.mulf %137, %89 : vector<8x32xf32>
    %139 = vector.extract_strided_slice %134 {offsets = [0, 0], sizes = [8, 32], strides = [1, 1]} : vector<8x96xf32> to vector<8x32xf32>
    %140 = arith.mulf %139, %136 : vector<8x32xf32>
    %141 = arith.addf %138, %140 : vector<8x32xf32>
    %142 = vector.extract_strided_slice %134 {offsets = [0, 64], sizes = [8, 32], strides = [1, 1]} : vector<8x96xf32> to vector<8x32xf32>
    %143 = math.tanh %141 : vector<8x32xf32>
    %144 = arith.mulf %142, %143 : vector<8x32xf32>
    %145 = vector.extract_strided_slice %128 {offsets = [0, 0], sizes = [8, 96], strides = [1, 1]} : vector<8x128xf32> to vector<8x96xf32>
    %146 = arith.negf %145 : vector<8x96xf32>
    %147 = math.exp %146 : vector<8x96xf32>
    %cst_33 = arith.constant 1.000000e+00 : f32
    %148 = vector.broadcast %cst_33 : f32 to vector<8x96xf32>
    %149 = arith.addf %148, %147 : vector<8x96xf32>
    %150 = arith.divf %148, %149 : vector<8x96xf32>
    %151 = vector.extract_strided_slice %128 {offsets = [0, 96], sizes = [8, 32], strides = [1, 1]} : vector<8x128xf32> to vector<8x32xf32>
    %152 = math.tanh %151 : vector<8x32xf32>
    %153 = vector.extract_strided_slice %150 {offsets = [0, 32], sizes = [8, 32], strides = [1, 1]} : vector<8x96xf32> to vector<8x32xf32>
    %154 = arith.mulf %153, %105 : vector<8x32xf32>
    %155 = vector.extract_strided_slice %150 {offsets = [0, 0], sizes = [8, 32], strides = [1, 1]} : vector<8x96xf32> to vector<8x32xf32>
    %156 = arith.mulf %155, %152 : vector<8x32xf32>
    %157 = arith.addf %154, %156 : vector<8x32xf32>
    %158 = vector.extract_strided_slice %150 {offsets = [0, 64], sizes = [8, 32], strides = [1, 1]} : vector<8x96xf32> to vector<8x32xf32>
    %159 = math.tanh %157 : vector<8x32xf32>
    %160 = arith.mulf %158, %159 : vector<8x32xf32>
    %161 = arith.index_cast %118 : i32 to index
    %c0_34 = arith.constant 0 : index
    %162 = vector.load %arg6[%161, %c0_34] : memref<64x64xf32, #tpu.memory_space<vmem>>, vector<8x32xf32>
    tpu.vector_store %arg6[%161, %c0_34], %144 {strides = array<i32>} : memref<64x64xf32, #tpu.memory_space<vmem>>, vector<8x32xf32>,
    %163 = arith.index_cast %120 : i32 to index
    %c32_35 = arith.constant 32 : index
    %164 = vector.load %arg6[%163, %c32_35] : memref<64x64xf32, #tpu.memory_space<vmem>>, vector<8x32xf32>
    tpu.vector_store %arg6[%163, %c32_35], %160 {strides = array<i32>} : memref<64x64xf32, #tpu.memory_space<vmem>>, vector<8x32xf32>,
    %c3_i32 = arith.constant 3 : i32
    %165 = tpu.concatenate %144, %160 in 1 : vector<8x32xf32>, vector<8x32xf32> -> vector<8x64xf32>
    %166 = arith.truncf %165 : vector<8x64xf32> to vector<8x64xbf16>
    %cst_36 = arith.constant dense<0.000000e+00> : vector<8x256xf32>
    %167 = tpu.matmul %166, %7, %cst_36 {dimension_numbers = #tpu.dot_dimension_numbers<[1], [0], [0], [1], [0, 0, 1, 1], [], []>} : vector<8x64xbf16>, vector<64x256xbf16>, vector<8x256xf32> -> vector<8x256xf32>
    %c7_i32_37 = arith.constant 7 : i32
    %168 = arith.subi %c7_i32_37, %c3_i32 : i32
    %c8_i32_38 = arith.constant 8 : i32
    %169 = arith.muli %c3_i32, %c8_i32_38 : i32
    %170 = tpu.assume_multiple %169, 8 : i32
    %c8_i32_39 = arith.constant 8 : i32
    %171 = arith.muli %168, %c8_i32_39 : i32
    %172 = tpu.assume_multiple %171, 8 : i32
    %173 = vector.extract_strided_slice %167 {offsets = [0, 0], sizes = [8, 128], strides = [1, 1]} : vector<8x256xf32> to vector<8x128xf32>
    %174 = arith.index_cast %170 : i32 to index
    %c0_40 = arith.constant 0 : index
    %175 = vector.load %arg5[%174, %c0_40] : memref<64x256xf32, #tpu.memory_space<vmem>>, vector<8x128xf32>
    %176 = arith.addf %173, %175 : vector<8x128xf32>
    %177 = vector.extract_strided_slice %167 {offsets = [0, 128], sizes = [8, 128], strides = [1, 1]} : vector<8x256xf32> to vector<8x128xf32>
    %178 = arith.index_cast %172 : i32 to index
    %c128_41 = arith.constant 128 : index
    %179 = vector.load %arg5[%178, %c128_41] : memref<64x256xf32, #tpu.memory_space<vmem>>, vector<8x128xf32>
    %180 = arith.addf %177, %179 : vector<8x128xf32>
    %181 = vector.extract_strided_slice %176 {offsets = [0, 0], sizes = [8, 96], strides = [1, 1]} : vector<8x128xf32> to vector<8x96xf32>
    %182 = arith.negf %181 : vector<8x96xf32>
    %183 = math.exp %182 : vector<8x96xf32>
    %cst_42 = arith.constant 1.000000e+00 : f32
    %184 = vector.broadcast %cst_42 : f32 to vector<8x96xf32>
    %185 = arith.addf %184, %183 : vector<8x96xf32>
    %186 = arith.divf %184, %185 : vector<8x96xf32>
    %187 = vector.extract_strided_slice %176 {offsets = [0, 96], sizes = [8, 32], strides = [1, 1]} : vector<8x128xf32> to vector<8x32xf32>
    %188 = math.tanh %187 : vector<8x32xf32>
    %189 = vector.extract_strided_slice %186 {offsets = [0, 32], sizes = [8, 32], strides = [1, 1]} : vector<8x96xf32> to vector<8x32xf32>
    %190 = arith.mulf %189, %141 : vector<8x32xf32>
    %191 = vector.extract_strided_slice %186 {offsets = [0, 0], sizes = [8, 32], strides = [1, 1]} : vector<8x96xf32> to vector<8x32xf32>
    %192 = arith.mulf %191, %188 : vector<8x32xf32>
    %193 = arith.addf %190, %192 : vector<8x32xf32>
    %194 = vector.extract_strided_slice %186 {offsets = [0, 64], sizes = [8, 32], strides = [1, 1]} : vector<8x96xf32> to vector<8x32xf32>
    %195 = math.tanh %193 : vector<8x32xf32>
    %196 = arith.mulf %194, %195 : vector<8x32xf32>
    %197 = vector.extract_strided_slice %180 {offsets = [0, 0], sizes = [8, 96], strides = [1, 1]} : vector<8x128xf32> to vector<8x96xf32>
    %198 = arith.negf %197 : vector<8x96xf32>
    %199 = math.exp %198 : vector<8x96xf32>
    %cst_43 = arith.constant 1.000000e+00 : f32
    %200 = vector.broadcast %cst_43 : f32 to vector<8x96xf32>
    %201 = arith.addf %200, %199 : vector<8x96xf32>
    %202 = arith.divf %200, %201 : vector<8x96xf32>
    %203 = vector.extract_strided_slice %180 {offsets = [0, 96], sizes = [8, 32], strides = [1, 1]} : vector<8x128xf32> to vector<8x32xf32>
    %204 = math.tanh %203 : vector<8x32xf32>
    %205 = vector.extract_strided_slice %202 {offsets = [0, 32], sizes = [8, 32], strides = [1, 1]} : vector<8x96xf32> to vector<8x32xf32>
    %206 = arith.mulf %205, %157 : vector<8x32xf32>
    %207 = vector.extract_strided_slice %202 {offsets = [0, 0], sizes = [8, 32], strides = [1, 1]} : vector<8x96xf32> to vector<8x32xf32>
    %208 = arith.mulf %207, %204 : vector<8x32xf32>
    %209 = arith.addf %206, %208 : vector<8x32xf32>
    %210 = vector.extract_strided_slice %202 {offsets = [0, 64], sizes = [8, 32], strides = [1, 1]} : vector<8x96xf32> to vector<8x32xf32>
    %211 = math.tanh %209 : vector<8x32xf32>
    %212 = arith.mulf %210, %211 : vector<8x32xf32>
    %213 = arith.index_cast %170 : i32 to index
    %c0_44 = arith.constant 0 : index
    %214 = vector.load %arg6[%213, %c0_44] : memref<64x64xf32, #tpu.memory_space<vmem>>, vector<8x32xf32>
    tpu.vector_store %arg6[%213, %c0_44], %196 {strides = array<i32>} : memref<64x64xf32, #tpu.memory_space<vmem>>, vector<8x32xf32>,
    %215 = arith.index_cast %172 : i32 to index
    %c32_45 = arith.constant 32 : index
    %216 = vector.load %arg6[%215, %c32_45] : memref<64x64xf32, #tpu.memory_space<vmem>>, vector<8x32xf32>
    tpu.vector_store %arg6[%215, %c32_45], %212 {strides = array<i32>} : memref<64x64xf32, #tpu.memory_space<vmem>>, vector<8x32xf32>,
    %c4_i32 = arith.constant 4 : i32
    %217 = tpu.concatenate %196, %212 in 1 : vector<8x32xf32>, vector<8x32xf32> -> vector<8x64xf32>
    %218 = arith.truncf %217 : vector<8x64xf32> to vector<8x64xbf16>
    %cst_46 = arith.constant dense<0.000000e+00> : vector<8x256xf32>
    %219 = tpu.matmul %218, %7, %cst_46 {dimension_numbers = #tpu.dot_dimension_numbers<[1], [0], [0], [1], [0, 0, 1, 1], [], []>} : vector<8x64xbf16>, vector<64x256xbf16>, vector<8x256xf32> -> vector<8x256xf32>
    %c7_i32_47 = arith.constant 7 : i32
    %220 = arith.subi %c7_i32_47, %c4_i32 : i32
    %c8_i32_48 = arith.constant 8 : i32
    %221 = arith.muli %c4_i32, %c8_i32_48 : i32
    %222 = tpu.assume_multiple %221, 8 : i32
    %c8_i32_49 = arith.constant 8 : i32
    %223 = arith.muli %220, %c8_i32_49 : i32
    %224 = tpu.assume_multiple %223, 8 : i32
    %225 = vector.extract_strided_slice %219 {offsets = [0, 0], sizes = [8, 128], strides = [1, 1]} : vector<8x256xf32> to vector<8x128xf32>
    %226 = arith.index_cast %222 : i32 to index
    %c0_50 = arith.constant 0 : index
    %227 = vector.load %arg5[%226, %c0_50] : memref<64x256xf32, #tpu.memory_space<vmem>>, vector<8x128xf32>
    %228 = arith.addf %225, %227 : vector<8x128xf32>
    %229 = vector.extract_strided_slice %219 {offsets = [0, 128], sizes = [8, 128], strides = [1, 1]} : vector<8x256xf32> to vector<8x128xf32>
    %230 = arith.index_cast %224 : i32 to index
    %c128_51 = arith.constant 128 : index
    %231 = vector.load %arg5[%230, %c128_51] : memref<64x256xf32, #tpu.memory_space<vmem>>, vector<8x128xf32>
    %232 = arith.addf %229, %231 : vector<8x128xf32>
    %233 = vector.extract_strided_slice %228 {offsets = [0, 0], sizes = [8, 96], strides = [1, 1]} : vector<8x128xf32> to vector<8x96xf32>
    %234 = arith.negf %233 : vector<8x96xf32>
    %235 = math.exp %234 : vector<8x96xf32>
    %cst_52 = arith.constant 1.000000e+00 : f32
    %236 = vector.broadcast %cst_52 : f32 to vector<8x96xf32>
    %237 = arith.addf %236, %235 : vector<8x96xf32>
    %238 = arith.divf %236, %237 : vector<8x96xf32>
    %239 = vector.extract_strided_slice %228 {offsets = [0, 96], sizes = [8, 32], strides = [1, 1]} : vector<8x128xf32> to vector<8x32xf32>
    %240 = math.tanh %239 : vector<8x32xf32>
    %241 = vector.extract_strided_slice %238 {offsets = [0, 32], sizes = [8, 32], strides = [1, 1]} : vector<8x96xf32> to vector<8x32xf32>
    %242 = arith.mulf %241, %193 : vector<8x32xf32>
    %243 = vector.extract_strided_slice %238 {offsets = [0, 0], sizes = [8, 32], strides = [1, 1]} : vector<8x96xf32> to vector<8x32xf32>
    %244 = arith.mulf %243, %240 : vector<8x32xf32>
    %245 = arith.addf %242, %244 : vector<8x32xf32>
    %246 = vector.extract_strided_slice %238 {offsets = [0, 64], sizes = [8, 32], strides = [1, 1]} : vector<8x96xf32> to vector<8x32xf32>
    %247 = math.tanh %245 : vector<8x32xf32>
    %248 = arith.mulf %246, %247 : vector<8x32xf32>
    %249 = vector.extract_strided_slice %232 {offsets = [0, 0], sizes = [8, 96], strides = [1, 1]} : vector<8x128xf32> to vector<8x96xf32>
    %250 = arith.negf %249 : vector<8x96xf32>
    %251 = math.exp %250 : vector<8x96xf32>
    %cst_53 = arith.constant 1.000000e+00 : f32
    %252 = vector.broadcast %cst_53 : f32 to vector<8x96xf32>
    %253 = arith.addf %252, %251 : vector<8x96xf32>
    %254 = arith.divf %252, %253 : vector<8x96xf32>
    %255 = vector.extract_strided_slice %232 {offsets = [0, 96], sizes = [8, 32], strides = [1, 1]} : vector<8x128xf32> to vector<8x32xf32>
    %256 = math.tanh %255 : vector<8x32xf32>
    %257 = vector.extract_strided_slice %254 {offsets = [0, 32], sizes = [8, 32], strides = [1, 1]} : vector<8x96xf32> to vector<8x32xf32>
    %258 = arith.mulf %257, %209 : vector<8x32xf32>
    %259 = vector.extract_strided_slice %254 {offsets = [0, 0], sizes = [8, 32], strides = [1, 1]} : vector<8x96xf32> to vector<8x32xf32>
    %260 = arith.mulf %259, %256 : vector<8x32xf32>
    %261 = arith.addf %258, %260 : vector<8x32xf32>
    %262 = vector.extract_strided_slice %254 {offsets = [0, 64], sizes = [8, 32], strides = [1, 1]} : vector<8x96xf32> to vector<8x32xf32>
    %263 = math.tanh %261 : vector<8x32xf32>
    %264 = arith.mulf %262, %263 : vector<8x32xf32>
    %265 = arith.index_cast %222 : i32 to index
    %c0_54 = arith.constant 0 : index
    %266 = vector.load %arg6[%265, %c0_54] : memref<64x64xf32, #tpu.memory_space<vmem>>, vector<8x32xf32>
    tpu.vector_store %arg6[%265, %c0_54], %248 {strides = array<i32>} : memref<64x64xf32, #tpu.memory_space<vmem>>, vector<8x32xf32>,
    %267 = arith.index_cast %224 : i32 to index
    %c32_55 = arith.constant 32 : index
    %268 = vector.load %arg6[%267, %c32_55] : memref<64x64xf32, #tpu.memory_space<vmem>>, vector<8x32xf32>
    tpu.vector_store %arg6[%267, %c32_55], %264 {strides = array<i32>} : memref<64x64xf32, #tpu.memory_space<vmem>>, vector<8x32xf32>,
    %c5_i32 = arith.constant 5 : i32
    %269 = tpu.concatenate %248, %264 in 1 : vector<8x32xf32>, vector<8x32xf32> -> vector<8x64xf32>
    %270 = arith.truncf %269 : vector<8x64xf32> to vector<8x64xbf16>
    %cst_56 = arith.constant dense<0.000000e+00> : vector<8x256xf32>
    %271 = tpu.matmul %270, %7, %cst_56 {dimension_numbers = #tpu.dot_dimension_numbers<[1], [0], [0], [1], [0, 0, 1, 1], [], []>} : vector<8x64xbf16>, vector<64x256xbf16>, vector<8x256xf32> -> vector<8x256xf32>
    %c7_i32_57 = arith.constant 7 : i32
    %272 = arith.subi %c7_i32_57, %c5_i32 : i32
    %c8_i32_58 = arith.constant 8 : i32
    %273 = arith.muli %c5_i32, %c8_i32_58 : i32
    %274 = tpu.assume_multiple %273, 8 : i32
    %c8_i32_59 = arith.constant 8 : i32
    %275 = arith.muli %272, %c8_i32_59 : i32
    %276 = tpu.assume_multiple %275, 8 : i32
    %277 = vector.extract_strided_slice %271 {offsets = [0, 0], sizes = [8, 128], strides = [1, 1]} : vector<8x256xf32> to vector<8x128xf32>
    %278 = arith.index_cast %274 : i32 to index
    %c0_60 = arith.constant 0 : index
    %279 = vector.load %arg5[%278, %c0_60] : memref<64x256xf32, #tpu.memory_space<vmem>>, vector<8x128xf32>
    %280 = arith.addf %277, %279 : vector<8x128xf32>
    %281 = vector.extract_strided_slice %271 {offsets = [0, 128], sizes = [8, 128], strides = [1, 1]} : vector<8x256xf32> to vector<8x128xf32>
    %282 = arith.index_cast %276 : i32 to index
    %c128_61 = arith.constant 128 : index
    %283 = vector.load %arg5[%282, %c128_61] : memref<64x256xf32, #tpu.memory_space<vmem>>, vector<8x128xf32>
    %284 = arith.addf %281, %283 : vector<8x128xf32>
    %285 = vector.extract_strided_slice %280 {offsets = [0, 0], sizes = [8, 96], strides = [1, 1]} : vector<8x128xf32> to vector<8x96xf32>
    %286 = arith.negf %285 : vector<8x96xf32>
    %287 = math.exp %286 : vector<8x96xf32>
    %cst_62 = arith.constant 1.000000e+00 : f32
    %288 = vector.broadcast %cst_62 : f32 to vector<8x96xf32>
    %289 = arith.addf %288, %287 : vector<8x96xf32>
    %290 = arith.divf %288, %289 : vector<8x96xf32>
    %291 = vector.extract_strided_slice %280 {offsets = [0, 96], sizes = [8, 32], strides = [1, 1]} : vector<8x128xf32> to vector<8x32xf32>
    %292 = math.tanh %291 : vector<8x32xf32>
    %293 = vector.extract_strided_slice %290 {offsets = [0, 32], sizes = [8, 32], strides = [1, 1]} : vector<8x96xf32> to vector<8x32xf32>
    %294 = arith.mulf %293, %245 : vector<8x32xf32>
    %295 = vector.extract_strided_slice %290 {offsets = [0, 0], sizes = [8, 32], strides = [1, 1]} : vector<8x96xf32> to vector<8x32xf32>
    %296 = arith.mulf %295, %292 : vector<8x32xf32>
    %297 = arith.addf %294, %296 : vector<8x32xf32>
    %298 = vector.extract_strided_slice %290 {offsets = [0, 64], sizes = [8, 32], strides = [1, 1]} : vector<8x96xf32> to vector<8x32xf32>
    %299 = math.tanh %297 : vector<8x32xf32>
    %300 = arith.mulf %298, %299 : vector<8x32xf32>
    %301 = vector.extract_strided_slice %284 {offsets = [0, 0], sizes = [8, 96], strides = [1, 1]} : vector<8x128xf32> to vector<8x96xf32>
    %302 = arith.negf %301 : vector<8x96xf32>
    %303 = math.exp %302 : vector<8x96xf32>
    %cst_63 = arith.constant 1.000000e+00 : f32
    %304 = vector.broadcast %cst_63 : f32 to vector<8x96xf32>
    %305 = arith.addf %304, %303 : vector<8x96xf32>
    %306 = arith.divf %304, %305 : vector<8x96xf32>
    %307 = vector.extract_strided_slice %284 {offsets = [0, 96], sizes = [8, 32], strides = [1, 1]} : vector<8x128xf32> to vector<8x32xf32>
    %308 = math.tanh %307 : vector<8x32xf32>
    %309 = vector.extract_strided_slice %306 {offsets = [0, 32], sizes = [8, 32], strides = [1, 1]} : vector<8x96xf32> to vector<8x32xf32>
    %310 = arith.mulf %309, %261 : vector<8x32xf32>
    %311 = vector.extract_strided_slice %306 {offsets = [0, 0], sizes = [8, 32], strides = [1, 1]} : vector<8x96xf32> to vector<8x32xf32>
    %312 = arith.mulf %311, %308 : vector<8x32xf32>
    %313 = arith.addf %310, %312 : vector<8x32xf32>
    %314 = vector.extract_strided_slice %306 {offsets = [0, 64], sizes = [8, 32], strides = [1, 1]} : vector<8x96xf32> to vector<8x32xf32>
    %315 = math.tanh %313 : vector<8x32xf32>
    %316 = arith.mulf %314, %315 : vector<8x32xf32>
    %317 = arith.index_cast %274 : i32 to index
    %c0_64 = arith.constant 0 : index
    %318 = vector.load %arg6[%317, %c0_64] : memref<64x64xf32, #tpu.memory_space<vmem>>, vector<8x32xf32>
    tpu.vector_store %arg6[%317, %c0_64], %300 {strides = array<i32>} : memref<64x64xf32, #tpu.memory_space<vmem>>, vector<8x32xf32>,
    %319 = arith.index_cast %276 : i32 to index
    %c32_65 = arith.constant 32 : index
    %320 = vector.load %arg6[%319, %c32_65] : memref<64x64xf32, #tpu.memory_space<vmem>>, vector<8x32xf32>
    tpu.vector_store %arg6[%319, %c32_65], %316 {strides = array<i32>} : memref<64x64xf32, #tpu.memory_space<vmem>>, vector<8x32xf32>,
    %c6_i32 = arith.constant 6 : i32
    %321 = tpu.concatenate %300, %316 in 1 : vector<8x32xf32>, vector<8x32xf32> -> vector<8x64xf32>
    %322 = arith.truncf %321 : vector<8x64xf32> to vector<8x64xbf16>
    %cst_66 = arith.constant dense<0.000000e+00> : vector<8x256xf32>
    %323 = tpu.matmul %322, %7, %cst_66 {dimension_numbers = #tpu.dot_dimension_numbers<[1], [0], [0], [1], [0, 0, 1, 1], [], []>} : vector<8x64xbf16>, vector<64x256xbf16>, vector<8x256xf32> -> vector<8x256xf32>
    %c7_i32_67 = arith.constant 7 : i32
    %324 = arith.subi %c7_i32_67, %c6_i32 : i32
    %c8_i32_68 = arith.constant 8 : i32
    %325 = arith.muli %c6_i32, %c8_i32_68 : i32
    %326 = tpu.assume_multiple %325, 8 : i32
    %c8_i32_69 = arith.constant 8 : i32
    %327 = arith.muli %324, %c8_i32_69 : i32
    %328 = tpu.assume_multiple %327, 8 : i32
    %329 = vector.extract_strided_slice %323 {offsets = [0, 0], sizes = [8, 128], strides = [1, 1]} : vector<8x256xf32> to vector<8x128xf32>
    %330 = arith.index_cast %326 : i32 to index
    %c0_70 = arith.constant 0 : index
    %331 = vector.load %arg5[%330, %c0_70] : memref<64x256xf32, #tpu.memory_space<vmem>>, vector<8x128xf32>
    %332 = arith.addf %329, %331 : vector<8x128xf32>
    %333 = vector.extract_strided_slice %323 {offsets = [0, 128], sizes = [8, 128], strides = [1, 1]} : vector<8x256xf32> to vector<8x128xf32>
    %334 = arith.index_cast %328 : i32 to index
    %c128_71 = arith.constant 128 : index
    %335 = vector.load %arg5[%334, %c128_71] : memref<64x256xf32, #tpu.memory_space<vmem>>, vector<8x128xf32>
    %336 = arith.addf %333, %335 : vector<8x128xf32>
    %337 = vector.extract_strided_slice %332 {offsets = [0, 0], sizes = [8, 96], strides = [1, 1]} : vector<8x128xf32> to vector<8x96xf32>
    %338 = arith.negf %337 : vector<8x96xf32>
    %339 = math.exp %338 : vector<8x96xf32>
    %cst_72 = arith.constant 1.000000e+00 : f32
    %340 = vector.broadcast %cst_72 : f32 to vector<8x96xf32>
    %341 = arith.addf %340, %339 : vector<8x96xf32>
    %342 = arith.divf %340, %341 : vector<8x96xf32>
    %343 = vector.extract_strided_slice %332 {offsets = [0, 96], sizes = [8, 32], strides = [1, 1]} : vector<8x128xf32> to vector<8x32xf32>
    %344 = math.tanh %343 : vector<8x32xf32>
    %345 = vector.extract_strided_slice %342 {offsets = [0, 32], sizes = [8, 32], strides = [1, 1]} : vector<8x96xf32> to vector<8x32xf32>
    %346 = arith.mulf %345, %297 : vector<8x32xf32>
    %347 = vector.extract_strided_slice %342 {offsets = [0, 0], sizes = [8, 32], strides = [1, 1]} : vector<8x96xf32> to vector<8x32xf32>
    %348 = arith.mulf %347, %344 : vector<8x32xf32>
    %349 = arith.addf %346, %348 : vector<8x32xf32>
    %350 = vector.extract_strided_slice %342 {offsets = [0, 64], sizes = [8, 32], strides = [1, 1]} : vector<8x96xf32> to vector<8x32xf32>
    %351 = math.tanh %349 : vector<8x32xf32>
    %352 = arith.mulf %350, %351 : vector<8x32xf32>
    %353 = vector.extract_strided_slice %336 {offsets = [0, 0], sizes = [8, 96], strides = [1, 1]} : vector<8x128xf32> to vector<8x96xf32>
    %354 = arith.negf %353 : vector<8x96xf32>
    %355 = math.exp %354 : vector<8x96xf32>
    %cst_73 = arith.constant 1.000000e+00 : f32
    %356 = vector.broadcast %cst_73 : f32 to vector<8x96xf32>
    %357 = arith.addf %356, %355 : vector<8x96xf32>
    %358 = arith.divf %356, %357 : vector<8x96xf32>
    %359 = vector.extract_strided_slice %336 {offsets = [0, 96], sizes = [8, 32], strides = [1, 1]} : vector<8x128xf32> to vector<8x32xf32>
    %360 = math.tanh %359 : vector<8x32xf32>
    %361 = vector.extract_strided_slice %358 {offsets = [0, 32], sizes = [8, 32], strides = [1, 1]} : vector<8x96xf32> to vector<8x32xf32>
    %362 = arith.mulf %361, %313 : vector<8x32xf32>
    %363 = vector.extract_strided_slice %358 {offsets = [0, 0], sizes = [8, 32], strides = [1, 1]} : vector<8x96xf32> to vector<8x32xf32>
    %364 = arith.mulf %363, %360 : vector<8x32xf32>
    %365 = arith.addf %362, %364 : vector<8x32xf32>
    %366 = vector.extract_strided_slice %358 {offsets = [0, 64], sizes = [8, 32], strides = [1, 1]} : vector<8x96xf32> to vector<8x32xf32>
    %367 = math.tanh %365 : vector<8x32xf32>
    %368 = arith.mulf %366, %367 : vector<8x32xf32>
    %369 = arith.index_cast %326 : i32 to index
    %c0_74 = arith.constant 0 : index
    %370 = vector.load %arg6[%369, %c0_74] : memref<64x64xf32, #tpu.memory_space<vmem>>, vector<8x32xf32>
    tpu.vector_store %arg6[%369, %c0_74], %352 {strides = array<i32>} : memref<64x64xf32, #tpu.memory_space<vmem>>, vector<8x32xf32>,
    %371 = arith.index_cast %328 : i32 to index
    %c32_75 = arith.constant 32 : index
    %372 = vector.load %arg6[%371, %c32_75] : memref<64x64xf32, #tpu.memory_space<vmem>>, vector<8x32xf32>
    tpu.vector_store %arg6[%371, %c32_75], %368 {strides = array<i32>} : memref<64x64xf32, #tpu.memory_space<vmem>>, vector<8x32xf32>,
    %c7_i32_76 = arith.constant 7 : i32
    %373 = tpu.concatenate %352, %368 in 1 : vector<8x32xf32>, vector<8x32xf32> -> vector<8x64xf32>
    %374 = arith.truncf %373 : vector<8x64xf32> to vector<8x64xbf16>
    %cst_77 = arith.constant dense<0.000000e+00> : vector<8x256xf32>
    %375 = tpu.matmul %374, %7, %cst_77 {dimension_numbers = #tpu.dot_dimension_numbers<[1], [0], [0], [1], [0, 0, 1, 1], [], []>} : vector<8x64xbf16>, vector<64x256xbf16>, vector<8x256xf32> -> vector<8x256xf32>
    %c7_i32_78 = arith.constant 7 : i32
    %376 = arith.subi %c7_i32_78, %c7_i32_76 : i32
    %c8_i32_79 = arith.constant 8 : i32
    %377 = arith.muli %c7_i32_76, %c8_i32_79 : i32
    %378 = tpu.assume_multiple %377, 8 : i32
    %c8_i32_80 = arith.constant 8 : i32
    %379 = arith.muli %376, %c8_i32_80 : i32
    %380 = tpu.assume_multiple %379, 8 : i32
    %381 = vector.extract_strided_slice %375 {offsets = [0, 0], sizes = [8, 128], strides = [1, 1]} : vector<8x256xf32> to vector<8x128xf32>
    %382 = arith.index_cast %378 : i32 to index
    %c0_81 = arith.constant 0 : index
    %383 = vector.load %arg5[%382, %c0_81] : memref<64x256xf32, #tpu.memory_space<vmem>>, vector<8x128xf32>
    %384 = arith.addf %381, %383 : vector<8x128xf32>
    %385 = vector.extract_strided_slice %375 {offsets = [0, 128], sizes = [8, 128], strides = [1, 1]} : vector<8x256xf32> to vector<8x128xf32>
    %386 = arith.index_cast %380 : i32 to index
    %c128_82 = arith.constant 128 : index
    %387 = vector.load %arg5[%386, %c128_82] : memref<64x256xf32, #tpu.memory_space<vmem>>, vector<8x128xf32>
    %388 = arith.addf %385, %387 : vector<8x128xf32>
    %389 = vector.extract_strided_slice %384 {offsets = [0, 0], sizes = [8, 96], strides = [1, 1]} : vector<8x128xf32> to vector<8x96xf32>
    %390 = arith.negf %389 : vector<8x96xf32>
    %391 = math.exp %390 : vector<8x96xf32>
    %cst_83 = arith.constant 1.000000e+00 : f32
    %392 = vector.broadcast %cst_83 : f32 to vector<8x96xf32>
    %393 = arith.addf %392, %391 : vector<8x96xf32>
    %394 = arith.divf %392, %393 : vector<8x96xf32>
    %395 = vector.extract_strided_slice %384 {offsets = [0, 96], sizes = [8, 32], strides = [1, 1]} : vector<8x128xf32> to vector<8x32xf32>
    %396 = math.tanh %395 : vector<8x32xf32>
    %397 = vector.extract_strided_slice %394 {offsets = [0, 32], sizes = [8, 32], strides = [1, 1]} : vector<8x96xf32> to vector<8x32xf32>
    %398 = arith.mulf %397, %349 : vector<8x32xf32>
    %399 = vector.extract_strided_slice %394 {offsets = [0, 0], sizes = [8, 32], strides = [1, 1]} : vector<8x96xf32> to vector<8x32xf32>
    %400 = arith.mulf %399, %396 : vector<8x32xf32>
    %401 = arith.addf %398, %400 : vector<8x32xf32>
    %402 = vector.extract_strided_slice %394 {offsets = [0, 64], sizes = [8, 32], strides = [1, 1]} : vector<8x96xf32> to vector<8x32xf32>
    %403 = math.tanh %401 : vector<8x32xf32>
    %404 = arith.mulf %402, %403 : vector<8x32xf32>
    %405 = vector.extract_strided_slice %388 {offsets = [0, 0], sizes = [8, 96], strides = [1, 1]} : vector<8x128xf32> to vector<8x96xf32>
    %406 = arith.negf %405 : vector<8x96xf32>
    %407 = math.exp %406 : vector<8x96xf32>
    %cst_84 = arith.constant 1.000000e+00 : f32
    %408 = vector.broadcast %cst_84 : f32 to vector<8x96xf32>
    %409 = arith.addf %408, %407 : vector<8x96xf32>
    %410 = arith.divf %408, %409 : vector<8x96xf32>
    %411 = vector.extract_strided_slice %388 {offsets = [0, 96], sizes = [8, 32], strides = [1, 1]} : vector<8x128xf32> to vector<8x32xf32>
    %412 = math.tanh %411 : vector<8x32xf32>
    %413 = vector.extract_strided_slice %410 {offsets = [0, 32], sizes = [8, 32], strides = [1, 1]} : vector<8x96xf32> to vector<8x32xf32>
    %414 = arith.mulf %413, %365 : vector<8x32xf32>
    %415 = vector.extract_strided_slice %410 {offsets = [0, 0], sizes = [8, 32], strides = [1, 1]} : vector<8x96xf32> to vector<8x32xf32>
    %416 = arith.mulf %415, %412 : vector<8x32xf32>
    %417 = arith.addf %414, %416 : vector<8x32xf32>
    %418 = vector.extract_strided_slice %410 {offsets = [0, 64], sizes = [8, 32], strides = [1, 1]} : vector<8x96xf32> to vector<8x32xf32>
    %419 = math.tanh %417 : vector<8x32xf32>
    %420 = arith.mulf %418, %419 : vector<8x32xf32>
    %421 = arith.index_cast %378 : i32 to index
    %c0_85 = arith.constant 0 : index
    %422 = vector.load %arg6[%421, %c0_85] : memref<64x64xf32, #tpu.memory_space<vmem>>, vector<8x32xf32>
    tpu.vector_store %arg6[%421, %c0_85], %404 {strides = array<i32>} : memref<64x64xf32, #tpu.memory_space<vmem>>, vector<8x32xf32>,
    %423 = arith.index_cast %380 : i32 to index
    %c32_86 = arith.constant 32 : index
    %424 = vector.load %arg6[%423, %c32_86] : memref<64x64xf32, #tpu.memory_space<vmem>>, vector<8x32xf32>
    tpu.vector_store %arg6[%423, %c32_86], %420 {strides = array<i32>} : memref<64x64xf32, #tpu.memory_space<vmem>>, vector<8x32xf32>,
    %c8_i32_87 = arith.constant 8 : i32
    %c0_88 = arith.constant 0 : index
    %c0_89 = arith.constant 0 : index
    %425 = vector.load %arg6[%c0_88, %c0_89] : memref<64x64xf32, #tpu.memory_space<vmem>>, vector<64x64xf32>
    %426 = arith.truncf %425 : vector<64x64xf32> to vector<64x64xbf16>
    %c0_90 = arith.constant 0 : index
    %c0_91 = arith.constant 0 : index
    %427 = vector.load %arg4[%c0_90, %c0_91] : memref<64x64xbf16, #tpu.memory_space<vmem>>, vector<64x64xbf16>
    tpu.vector_store %arg4[%c0_90, %c0_91], %426 {strides = array<i32>} : memref<64x64xbf16, #tpu.memory_space<vmem>>, vector<64x64xbf16>,
    return
  }
}

module attributes {stable_mosaic.version = 11 : i64} {
  func.func @kernel(%arg0: memref<64x64xbf16, #tpu.memory_space<vmem>>, %arg1: memref<64x256xbf16, #tpu.memory_space<vmem>>, %arg2: memref<64x256xbf16, #tpu.memory_space<vmem>>, %arg3: memref<1x256xf32, #tpu.memory_space<vmem>>, %arg4: memref<128x2xbf16, #tpu.memory_space<vmem>>, %arg5: memref<1x2xf32, #tpu.memory_space<vmem>>, %arg6: memref<8x2xf32, #tpu.memory_space<vmem>>, %arg7: memref<64x256xf32, #tpu.memory_space<vmem>>) attributes {dimension_semantics = [], scalar_prefetch = 0 : i64, scratch_operands = 1 : i64, tpu.core_type = #tpu.core_type<tc>} {
    %c0 = arith.constant 0 : index
    %c0_0 = arith.constant 0 : index
    %0 = vector.load %arg0[%c0, %c0_0] : memref<64x64xbf16, #tpu.memory_space<vmem>>, vector<64x64xbf16>
    %c0_1 = arith.constant 0 : index
    %c0_2 = arith.constant 0 : index
    %1 = vector.load %arg1[%c0_1, %c0_2] : memref<64x256xbf16, #tpu.memory_space<vmem>>, vector<64x256xbf16>
    %cst = arith.constant dense<0.000000e+00> : vector<64x256xf32>
    %2 = tpu.matmul %0, %1, %cst {dimension_numbers = #tpu.dot_dimension_numbers<[1], [0], [0], [1], [0, 0, 1, 1], [], []>} : vector<64x64xbf16>, vector<64x256xbf16>, vector<64x256xf32> -> vector<64x256xf32>
    %c0_3 = arith.constant 0 : index
    %c0_4 = arith.constant 0 : index
    %3 = vector.load %arg3[%c0_3, %c0_4] : memref<1x256xf32, #tpu.memory_space<vmem>>, vector<1x256xf32>
    %4 = vector.broadcast %3 : vector<1x256xf32> to vector<64x256xf32>
    %5 = arith.addf %2, %4 : vector<64x256xf32>
    %c0_5 = arith.constant 0 : index
    %c0_6 = arith.constant 0 : index
    %6 = vector.load %arg7[%c0_5, %c0_6] : memref<64x256xf32, #tpu.memory_space<vmem>>, vector<64x256xf32>
    tpu.vector_store %arg7[%c0_5, %c0_6], %5 {strides = array<i32>} : memref<64x256xf32, #tpu.memory_space<vmem>>, vector<64x256xf32>,
    %c0_7 = arith.constant 0 : index
    %c0_8 = arith.constant 0 : index
    %7 = vector.load %arg2[%c0_7, %c0_8] : memref<64x256xbf16, #tpu.memory_space<vmem>>, vector<64x256xbf16>
    %cst_9 = arith.constant 0.000000e+00 : f32
    %8 = vector.broadcast %cst_9 : f32 to vector<8x32xf32>
    %c0_i32 = arith.constant 0 : i32
    %9 = tpu.concatenate %8, %8 in 1 : vector<8x32xf32>, vector<8x32xf32> -> vector<8x64xf32>
    %10 = arith.truncf %9 : vector<8x64xf32> to vector<8x64xbf16>
    %cst_10 = arith.constant dense<0.000000e+00> : vector<8x256xf32>
    %11 = tpu.matmul %10, %7, %cst_10 {dimension_numbers = #tpu.dot_dimension_numbers<[1], [0], [0], [1], [0, 0, 1, 1], [], []>} : vector<8x64xbf16>, vector<64x256xbf16>, vector<8x256xf32> -> vector<8x256xf32>
    %c7_i32 = arith.constant 7 : i32
    %12 = arith.subi %c7_i32, %c0_i32 : i32
    %c8_i32 = arith.constant 8 : i32
    %13 = arith.muli %c0_i32, %c8_i32 : i32
    %14 = tpu.assume_multiple %13, 8 : i32
    %c8_i32_11 = arith.constant 8 : i32
    %15 = arith.muli %12, %c8_i32_11 : i32
    %16 = tpu.assume_multiple %15, 8 : i32
    %17 = vector.extract_strided_slice %11 {offsets = [0, 0], sizes = [8, 128], strides = [1, 1]} : vector<8x256xf32> to vector<8x128xf32>
    %18 = arith.index_cast %14 : i32 to index
    %c0_12 = arith.constant 0 : index
    %19 = vector.load %arg7[%18, %c0_12] : memref<64x256xf32, #tpu.memory_space<vmem>>, vector<8x128xf32>
    %20 = arith.addf %17, %19 : vector<8x128xf32>
    %21 = vector.extract_strided_slice %11 {offsets = [0, 128], sizes = [8, 128], strides = [1, 1]} : vector<8x256xf32> to vector<8x128xf32>
    %22 = arith.index_cast %16 : i32 to index
    %c128 = arith.constant 128 : index
    %23 = vector.load %arg7[%22, %c128] : memref<64x256xf32, #tpu.memory_space<vmem>>, vector<8x128xf32>
    %24 = arith.addf %21, %23 : vector<8x128xf32>
    %25 = vector.extract_strided_slice %20 {offsets = [0, 0], sizes = [8, 96], strides = [1, 1]} : vector<8x128xf32> to vector<8x96xf32>
    %26 = arith.negf %25 : vector<8x96xf32>
    %27 = math.exp %26 : vector<8x96xf32>
    %cst_13 = arith.constant 1.000000e+00 : f32
    %28 = vector.broadcast %cst_13 : f32 to vector<8x96xf32>
    %29 = arith.addf %28, %27 : vector<8x96xf32>
    %30 = arith.divf %28, %29 : vector<8x96xf32>
    %31 = vector.extract_strided_slice %20 {offsets = [0, 96], sizes = [8, 32], strides = [1, 1]} : vector<8x128xf32> to vector<8x32xf32>
    %32 = math.tanh %31 : vector<8x32xf32>
    %33 = vector.extract_strided_slice %30 {offsets = [0, 32], sizes = [8, 32], strides = [1, 1]} : vector<8x96xf32> to vector<8x32xf32>
    %34 = arith.mulf %33, %8 : vector<8x32xf32>
    %35 = vector.extract_strided_slice %30 {offsets = [0, 0], sizes = [8, 32], strides = [1, 1]} : vector<8x96xf32> to vector<8x32xf32>
    %36 = arith.mulf %35, %32 : vector<8x32xf32>
    %37 = arith.addf %34, %36 : vector<8x32xf32>
    %38 = vector.extract_strided_slice %30 {offsets = [0, 64], sizes = [8, 32], strides = [1, 1]} : vector<8x96xf32> to vector<8x32xf32>
    %39 = math.tanh %37 : vector<8x32xf32>
    %40 = arith.mulf %38, %39 : vector<8x32xf32>
    %41 = vector.extract_strided_slice %24 {offsets = [0, 0], sizes = [8, 96], strides = [1, 1]} : vector<8x128xf32> to vector<8x96xf32>
    %42 = arith.negf %41 : vector<8x96xf32>
    %43 = math.exp %42 : vector<8x96xf32>
    %cst_14 = arith.constant 1.000000e+00 : f32
    %44 = vector.broadcast %cst_14 : f32 to vector<8x96xf32>
    %45 = arith.addf %44, %43 : vector<8x96xf32>
    %46 = arith.divf %44, %45 : vector<8x96xf32>
    %47 = vector.extract_strided_slice %24 {offsets = [0, 96], sizes = [8, 32], strides = [1, 1]} : vector<8x128xf32> to vector<8x32xf32>
    %48 = math.tanh %47 : vector<8x32xf32>
    %49 = vector.extract_strided_slice %46 {offsets = [0, 32], sizes = [8, 32], strides = [1, 1]} : vector<8x96xf32> to vector<8x32xf32>
    %50 = arith.mulf %49, %8 : vector<8x32xf32>
    %51 = vector.extract_strided_slice %46 {offsets = [0, 0], sizes = [8, 32], strides = [1, 1]} : vector<8x96xf32> to vector<8x32xf32>
    %52 = arith.mulf %51, %48 : vector<8x32xf32>
    %53 = arith.addf %50, %52 : vector<8x32xf32>
    %54 = vector.extract_strided_slice %46 {offsets = [0, 64], sizes = [8, 32], strides = [1, 1]} : vector<8x96xf32> to vector<8x32xf32>
    %55 = math.tanh %53 : vector<8x32xf32>
    %56 = arith.mulf %54, %55 : vector<8x32xf32>
    %c0_i32_15 = arith.constant 0 : i32
    %57 = arith.cmpi eq, %c0_i32, %c0_i32_15 : i32
    %58 = arith.select %57, %40, %8 : vector<8x32xf32>
    %59 = arith.select %57, %56, %8 : vector<8x32xf32>
    %c1_i32 = arith.constant 1 : i32
    %60 = tpu.concatenate %40, %56 in 1 : vector<8x32xf32>, vector<8x32xf32> -> vector<8x64xf32>
    %61 = arith.truncf %60 : vector<8x64xf32> to vector<8x64xbf16>
    %cst_16 = arith.constant dense<0.000000e+00> : vector<8x256xf32>
    %62 = tpu.matmul %61, %7, %cst_16 {dimension_numbers = #tpu.dot_dimension_numbers<[1], [0], [0], [1], [0, 0, 1, 1], [], []>} : vector<8x64xbf16>, vector<64x256xbf16>, vector<8x256xf32> -> vector<8x256xf32>
    %c7_i32_17 = arith.constant 7 : i32
    %63 = arith.subi %c7_i32_17, %c1_i32 : i32
    %c8_i32_18 = arith.constant 8 : i32
    %64 = arith.muli %c1_i32, %c8_i32_18 : i32
    %65 = tpu.assume_multiple %64, 8 : i32
    %c8_i32_19 = arith.constant 8 : i32
    %66 = arith.muli %63, %c8_i32_19 : i32
    %67 = tpu.assume_multiple %66, 8 : i32
    %68 = vector.extract_strided_slice %62 {offsets = [0, 0], sizes = [8, 128], strides = [1, 1]} : vector<8x256xf32> to vector<8x128xf32>
    %69 = arith.index_cast %65 : i32 to index
    %c0_20 = arith.constant 0 : index
    %70 = vector.load %arg7[%69, %c0_20] : memref<64x256xf32, #tpu.memory_space<vmem>>, vector<8x128xf32>
    %71 = arith.addf %68, %70 : vector<8x128xf32>
    %72 = vector.extract_strided_slice %62 {offsets = [0, 128], sizes = [8, 128], strides = [1, 1]} : vector<8x256xf32> to vector<8x128xf32>
    %73 = arith.index_cast %67 : i32 to index
    %c128_21 = arith.constant 128 : index
    %74 = vector.load %arg7[%73, %c128_21] : memref<64x256xf32, #tpu.memory_space<vmem>>, vector<8x128xf32>
    %75 = arith.addf %72, %74 : vector<8x128xf32>
    %76 = vector.extract_strided_slice %71 {offsets = [0, 0], sizes = [8, 96], strides = [1, 1]} : vector<8x128xf32> to vector<8x96xf32>
    %77 = arith.negf %76 : vector<8x96xf32>
    %78 = math.exp %77 : vector<8x96xf32>
    %cst_22 = arith.constant 1.000000e+00 : f32
    %79 = vector.broadcast %cst_22 : f32 to vector<8x96xf32>
    %80 = arith.addf %79, %78 : vector<8x96xf32>
    %81 = arith.divf %79, %80 : vector<8x96xf32>
    %82 = vector.extract_strided_slice %71 {offsets = [0, 96], sizes = [8, 32], strides = [1, 1]} : vector<8x128xf32> to vector<8x32xf32>
    %83 = math.tanh %82 : vector<8x32xf32>
    %84 = vector.extract_strided_slice %81 {offsets = [0, 32], sizes = [8, 32], strides = [1, 1]} : vector<8x96xf32> to vector<8x32xf32>
    %85 = arith.mulf %84, %37 : vector<8x32xf32>
    %86 = vector.extract_strided_slice %81 {offsets = [0, 0], sizes = [8, 32], strides = [1, 1]} : vector<8x96xf32> to vector<8x32xf32>
    %87 = arith.mulf %86, %83 : vector<8x32xf32>
    %88 = arith.addf %85, %87 : vector<8x32xf32>
    %89 = vector.extract_strided_slice %81 {offsets = [0, 64], sizes = [8, 32], strides = [1, 1]} : vector<8x96xf32> to vector<8x32xf32>
    %90 = math.tanh %88 : vector<8x32xf32>
    %91 = arith.mulf %89, %90 : vector<8x32xf32>
    %92 = vector.extract_strided_slice %75 {offsets = [0, 0], sizes = [8, 96], strides = [1, 1]} : vector<8x128xf32> to vector<8x96xf32>
    %93 = arith.negf %92 : vector<8x96xf32>
    %94 = math.exp %93 : vector<8x96xf32>
    %cst_23 = arith.constant 1.000000e+00 : f32
    %95 = vector.broadcast %cst_23 : f32 to vector<8x96xf32>
    %96 = arith.addf %95, %94 : vector<8x96xf32>
    %97 = arith.divf %95, %96 : vector<8x96xf32>
    %98 = vector.extract_strided_slice %75 {offsets = [0, 96], sizes = [8, 32], strides = [1, 1]} : vector<8x128xf32> to vector<8x32xf32>
    %99 = math.tanh %98 : vector<8x32xf32>
    %100 = vector.extract_strided_slice %97 {offsets = [0, 32], sizes = [8, 32], strides = [1, 1]} : vector<8x96xf32> to vector<8x32xf32>
    %101 = arith.mulf %100, %53 : vector<8x32xf32>
    %102 = vector.extract_strided_slice %97 {offsets = [0, 0], sizes = [8, 32], strides = [1, 1]} : vector<8x96xf32> to vector<8x32xf32>
    %103 = arith.mulf %102, %99 : vector<8x32xf32>
    %104 = arith.addf %101, %103 : vector<8x32xf32>
    %105 = vector.extract_strided_slice %97 {offsets = [0, 64], sizes = [8, 32], strides = [1, 1]} : vector<8x96xf32> to vector<8x32xf32>
    %106 = math.tanh %104 : vector<8x32xf32>
    %107 = arith.mulf %105, %106 : vector<8x32xf32>
    %c0_i32_24 = arith.constant 0 : i32
    %108 = arith.cmpi eq, %c1_i32, %c0_i32_24 : i32
    %109 = arith.select %108, %91, %58 : vector<8x32xf32>
    %110 = arith.select %108, %107, %59 : vector<8x32xf32>
    %c2_i32 = arith.constant 2 : i32
    %111 = tpu.concatenate %91, %107 in 1 : vector<8x32xf32>, vector<8x32xf32> -> vector<8x64xf32>
    %112 = arith.truncf %111 : vector<8x64xf32> to vector<8x64xbf16>
    %cst_25 = arith.constant dense<0.000000e+00> : vector<8x256xf32>
    %113 = tpu.matmul %112, %7, %cst_25 {dimension_numbers = #tpu.dot_dimension_numbers<[1], [0], [0], [1], [0, 0, 1, 1], [], []>} : vector<8x64xbf16>, vector<64x256xbf16>, vector<8x256xf32> -> vector<8x256xf32>
    %c7_i32_26 = arith.constant 7 : i32
    %114 = arith.subi %c7_i32_26, %c2_i32 : i32
    %c8_i32_27 = arith.constant 8 : i32
    %115 = arith.muli %c2_i32, %c8_i32_27 : i32
    %116 = tpu.assume_multiple %115, 8 : i32
    %c8_i32_28 = arith.constant 8 : i32
    %117 = arith.muli %114, %c8_i32_28 : i32
    %118 = tpu.assume_multiple %117, 8 : i32
    %119 = vector.extract_strided_slice %113 {offsets = [0, 0], sizes = [8, 128], strides = [1, 1]} : vector<8x256xf32> to vector<8x128xf32>
    %120 = arith.index_cast %116 : i32 to index
    %c0_29 = arith.constant 0 : index
    %121 = vector.load %arg7[%120, %c0_29] : memref<64x256xf32, #tpu.memory_space<vmem>>, vector<8x128xf32>
    %122 = arith.addf %119, %121 : vector<8x128xf32>
    %123 = vector.extract_strided_slice %113 {offsets = [0, 128], sizes = [8, 128], strides = [1, 1]} : vector<8x256xf32> to vector<8x128xf32>
    %124 = arith.index_cast %118 : i32 to index
    %c128_30 = arith.constant 128 : index
    %125 = vector.load %arg7[%124, %c128_30] : memref<64x256xf32, #tpu.memory_space<vmem>>, vector<8x128xf32>
    %126 = arith.addf %123, %125 : vector<8x128xf32>
    %127 = vector.extract_strided_slice %122 {offsets = [0, 0], sizes = [8, 96], strides = [1, 1]} : vector<8x128xf32> to vector<8x96xf32>
    %128 = arith.negf %127 : vector<8x96xf32>
    %129 = math.exp %128 : vector<8x96xf32>
    %cst_31 = arith.constant 1.000000e+00 : f32
    %130 = vector.broadcast %cst_31 : f32 to vector<8x96xf32>
    %131 = arith.addf %130, %129 : vector<8x96xf32>
    %132 = arith.divf %130, %131 : vector<8x96xf32>
    %133 = vector.extract_strided_slice %122 {offsets = [0, 96], sizes = [8, 32], strides = [1, 1]} : vector<8x128xf32> to vector<8x32xf32>
    %134 = math.tanh %133 : vector<8x32xf32>
    %135 = vector.extract_strided_slice %132 {offsets = [0, 32], sizes = [8, 32], strides = [1, 1]} : vector<8x96xf32> to vector<8x32xf32>
    %136 = arith.mulf %135, %88 : vector<8x32xf32>
    %137 = vector.extract_strided_slice %132 {offsets = [0, 0], sizes = [8, 32], strides = [1, 1]} : vector<8x96xf32> to vector<8x32xf32>
    %138 = arith.mulf %137, %134 : vector<8x32xf32>
    %139 = arith.addf %136, %138 : vector<8x32xf32>
    %140 = vector.extract_strided_slice %132 {offsets = [0, 64], sizes = [8, 32], strides = [1, 1]} : vector<8x96xf32> to vector<8x32xf32>
    %141 = math.tanh %139 : vector<8x32xf32>
    %142 = arith.mulf %140, %141 : vector<8x32xf32>
    %143 = vector.extract_strided_slice %126 {offsets = [0, 0], sizes = [8, 96], strides = [1, 1]} : vector<8x128xf32> to vector<8x96xf32>
    %144 = arith.negf %143 : vector<8x96xf32>
    %145 = math.exp %144 : vector<8x96xf32>
    %cst_32 = arith.constant 1.000000e+00 : f32
    %146 = vector.broadcast %cst_32 : f32 to vector<8x96xf32>
    %147 = arith.addf %146, %145 : vector<8x96xf32>
    %148 = arith.divf %146, %147 : vector<8x96xf32>
    %149 = vector.extract_strided_slice %126 {offsets = [0, 96], sizes = [8, 32], strides = [1, 1]} : vector<8x128xf32> to vector<8x32xf32>
    %150 = math.tanh %149 : vector<8x32xf32>
    %151 = vector.extract_strided_slice %148 {offsets = [0, 32], sizes = [8, 32], strides = [1, 1]} : vector<8x96xf32> to vector<8x32xf32>
    %152 = arith.mulf %151, %104 : vector<8x32xf32>
    %153 = vector.extract_strided_slice %148 {offsets = [0, 0], sizes = [8, 32], strides = [1, 1]} : vector<8x96xf32> to vector<8x32xf32>
    %154 = arith.mulf %153, %150 : vector<8x32xf32>
    %155 = arith.addf %152, %154 : vector<8x32xf32>
    %156 = vector.extract_strided_slice %148 {offsets = [0, 64], sizes = [8, 32], strides = [1, 1]} : vector<8x96xf32> to vector<8x32xf32>
    %157 = math.tanh %155 : vector<8x32xf32>
    %158 = arith.mulf %156, %157 : vector<8x32xf32>
    %c0_i32_33 = arith.constant 0 : i32
    %159 = arith.cmpi eq, %c2_i32, %c0_i32_33 : i32
    %160 = arith.select %159, %142, %109 : vector<8x32xf32>
    %161 = arith.select %159, %158, %110 : vector<8x32xf32>
    %c3_i32 = arith.constant 3 : i32
    %162 = tpu.concatenate %142, %158 in 1 : vector<8x32xf32>, vector<8x32xf32> -> vector<8x64xf32>
    %163 = arith.truncf %162 : vector<8x64xf32> to vector<8x64xbf16>
    %cst_34 = arith.constant dense<0.000000e+00> : vector<8x256xf32>
    %164 = tpu.matmul %163, %7, %cst_34 {dimension_numbers = #tpu.dot_dimension_numbers<[1], [0], [0], [1], [0, 0, 1, 1], [], []>} : vector<8x64xbf16>, vector<64x256xbf16>, vector<8x256xf32> -> vector<8x256xf32>
    %c7_i32_35 = arith.constant 7 : i32
    %165 = arith.subi %c7_i32_35, %c3_i32 : i32
    %c8_i32_36 = arith.constant 8 : i32
    %166 = arith.muli %c3_i32, %c8_i32_36 : i32
    %167 = tpu.assume_multiple %166, 8 : i32
    %c8_i32_37 = arith.constant 8 : i32
    %168 = arith.muli %165, %c8_i32_37 : i32
    %169 = tpu.assume_multiple %168, 8 : i32
    %170 = vector.extract_strided_slice %164 {offsets = [0, 0], sizes = [8, 128], strides = [1, 1]} : vector<8x256xf32> to vector<8x128xf32>
    %171 = arith.index_cast %167 : i32 to index
    %c0_38 = arith.constant 0 : index
    %172 = vector.load %arg7[%171, %c0_38] : memref<64x256xf32, #tpu.memory_space<vmem>>, vector<8x128xf32>
    %173 = arith.addf %170, %172 : vector<8x128xf32>
    %174 = vector.extract_strided_slice %164 {offsets = [0, 128], sizes = [8, 128], strides = [1, 1]} : vector<8x256xf32> to vector<8x128xf32>
    %175 = arith.index_cast %169 : i32 to index
    %c128_39 = arith.constant 128 : index
    %176 = vector.load %arg7[%175, %c128_39] : memref<64x256xf32, #tpu.memory_space<vmem>>, vector<8x128xf32>
    %177 = arith.addf %174, %176 : vector<8x128xf32>
    %178 = vector.extract_strided_slice %173 {offsets = [0, 0], sizes = [8, 96], strides = [1, 1]} : vector<8x128xf32> to vector<8x96xf32>
    %179 = arith.negf %178 : vector<8x96xf32>
    %180 = math.exp %179 : vector<8x96xf32>
    %cst_40 = arith.constant 1.000000e+00 : f32
    %181 = vector.broadcast %cst_40 : f32 to vector<8x96xf32>
    %182 = arith.addf %181, %180 : vector<8x96xf32>
    %183 = arith.divf %181, %182 : vector<8x96xf32>
    %184 = vector.extract_strided_slice %173 {offsets = [0, 96], sizes = [8, 32], strides = [1, 1]} : vector<8x128xf32> to vector<8x32xf32>
    %185 = math.tanh %184 : vector<8x32xf32>
    %186 = vector.extract_strided_slice %183 {offsets = [0, 32], sizes = [8, 32], strides = [1, 1]} : vector<8x96xf32> to vector<8x32xf32>
    %187 = arith.mulf %186, %139 : vector<8x32xf32>
    %188 = vector.extract_strided_slice %183 {offsets = [0, 0], sizes = [8, 32], strides = [1, 1]} : vector<8x96xf32> to vector<8x32xf32>
    %189 = arith.mulf %188, %185 : vector<8x32xf32>
    %190 = arith.addf %187, %189 : vector<8x32xf32>
    %191 = vector.extract_strided_slice %183 {offsets = [0, 64], sizes = [8, 32], strides = [1, 1]} : vector<8x96xf32> to vector<8x32xf32>
    %192 = math.tanh %190 : vector<8x32xf32>
    %193 = arith.mulf %191, %192 : vector<8x32xf32>
    %194 = vector.extract_strided_slice %177 {offsets = [0, 0], sizes = [8, 96], strides = [1, 1]} : vector<8x128xf32> to vector<8x96xf32>
    %195 = arith.negf %194 : vector<8x96xf32>
    %196 = math.exp %195 : vector<8x96xf32>
    %cst_41 = arith.constant 1.000000e+00 : f32
    %197 = vector.broadcast %cst_41 : f32 to vector<8x96xf32>
    %198 = arith.addf %197, %196 : vector<8x96xf32>
    %199 = arith.divf %197, %198 : vector<8x96xf32>
    %200 = vector.extract_strided_slice %177 {offsets = [0, 96], sizes = [8, 32], strides = [1, 1]} : vector<8x128xf32> to vector<8x32xf32>
    %201 = math.tanh %200 : vector<8x32xf32>
    %202 = vector.extract_strided_slice %199 {offsets = [0, 32], sizes = [8, 32], strides = [1, 1]} : vector<8x96xf32> to vector<8x32xf32>
    %203 = arith.mulf %202, %155 : vector<8x32xf32>
    %204 = vector.extract_strided_slice %199 {offsets = [0, 0], sizes = [8, 32], strides = [1, 1]} : vector<8x96xf32> to vector<8x32xf32>
    %205 = arith.mulf %204, %201 : vector<8x32xf32>
    %206 = arith.addf %203, %205 : vector<8x32xf32>
    %207 = vector.extract_strided_slice %199 {offsets = [0, 64], sizes = [8, 32], strides = [1, 1]} : vector<8x96xf32> to vector<8x32xf32>
    %208 = math.tanh %206 : vector<8x32xf32>
    %209 = arith.mulf %207, %208 : vector<8x32xf32>
    %c0_i32_42 = arith.constant 0 : i32
    %210 = arith.cmpi eq, %c3_i32, %c0_i32_42 : i32
    %211 = arith.select %210, %193, %160 : vector<8x32xf32>
    %212 = arith.select %210, %209, %161 : vector<8x32xf32>
    %c4_i32 = arith.constant 4 : i32
    %213 = tpu.concatenate %193, %209 in 1 : vector<8x32xf32>, vector<8x32xf32> -> vector<8x64xf32>
    %214 = arith.truncf %213 : vector<8x64xf32> to vector<8x64xbf16>
    %cst_43 = arith.constant dense<0.000000e+00> : vector<8x256xf32>
    %215 = tpu.matmul %214, %7, %cst_43 {dimension_numbers = #tpu.dot_dimension_numbers<[1], [0], [0], [1], [0, 0, 1, 1], [], []>} : vector<8x64xbf16>, vector<64x256xbf16>, vector<8x256xf32> -> vector<8x256xf32>
    %c7_i32_44 = arith.constant 7 : i32
    %216 = arith.subi %c7_i32_44, %c4_i32 : i32
    %c8_i32_45 = arith.constant 8 : i32
    %217 = arith.muli %c4_i32, %c8_i32_45 : i32
    %218 = tpu.assume_multiple %217, 8 : i32
    %c8_i32_46 = arith.constant 8 : i32
    %219 = arith.muli %216, %c8_i32_46 : i32
    %220 = tpu.assume_multiple %219, 8 : i32
    %221 = vector.extract_strided_slice %215 {offsets = [0, 0], sizes = [8, 128], strides = [1, 1]} : vector<8x256xf32> to vector<8x128xf32>
    %222 = arith.index_cast %218 : i32 to index
    %c0_47 = arith.constant 0 : index
    %223 = vector.load %arg7[%222, %c0_47] : memref<64x256xf32, #tpu.memory_space<vmem>>, vector<8x128xf32>
    %224 = arith.addf %221, %223 : vector<8x128xf32>
    %225 = vector.extract_strided_slice %215 {offsets = [0, 128], sizes = [8, 128], strides = [1, 1]} : vector<8x256xf32> to vector<8x128xf32>
    %226 = arith.index_cast %220 : i32 to index
    %c128_48 = arith.constant 128 : index
    %227 = vector.load %arg7[%226, %c128_48] : memref<64x256xf32, #tpu.memory_space<vmem>>, vector<8x128xf32>
    %228 = arith.addf %225, %227 : vector<8x128xf32>
    %229 = vector.extract_strided_slice %224 {offsets = [0, 0], sizes = [8, 96], strides = [1, 1]} : vector<8x128xf32> to vector<8x96xf32>
    %230 = arith.negf %229 : vector<8x96xf32>
    %231 = math.exp %230 : vector<8x96xf32>
    %cst_49 = arith.constant 1.000000e+00 : f32
    %232 = vector.broadcast %cst_49 : f32 to vector<8x96xf32>
    %233 = arith.addf %232, %231 : vector<8x96xf32>
    %234 = arith.divf %232, %233 : vector<8x96xf32>
    %235 = vector.extract_strided_slice %224 {offsets = [0, 96], sizes = [8, 32], strides = [1, 1]} : vector<8x128xf32> to vector<8x32xf32>
    %236 = math.tanh %235 : vector<8x32xf32>
    %237 = vector.extract_strided_slice %234 {offsets = [0, 32], sizes = [8, 32], strides = [1, 1]} : vector<8x96xf32> to vector<8x32xf32>
    %238 = arith.mulf %237, %190 : vector<8x32xf32>
    %239 = vector.extract_strided_slice %234 {offsets = [0, 0], sizes = [8, 32], strides = [1, 1]} : vector<8x96xf32> to vector<8x32xf32>
    %240 = arith.mulf %239, %236 : vector<8x32xf32>
    %241 = arith.addf %238, %240 : vector<8x32xf32>
    %242 = vector.extract_strided_slice %234 {offsets = [0, 64], sizes = [8, 32], strides = [1, 1]} : vector<8x96xf32> to vector<8x32xf32>
    %243 = math.tanh %241 : vector<8x32xf32>
    %244 = arith.mulf %242, %243 : vector<8x32xf32>
    %245 = vector.extract_strided_slice %228 {offsets = [0, 0], sizes = [8, 96], strides = [1, 1]} : vector<8x128xf32> to vector<8x96xf32>
    %246 = arith.negf %245 : vector<8x96xf32>
    %247 = math.exp %246 : vector<8x96xf32>
    %cst_50 = arith.constant 1.000000e+00 : f32
    %248 = vector.broadcast %cst_50 : f32 to vector<8x96xf32>
    %249 = arith.addf %248, %247 : vector<8x96xf32>
    %250 = arith.divf %248, %249 : vector<8x96xf32>
    %251 = vector.extract_strided_slice %228 {offsets = [0, 96], sizes = [8, 32], strides = [1, 1]} : vector<8x128xf32> to vector<8x32xf32>
    %252 = math.tanh %251 : vector<8x32xf32>
    %253 = vector.extract_strided_slice %250 {offsets = [0, 32], sizes = [8, 32], strides = [1, 1]} : vector<8x96xf32> to vector<8x32xf32>
    %254 = arith.mulf %253, %206 : vector<8x32xf32>
    %255 = vector.extract_strided_slice %250 {offsets = [0, 0], sizes = [8, 32], strides = [1, 1]} : vector<8x96xf32> to vector<8x32xf32>
    %256 = arith.mulf %255, %252 : vector<8x32xf32>
    %257 = arith.addf %254, %256 : vector<8x32xf32>
    %258 = vector.extract_strided_slice %250 {offsets = [0, 64], sizes = [8, 32], strides = [1, 1]} : vector<8x96xf32> to vector<8x32xf32>
    %259 = math.tanh %257 : vector<8x32xf32>
    %260 = arith.mulf %258, %259 : vector<8x32xf32>
    %c0_i32_51 = arith.constant 0 : i32
    %261 = arith.cmpi eq, %c4_i32, %c0_i32_51 : i32
    %262 = arith.select %261, %244, %211 : vector<8x32xf32>
    %263 = arith.select %261, %260, %212 : vector<8x32xf32>
    %c5_i32 = arith.constant 5 : i32
    %264 = tpu.concatenate %244, %260 in 1 : vector<8x32xf32>, vector<8x32xf32> -> vector<8x64xf32>
    %265 = arith.truncf %264 : vector<8x64xf32> to vector<8x64xbf16>
    %cst_52 = arith.constant dense<0.000000e+00> : vector<8x256xf32>
    %266 = tpu.matmul %265, %7, %cst_52 {dimension_numbers = #tpu.dot_dimension_numbers<[1], [0], [0], [1], [0, 0, 1, 1], [], []>} : vector<8x64xbf16>, vector<64x256xbf16>, vector<8x256xf32> -> vector<8x256xf32>
    %c7_i32_53 = arith.constant 7 : i32
    %267 = arith.subi %c7_i32_53, %c5_i32 : i32
    %c8_i32_54 = arith.constant 8 : i32
    %268 = arith.muli %c5_i32, %c8_i32_54 : i32
    %269 = tpu.assume_multiple %268, 8 : i32
    %c8_i32_55 = arith.constant 8 : i32
    %270 = arith.muli %267, %c8_i32_55 : i32
    %271 = tpu.assume_multiple %270, 8 : i32
    %272 = vector.extract_strided_slice %266 {offsets = [0, 0], sizes = [8, 128], strides = [1, 1]} : vector<8x256xf32> to vector<8x128xf32>
    %273 = arith.index_cast %269 : i32 to index
    %c0_56 = arith.constant 0 : index
    %274 = vector.load %arg7[%273, %c0_56] : memref<64x256xf32, #tpu.memory_space<vmem>>, vector<8x128xf32>
    %275 = arith.addf %272, %274 : vector<8x128xf32>
    %276 = vector.extract_strided_slice %266 {offsets = [0, 128], sizes = [8, 128], strides = [1, 1]} : vector<8x256xf32> to vector<8x128xf32>
    %277 = arith.index_cast %271 : i32 to index
    %c128_57 = arith.constant 128 : index
    %278 = vector.load %arg7[%277, %c128_57] : memref<64x256xf32, #tpu.memory_space<vmem>>, vector<8x128xf32>
    %279 = arith.addf %276, %278 : vector<8x128xf32>
    %280 = vector.extract_strided_slice %275 {offsets = [0, 0], sizes = [8, 96], strides = [1, 1]} : vector<8x128xf32> to vector<8x96xf32>
    %281 = arith.negf %280 : vector<8x96xf32>
    %282 = math.exp %281 : vector<8x96xf32>
    %cst_58 = arith.constant 1.000000e+00 : f32
    %283 = vector.broadcast %cst_58 : f32 to vector<8x96xf32>
    %284 = arith.addf %283, %282 : vector<8x96xf32>
    %285 = arith.divf %283, %284 : vector<8x96xf32>
    %286 = vector.extract_strided_slice %275 {offsets = [0, 96], sizes = [8, 32], strides = [1, 1]} : vector<8x128xf32> to vector<8x32xf32>
    %287 = math.tanh %286 : vector<8x32xf32>
    %288 = vector.extract_strided_slice %285 {offsets = [0, 32], sizes = [8, 32], strides = [1, 1]} : vector<8x96xf32> to vector<8x32xf32>
    %289 = arith.mulf %288, %241 : vector<8x32xf32>
    %290 = vector.extract_strided_slice %285 {offsets = [0, 0], sizes = [8, 32], strides = [1, 1]} : vector<8x96xf32> to vector<8x32xf32>
    %291 = arith.mulf %290, %287 : vector<8x32xf32>
    %292 = arith.addf %289, %291 : vector<8x32xf32>
    %293 = vector.extract_strided_slice %285 {offsets = [0, 64], sizes = [8, 32], strides = [1, 1]} : vector<8x96xf32> to vector<8x32xf32>
    %294 = math.tanh %292 : vector<8x32xf32>
    %295 = arith.mulf %293, %294 : vector<8x32xf32>
    %296 = vector.extract_strided_slice %279 {offsets = [0, 0], sizes = [8, 96], strides = [1, 1]} : vector<8x128xf32> to vector<8x96xf32>
    %297 = arith.negf %296 : vector<8x96xf32>
    %298 = math.exp %297 : vector<8x96xf32>
    %cst_59 = arith.constant 1.000000e+00 : f32
    %299 = vector.broadcast %cst_59 : f32 to vector<8x96xf32>
    %300 = arith.addf %299, %298 : vector<8x96xf32>
    %301 = arith.divf %299, %300 : vector<8x96xf32>
    %302 = vector.extract_strided_slice %279 {offsets = [0, 96], sizes = [8, 32], strides = [1, 1]} : vector<8x128xf32> to vector<8x32xf32>
    %303 = math.tanh %302 : vector<8x32xf32>
    %304 = vector.extract_strided_slice %301 {offsets = [0, 32], sizes = [8, 32], strides = [1, 1]} : vector<8x96xf32> to vector<8x32xf32>
    %305 = arith.mulf %304, %257 : vector<8x32xf32>
    %306 = vector.extract_strided_slice %301 {offsets = [0, 0], sizes = [8, 32], strides = [1, 1]} : vector<8x96xf32> to vector<8x32xf32>
    %307 = arith.mulf %306, %303 : vector<8x32xf32>
    %308 = arith.addf %305, %307 : vector<8x32xf32>
    %309 = vector.extract_strided_slice %301 {offsets = [0, 64], sizes = [8, 32], strides = [1, 1]} : vector<8x96xf32> to vector<8x32xf32>
    %310 = math.tanh %308 : vector<8x32xf32>
    %311 = arith.mulf %309, %310 : vector<8x32xf32>
    %c0_i32_60 = arith.constant 0 : i32
    %312 = arith.cmpi eq, %c5_i32, %c0_i32_60 : i32
    %313 = arith.select %312, %295, %262 : vector<8x32xf32>
    %314 = arith.select %312, %311, %263 : vector<8x32xf32>
    %c6_i32 = arith.constant 6 : i32
    %315 = tpu.concatenate %295, %311 in 1 : vector<8x32xf32>, vector<8x32xf32> -> vector<8x64xf32>
    %316 = arith.truncf %315 : vector<8x64xf32> to vector<8x64xbf16>
    %cst_61 = arith.constant dense<0.000000e+00> : vector<8x256xf32>
    %317 = tpu.matmul %316, %7, %cst_61 {dimension_numbers = #tpu.dot_dimension_numbers<[1], [0], [0], [1], [0, 0, 1, 1], [], []>} : vector<8x64xbf16>, vector<64x256xbf16>, vector<8x256xf32> -> vector<8x256xf32>
    %c7_i32_62 = arith.constant 7 : i32
    %318 = arith.subi %c7_i32_62, %c6_i32 : i32
    %c8_i32_63 = arith.constant 8 : i32
    %319 = arith.muli %c6_i32, %c8_i32_63 : i32
    %320 = tpu.assume_multiple %319, 8 : i32
    %c8_i32_64 = arith.constant 8 : i32
    %321 = arith.muli %318, %c8_i32_64 : i32
    %322 = tpu.assume_multiple %321, 8 : i32
    %323 = vector.extract_strided_slice %317 {offsets = [0, 0], sizes = [8, 128], strides = [1, 1]} : vector<8x256xf32> to vector<8x128xf32>
    %324 = arith.index_cast %320 : i32 to index
    %c0_65 = arith.constant 0 : index
    %325 = vector.load %arg7[%324, %c0_65] : memref<64x256xf32, #tpu.memory_space<vmem>>, vector<8x128xf32>
    %326 = arith.addf %323, %325 : vector<8x128xf32>
    %327 = vector.extract_strided_slice %317 {offsets = [0, 128], sizes = [8, 128], strides = [1, 1]} : vector<8x256xf32> to vector<8x128xf32>
    %328 = arith.index_cast %322 : i32 to index
    %c128_66 = arith.constant 128 : index
    %329 = vector.load %arg7[%328, %c128_66] : memref<64x256xf32, #tpu.memory_space<vmem>>, vector<8x128xf32>
    %330 = arith.addf %327, %329 : vector<8x128xf32>
    %331 = vector.extract_strided_slice %326 {offsets = [0, 0], sizes = [8, 96], strides = [1, 1]} : vector<8x128xf32> to vector<8x96xf32>
    %332 = arith.negf %331 : vector<8x96xf32>
    %333 = math.exp %332 : vector<8x96xf32>
    %cst_67 = arith.constant 1.000000e+00 : f32
    %334 = vector.broadcast %cst_67 : f32 to vector<8x96xf32>
    %335 = arith.addf %334, %333 : vector<8x96xf32>
    %336 = arith.divf %334, %335 : vector<8x96xf32>
    %337 = vector.extract_strided_slice %326 {offsets = [0, 96], sizes = [8, 32], strides = [1, 1]} : vector<8x128xf32> to vector<8x32xf32>
    %338 = math.tanh %337 : vector<8x32xf32>
    %339 = vector.extract_strided_slice %336 {offsets = [0, 32], sizes = [8, 32], strides = [1, 1]} : vector<8x96xf32> to vector<8x32xf32>
    %340 = arith.mulf %339, %292 : vector<8x32xf32>
    %341 = vector.extract_strided_slice %336 {offsets = [0, 0], sizes = [8, 32], strides = [1, 1]} : vector<8x96xf32> to vector<8x32xf32>
    %342 = arith.mulf %341, %338 : vector<8x32xf32>
    %343 = arith.addf %340, %342 : vector<8x32xf32>
    %344 = vector.extract_strided_slice %336 {offsets = [0, 64], sizes = [8, 32], strides = [1, 1]} : vector<8x96xf32> to vector<8x32xf32>
    %345 = math.tanh %343 : vector<8x32xf32>
    %346 = arith.mulf %344, %345 : vector<8x32xf32>
    %347 = vector.extract_strided_slice %330 {offsets = [0, 0], sizes = [8, 96], strides = [1, 1]} : vector<8x128xf32> to vector<8x96xf32>
    %348 = arith.negf %347 : vector<8x96xf32>
    %349 = math.exp %348 : vector<8x96xf32>
    %cst_68 = arith.constant 1.000000e+00 : f32
    %350 = vector.broadcast %cst_68 : f32 to vector<8x96xf32>
    %351 = arith.addf %350, %349 : vector<8x96xf32>
    %352 = arith.divf %350, %351 : vector<8x96xf32>
    %353 = vector.extract_strided_slice %330 {offsets = [0, 96], sizes = [8, 32], strides = [1, 1]} : vector<8x128xf32> to vector<8x32xf32>
    %354 = math.tanh %353 : vector<8x32xf32>
    %355 = vector.extract_strided_slice %352 {offsets = [0, 32], sizes = [8, 32], strides = [1, 1]} : vector<8x96xf32> to vector<8x32xf32>
    %356 = arith.mulf %355, %308 : vector<8x32xf32>
    %357 = vector.extract_strided_slice %352 {offsets = [0, 0], sizes = [8, 32], strides = [1, 1]} : vector<8x96xf32> to vector<8x32xf32>
    %358 = arith.mulf %357, %354 : vector<8x32xf32>
    %359 = arith.addf %356, %358 : vector<8x32xf32>
    %360 = vector.extract_strided_slice %352 {offsets = [0, 64], sizes = [8, 32], strides = [1, 1]} : vector<8x96xf32> to vector<8x32xf32>
    %361 = math.tanh %359 : vector<8x32xf32>
    %362 = arith.mulf %360, %361 : vector<8x32xf32>
    %c0_i32_69 = arith.constant 0 : i32
    %363 = arith.cmpi eq, %c6_i32, %c0_i32_69 : i32
    %364 = arith.select %363, %346, %313 : vector<8x32xf32>
    %365 = arith.select %363, %362, %314 : vector<8x32xf32>
    %c7_i32_70 = arith.constant 7 : i32
    %366 = tpu.concatenate %346, %362 in 1 : vector<8x32xf32>, vector<8x32xf32> -> vector<8x64xf32>
    %367 = arith.truncf %366 : vector<8x64xf32> to vector<8x64xbf16>
    %cst_71 = arith.constant dense<0.000000e+00> : vector<8x256xf32>
    %368 = tpu.matmul %367, %7, %cst_71 {dimension_numbers = #tpu.dot_dimension_numbers<[1], [0], [0], [1], [0, 0, 1, 1], [], []>} : vector<8x64xbf16>, vector<64x256xbf16>, vector<8x256xf32> -> vector<8x256xf32>
    %c7_i32_72 = arith.constant 7 : i32
    %369 = arith.subi %c7_i32_72, %c7_i32_70 : i32
    %c8_i32_73 = arith.constant 8 : i32
    %370 = arith.muli %c7_i32_70, %c8_i32_73 : i32
    %371 = tpu.assume_multiple %370, 8 : i32
    %c8_i32_74 = arith.constant 8 : i32
    %372 = arith.muli %369, %c8_i32_74 : i32
    %373 = tpu.assume_multiple %372, 8 : i32
    %374 = vector.extract_strided_slice %368 {offsets = [0, 0], sizes = [8, 128], strides = [1, 1]} : vector<8x256xf32> to vector<8x128xf32>
    %375 = arith.index_cast %371 : i32 to index
    %c0_75 = arith.constant 0 : index
    %376 = vector.load %arg7[%375, %c0_75] : memref<64x256xf32, #tpu.memory_space<vmem>>, vector<8x128xf32>
    %377 = arith.addf %374, %376 : vector<8x128xf32>
    %378 = vector.extract_strided_slice %368 {offsets = [0, 128], sizes = [8, 128], strides = [1, 1]} : vector<8x256xf32> to vector<8x128xf32>
    %379 = arith.index_cast %373 : i32 to index
    %c128_76 = arith.constant 128 : index
    %380 = vector.load %arg7[%379, %c128_76] : memref<64x256xf32, #tpu.memory_space<vmem>>, vector<8x128xf32>
    %381 = arith.addf %378, %380 : vector<8x128xf32>
    %382 = vector.extract_strided_slice %377 {offsets = [0, 0], sizes = [8, 96], strides = [1, 1]} : vector<8x128xf32> to vector<8x96xf32>
    %383 = arith.negf %382 : vector<8x96xf32>
    %384 = math.exp %383 : vector<8x96xf32>
    %cst_77 = arith.constant 1.000000e+00 : f32
    %385 = vector.broadcast %cst_77 : f32 to vector<8x96xf32>
    %386 = arith.addf %385, %384 : vector<8x96xf32>
    %387 = arith.divf %385, %386 : vector<8x96xf32>
    %388 = vector.extract_strided_slice %377 {offsets = [0, 96], sizes = [8, 32], strides = [1, 1]} : vector<8x128xf32> to vector<8x32xf32>
    %389 = math.tanh %388 : vector<8x32xf32>
    %390 = vector.extract_strided_slice %387 {offsets = [0, 32], sizes = [8, 32], strides = [1, 1]} : vector<8x96xf32> to vector<8x32xf32>
    %391 = arith.mulf %390, %343 : vector<8x32xf32>
    %392 = vector.extract_strided_slice %387 {offsets = [0, 0], sizes = [8, 32], strides = [1, 1]} : vector<8x96xf32> to vector<8x32xf32>
    %393 = arith.mulf %392, %389 : vector<8x32xf32>
    %394 = arith.addf %391, %393 : vector<8x32xf32>
    %395 = vector.extract_strided_slice %387 {offsets = [0, 64], sizes = [8, 32], strides = [1, 1]} : vector<8x96xf32> to vector<8x32xf32>
    %396 = math.tanh %394 : vector<8x32xf32>
    %397 = arith.mulf %395, %396 : vector<8x32xf32>
    %398 = vector.extract_strided_slice %381 {offsets = [0, 0], sizes = [8, 96], strides = [1, 1]} : vector<8x128xf32> to vector<8x96xf32>
    %399 = arith.negf %398 : vector<8x96xf32>
    %400 = math.exp %399 : vector<8x96xf32>
    %cst_78 = arith.constant 1.000000e+00 : f32
    %401 = vector.broadcast %cst_78 : f32 to vector<8x96xf32>
    %402 = arith.addf %401, %400 : vector<8x96xf32>
    %403 = arith.divf %401, %402 : vector<8x96xf32>
    %404 = vector.extract_strided_slice %381 {offsets = [0, 96], sizes = [8, 32], strides = [1, 1]} : vector<8x128xf32> to vector<8x32xf32>
    %405 = math.tanh %404 : vector<8x32xf32>
    %406 = vector.extract_strided_slice %403 {offsets = [0, 32], sizes = [8, 32], strides = [1, 1]} : vector<8x96xf32> to vector<8x32xf32>
    %407 = arith.mulf %406, %359 : vector<8x32xf32>
    %408 = vector.extract_strided_slice %403 {offsets = [0, 0], sizes = [8, 32], strides = [1, 1]} : vector<8x96xf32> to vector<8x32xf32>
    %409 = arith.mulf %408, %405 : vector<8x32xf32>
    %410 = arith.addf %407, %409 : vector<8x32xf32>
    %411 = vector.extract_strided_slice %403 {offsets = [0, 64], sizes = [8, 32], strides = [1, 1]} : vector<8x96xf32> to vector<8x32xf32>
    %412 = math.tanh %410 : vector<8x32xf32>
    %413 = arith.mulf %411, %412 : vector<8x32xf32>
    %c0_i32_79 = arith.constant 0 : i32
    %414 = arith.cmpi eq, %c7_i32_70, %c0_i32_79 : i32
    %415 = arith.select %414, %397, %364 : vector<8x32xf32>
    %416 = arith.select %414, %413, %365 : vector<8x32xf32>
    %c8_i32_80 = arith.constant 8 : i32
    %417 = tpu.concatenate %415, %413, %397, %416 in 1 : vector<8x32xf32>, vector<8x32xf32>, vector<8x32xf32>, vector<8x32xf32> -> vector<8x128xf32>
    %418 = arith.truncf %417 : vector<8x128xf32> to vector<8x128xbf16>
    %c0_81 = arith.constant 0 : index
    %c0_82 = arith.constant 0 : index
    %419 = vector.load %arg4[%c0_81, %c0_82] : memref<128x2xbf16, #tpu.memory_space<vmem>>, vector<128x2xbf16>
    %cst_83 = arith.constant dense<0.000000e+00> : vector<8x2xf32>
    %420 = tpu.matmul %418, %419, %cst_83 {dimension_numbers = #tpu.dot_dimension_numbers<[1], [0], [0], [1], [0, 0, 1, 1], [], []>} : vector<8x128xbf16>, vector<128x2xbf16>, vector<8x2xf32> -> vector<8x2xf32>
    %c0_84 = arith.constant 0 : index
    %c0_85 = arith.constant 0 : index
    %421 = vector.load %arg5[%c0_84, %c0_85] : memref<1x2xf32, #tpu.memory_space<vmem>>, vector<1x2xf32>
    %422 = vector.broadcast %421 : vector<1x2xf32> to vector<8x2xf32>
    %423 = arith.addf %420, %422 : vector<8x2xf32>
    %c0_86 = arith.constant 0 : index
    %c0_87 = arith.constant 0 : index
    %424 = vector.load %arg6[%c0_86, %c0_87] : memref<8x2xf32, #tpu.memory_space<vmem>>, vector<8x2xf32>
    tpu.vector_store %arg6[%c0_86, %c0_87], %423 {strides = array<i32>} : memref<8x2xf32, #tpu.memory_space<vmem>>, vector<8x2xf32>,
    return
  }
}

</mosaic_0001>

<bundles_post_ra>
// kernel: birnn_forward.3
= control target key start
LH: loop header
LB: loop body
LE: loop exit
PB: predicated region body
PF: predicated region fallthrough
CT: control target
= control target key end

     0   :  { %v1526_v1 = vmov 0   ;;  %vm112_vm0 = vcmask 523264   ;;  %v1527_v20 = vmov 0.0|0.0   ;;  %v42_v21 = vlaneseq  ;;  %s1529_s11 = smov 64   ;;  %s1530_s12 = smov 96   ;;  %s1920_s1 = inlined_call_operand.vmem [shape: bf16[64,256], index: 1, kind: input, shape index: {}]   ;;  %s1921_s0 = inlined_call_operand.vmem [shape: bf16[64,64], index: 0, kind: input, shape index: {}]   ;;  %s1922_s2 = inlined_call_operand.vmem [shape: bf16[64,256], index: 2, kind: input, shape index: {}]   ;;  %s1923_s3 = inlined_call_operand.vmem [shape: f32[1,256], index: 3, kind: input, shape index: {}]   ;;  %s1924_s4 = inlined_call_operand.vmem [shape: bf16[128,2], index: 4, kind: input, shape index: {}]   ;;  %s1925_s5 = inlined_call_operand.vmem [shape: f32[1,2], index: 5, kind: input, shape index: {}]   ;;  %s1926_s6 = inlined_call_operand.vmem [shape: f32[8,2], index: 6, kind: output, shape index: {}]  }
   0x1   :  { %v1362_v0 = vld [vmem:[%s1920_s1 + $0x4] ss:$8 sps:$4 sm:$0xff]   ;;  %177 = vmatprep.mubr.bf16.mxu1 %v1526_v1  ;;  %157 = vmatprep.mubr.bf16.mxu0 %v1526_v1  ;;  %v1364_v2 = vld [vmem:[%s1920_s1] ss:$8 sps:$4 sm:$0xff]   ;;  %v1365_v3 = vld [vmem:[%s1920_s1 + $0x14] ss:$8 sps:$4 sm:$0xff]  }
   0x2   :  { %1347 = vmatprep.subr.bf16.mxu1 %v1362_v0  ;;  %125 = vmatprep.subr.bf16.mxu0 %v1362_v0  ;;  %v1367_v4 = vld [vmem:[%s1920_s1 + $0x10] ss:$8 sps:$4 sm:$0xff]   ;;  %v1368_v5 = vld [vmem:[%s1920_s1 + $0x24] ss:$8 sps:$4 sm:$0xff]   ;;  %v1370_v6 = vld [vmem:[%s1920_s1 + $0x20] ss:$8 sps:$4 sm:$0xff]  }
   0x3   :  { %1351 = vmatpush1.bf16.msra.mxu1 %v1364_v2  ;;  %126 = vmatpush1.bf16.msra.mxu0 %v1364_v2  ;;  %v1371_v7 = vld [vmem:[%s1920_s1 + $0x34] ss:$8 sps:$4 sm:$0xff]   ;;  %v1373_v8 = vld [vmem:[%s1920_s1 + $0x30] ss:$8 sps:$4 sm:$0xff]   ;;  %v1597_v9 = vld [vmem:[%s1922_s2 + $0x4] ss:$8 sps:$4 sm:$0xff]  }
   0x4   :  { %1348 = vmatprep.subr.bf16.mxu1 %v1365_v3  ;;  %127 = vmatprep.subr.bf16.mxu0 %v1365_v3  ;;  %v1374_v10 = vld [vmem:[%s1921_s0 + $0x10] sm:$0xff]   ;;  %v1385_v11 = vld [vmem:[%s1921_s0] sm:$0xff]   ;;  %v1381_v16 = vld [vmem:[%s1921_s0 + $0x18] sm:$0xff]   ;;  %v43_v28 = vshrl.u32 %v42_v21, 7  ;;  %vm373_vm1 = vcmask 261120   ;;  %vm1532_vm2 = vmmov 0  }
   0x5   :  { %v1608_v12 = vld [vmem:[%s1922_s2] ss:$8 sps:$4 sm:$0xff]   ;;  %v1614_v13 = vld [vmem:[%s1922_s2 + $0x14] ss:$8 sps:$4 sm:$0xff]   ;;  %v1623_v14 = vld [vmem:[%s1922_s2 + $0x10] ss:$8 sps:$4 sm:$0xff]  }
   0x6   :  { %v1630_v15 = vld [vmem:[%s1922_s2 + $0x24] ss:$8 sps:$4 sm:$0xff]   ;;  %v1642_v17 = vld [vmem:[%s1922_s2 + $0x20] ss:$8 sps:$4 sm:$0xff]   ;;  %v1648_v18 = vld [vmem:[%s1922_s2 + $0x34] ss:$8 sps:$4 sm:$0xff]  }
   0x7   :  { %1352 = vmatpush1.bf16.msra.mxu1 %v1367_v4  ;;  %128 = vmatpush1.bf16.msra.mxu0 %v1367_v4  ;;  %v1657_v19 = vld [vmem:[%s1922_s2 + $0x30] ss:$8 sps:$4 sm:$0xff]   ;;  %v44_v31 = vsub.s32 0, %v43_v28  ;;  %v40_v32 = vld [vmem:[%s1923_s3] sm:$0x3]  ;;  %v48_v35 = vsub.s32 1, %v43_v28 }
   0x8   :  { %1349 = vmatprep.subr.bf16.mxu1 %v1368_v5  ;;  %129 = vmatprep.subr.bf16.mxu0 %v1368_v5  ;;  %s1528_s3 = smov 32   ;;  %vm1135_vm3 = vcmask 785408   ;;  %vm1249_vm4 = vcmask 15360  }
   0x9   :  { %v1699_v37 = vrot.slane %v40_v32, %v44_v31  ;;  %v1702_v40 = vrot.slane %v40_v32, %v48_v35 }
   0xb   :  { %1353 = vmatpush1.bf16.msra.mxu1 %v1370_v6  ;;  %130 = vmatpush1.bf16.msra.mxu0 %v1370_v6 }
   0xc   :  { %1350 = vmatprep.subr.bf16.mxu1 %v1371_v7  ;;  %131 = vmatprep.subr.bf16.mxu0 %v1371_v7 }
   0xf   :  { %1354 = vmatpush1.bf16.msra.mxu1 %v1373_v8  ;;  %132 = vmatpush1.bf16.msra.mxu0 %v1373_v8 }
  0x10   :  { %266 = vmatprep.subr.bf16.mxu1 %v1597_v9  ;;  %491 = vmatprep.subr.bf16.mxu0 %v1597_v9 }
  0x12   :  { %1276 = vmatmul.mubr.msk.bf16.vlgmr.msra.gmra.mrb[0].mxu1 %vm112_vm0, %v1374_v10  ;;  %1274 = vmatmul.mubr.msk.bf16.vlgmr.msra.gmra.mrb[0].mxu0 %vm112_vm0, %v1385_v11 }
  0x13   :  { %267 = vmatpush1.bf16.msra.mxu1 %v1608_v12  ;;  %187 = vmatprep.mubr.bf16.mxu1 %v1526_v1 }
  0x14   :  { %268 = vmatprep.subr.bf16.mxu1 %v1614_v13  ;;  %492 = vmatpush1.bf16.msra.mxu0 %v1608_v12 }
  0x15   :  { %493 = vmatprep.subr.bf16.mxu0 %v1614_v13  ;;  %167 = vmatprep.mubr.bf16.mxu0 %v1526_v1 }
  0x17   :  { %269 = vmatpush1.bf16.msra.mxu1 %v1623_v14 }
  0x18   :  { %270 = vmatprep.subr.bf16.mxu1 %v1630_v15  ;;  %494 = vmatpush1.bf16.msra.mxu0 %v1623_v14 }
  0x19   :  { %495 = vmatprep.subr.bf16.mxu0 %v1630_v15 }
  0x1a   :  { %1277 = vmatmul.mubr.msk.bf16.gmra.mrb[4].mxu1 %vm112_vm0, %v1381_v16 }
  0x1b   :  { %271 = vmatpush1.bf16.msra.mxu1 %v1642_v17  ;;  %298 = vmatprep.mubr.bf16.mxu1 %v1526_v1 }
  0x1c   :  { %272 = vmatprep.subr.bf16.mxu1 %v1648_v18  ;;  %496 = vmatpush1.bf16.msra.mxu0 %v1642_v17 }
  0x1d   :  { %497 = vmatprep.subr.bf16.mxu0 %v1648_v18 }
  0x1f   :  { %273 = vmatpush1.bf16.msra.mxu1 %v1657_v19 }
  0x20   :  { %379 = vmatprep.subr.bf16.mxu1 %v1597_v9  ;;  %498 = vmatpush1.bf16.msra.mxu0 %v1657_v19 }
  0x21   :  { %715 = vmatprep.subr.bf16.mxu0 %v1597_v9 }
  0x22   :  { %299 = vmatmul.mubr.bf16.vlgmr.msra.gmra.mrb[8].mxu1 %v1527_v20 }
  0x23   :  { %380 = vmatpush1.bf16.msra.mxu1 %v1608_v12  ;;  %411 = vmatprep.mubr.bf16.mxu1 %v1526_v1 }
  0x24   :  { %381 = vmatprep.subr.bf16.mxu1 %v1614_v13 }
  0x27   :  { %382 = vmatpush1.bf16.msra.mxu1 %v1623_v14 }
  0x28   :  { %383 = vmatprep.subr.bf16.mxu1 %v1630_v15 }
  0x2b   :  { %384 = vmatpush1.bf16.msra.mxu1 %v1642_v17 }
  0x2c   :  { %385 = vmatprep.subr.bf16.mxu1 %v1648_v18 }
  0x2f   :  { %386 = vmatpush1.bf16.msra.mxu1 %v1657_v19 }
  0x30   :  { %603 = vmatprep.subr.bf16.mxu1 %v1597_v9 }
  0xe5   :  { %v1676_v22 = vpop.f32.mrb[0].mxu1  ;;  %v159_v23 = vpop.f32.mrb[0].mxu0 }
  0xe6   :  { %v1678_v24 = vpop.f32.mrb[1].mxu1  ;;  %v1680_v25 = vpop.f32.mrb[1].mxu0  ;;  %v160_v39 = vadd.f32 %v159_v23, %v1699_v37 }
  0xe7   :  { %v1682_v26 = vpop.f32.mrb[2].mxu1  ;;  %v1684_v27 = vpop.f32.mrb[2].mxu0 }
  0xe8   :  { %v1686_v29 = vpop.f32.mrb[3].mxu1  ;;  %v1688_v30 = vpop.f32.mrb[3].mxu0  ;;  %v164_v28 = vadd.f32 %v1684_v27, %v1699_v37 }
  0xed   :  { %v1693_v33 = vpop.f32.mrb[4].mxu1 }
  0xee   :  { %v1695_v34 = vpop.f32.mrb[5].mxu1 }
  0xef   :  { %v1697_v36 = vpop.f32.mrb[6].mxu1  ;;  %v192_v31 = vadd.f32 %v1695_v34, %v1702_v40 }
  0xf0   :  { %v195_v38 = vpop.f32.mrb[7].mxu1 }
  0xf1   :  { %v196_v41 = vadd.f32 %v195_v38, %v1702_v40 }
  0xf5   :  { %v300_v42 = vpop.f32.mrb[8].mxu1 }
  0xf6   :  { %v311_v43 = vadd.f32 %v300_v42, %v160_v39  ;;  %v302_v44 = vpop.f32.mrb[9].mxu1 }
  0xf7   :  { %v316_v45 = vadd.f32 %v302_v44, %v196_v41  ;;  %v304_v46 = vpop.f32.mrb[10].mxu1 }
  0xf8   :  { %1398 = vtanh.f32 %v311_v43  ;;  %v305_v47 = vpop.f32.mrb[11].mxu1  ;;  %v1286_v50 = vmul.f32 -1.442695, %v311_v43 }
  0xf9   :  { %1400 = vtanh.f32 %v316_v45  ;;  %v1287_v51 = vmul.f32 -1.442695, %v316_v45 }
  0xfa   :  { %1402 = vpow2.f32 %v1286_v50 }
  0xfb   :  { %1404 = vpow2.f32 %v1287_v51 }
 0x102   :  { %v1399_v48 = vpop.eup %1398 }
 0x103   :  { %326 = vrot.lane.b32.xlu0 %v1399_v48, %s1528_s3  ;;  %v1401_v49 = vpop.eup %1400 }
 0x104   :  { %v1403_v52 = vpop.eup %1402 }
 0x105   :  { %v320_v53 = vadd.f32 1.0, %v1403_v52  ;;  %v1405_v54 = vpop.eup %1404 }
 0x106   :  { %v344_v55 = vadd.f32 1.0, %v1405_v54 }
 0x107   :  { %350 = vrot.lane.b32.xlu0 %v1401_v49, %s1528_s3  ;;  %1406 = vrcp.f32 %v320_v53 }
 0x108   :  { %1408 = vrcp.f32 %v344_v55 }
 0x111   :  { %v1407_v56 = vpop.eup %1406 }
 0x112   :  { %v1409_v59 = vpop.eup %1408  ;;  %v324_v62 = vmul.f32 0.0, %v1407_v56 }
 0x113   :  { %v348_v2 = vmul.f32 0.0, %v1409_v59 }
 0x175   :  { %v327_v57 = vpop.permute.xlu0 %326 }
 0x176   :  { %v329_v58 = vmul.f32 %v1407_v56, %v327_v57 }
 0x178   :  { %331 = vrot.lane.b32.xlu1 %v329_v58, %s1528_s3 }
 0x179   :  { %v351_v60 = vpop.permute.xlu0 %350 }
 0x17a   :  { %v353_v61 = vmul.f32 %v1409_v59, %v351_v60 }
 0x17c   :  { %355 = vrot.lane.b32.xlu1 %v353_v61, %s1528_s3  ;;  %v1389_v61 = vld [vmem:[%s1921_s0 + $0x8] sm:$0xff]  }
 0x17d   :  { %1275 = vmatmul.mubr.msk.bf16.gmra.mrb[4].mxu0 %vm112_vm0, %v1389_v61 }
 0x17e   :  { %523 = vmatprep.mubr.bf16.mxu0 %v1526_v1 }
 0x1ea   :  { %v332_v63 = vpop.permute.xlu1 %331 }
 0x1eb   :  { %v1709_v0 = vadd.f32 %v332_v63, %v324_v62 }
 0x1ed   :  { %1410 = vtanh.f32 %v1709_v0 }
 0x1ee   :  { %v356_v3 = vpop.permute.xlu1 %355 }
 0x1ef   :  { %v1712_v4 = vadd.f32 %v356_v3, %v348_v2 }
 0x1f1   :  { %1412 = vtanh.f32 %v1712_v4 }
 0x1f7   :  { %v1411_v5 = vpop.eup %1410 }
 0x1f8   :  { %337 = vrot.lane.b32.xlu0 %v1411_v5, %s1528_s3 }
 0x1fb   :  { %v1413_v6 = vpop.eup %1412 }
 0x1fc   :  { %361 = vrot.lane.b32.xlu1 %v1413_v6, %s1528_s3 }
 0x250   :  { %v169_v5 = vpop.f32.mrb[4].mxu0 }
 0x251   :  { %v1761_v6 = vpop.f32.mrb[5].mxu0 }
 0x26a   :  { %v338_v7 = vpop.permute.xlu0 %337 }
 0x26b   :  { %v340_v8 = vmul.f32 %v1407_v56, %v338_v7  ;;  %v1763_v7 = vpop.f32.mrb[6].mxu0 }
 0x26d   :  { %366 = vrot.lane.b32.xlu0 %v340_v8, %s1529_s11  ;;  %v1765_v8 = vpop.f32.mrb[7].mxu0 }
 0x26e   :  { %v362_v10 = vpop.permute.xlu1 %361 }
 0x26f   :  { %v1718_v11 = vmul.f32 %v1409_v59, %v362_v10 }
 0x271   :  { %370 = vrot.lane.b32.xlu1 %v1718_v11, %s1530_s12 }
 0x2df   :  { %v1722_v16 = vpop.permute.xlu0 %366 }
 0x2e3   :  { %v371_v20 = vpop.permute.xlu1 %370 }
 0x2e4   :  { %v374_v21 = vsel %vm373_vm1, %v1722_v16, %v371_v20 }
 0x2e5   :  { %v375_v23 = vpack.c.bf16 %v374_v21, %v374_v21 }
 0x2e7   :  { %1288 = vmatmul.mubr.msk.bf16.vlgmr.msra.gmra.mrb[12].mxu1 %vm112_vm0, %v375_v23 }
 0x2e8   :  { %604 = vmatpush1.bf16.msra.mxu1 %v1608_v12  ;;  %635 = vmatprep.mubr.bf16.mxu1 %v1526_v1 }
 0x2e9   :  { %605 = vmatprep.subr.bf16.mxu1 %v1614_v13 }
 0x2ec   :  { %606 = vmatpush1.bf16.msra.mxu1 %v1623_v14 }
 0x2ed   :  { %607 = vmatprep.subr.bf16.mxu1 %v1630_v15 }
 0x2f0   :  { %608 = vmatpush1.bf16.msra.mxu1 %v1642_v17 }
 0x2f1   :  { %609 = vmatprep.subr.bf16.mxu1 %v1648_v18 }
 0x2f4   :  { %610 = vmatpush1.bf16.msra.mxu1 %v1657_v19 }
 0x2f5   :  { %821 = vmatprep.subr.bf16.mxu1 %v1597_v9 }
 0x3ba   :  { %v413_v32 = vpop.f32.mrb[12].mxu1 }
 0x3bb   :  { %v424_v35 = vadd.f32 %v413_v32, %v164_v28  ;;  %v415_v38 = vpop.f32.mrb[13].mxu1  ;;  %v170_v28 = vadd.f32 %v169_v5, %v1699_v37 }
 0x3bc   :  { %v429_v39 = vadd.f32 %v415_v38, %v192_v31  ;;  %v417_v41 = vpop.f32.mrb[14].mxu1  ;;  %v186_v31 = vadd.f32 %v1686_v29, %v1702_v40 }
 0x3bd   :  { %1414 = vtanh.f32 %v424_v35  ;;  %v418_v42 = vpop.f32.mrb[15].mxu1  ;;  %v1289_v45 = vmul.f32 -1.442695, %v424_v35 }
 0x3be   :  { %1416 = vtanh.f32 %v429_v39  ;;  %v1290_v46 = vmul.f32 -1.442695, %v429_v39 }
 0x3bf   :  { %1418 = vpow2.f32 %v1289_v45 }
 0x3c0   :  { %1420 = vpow2.f32 %v1290_v46 }
 0x3c7   :  { %v1415_v43 = vpop.eup %1414 }
 0x3c8   :  { %v1417_v44 = vpop.eup %1416  ;;  %439 = vrot.lane.b32.xlu0 %v1415_v43, %s1528_s3 }
 0x3c9   :  { %463 = vrot.lane.b32.xlu1 %v1417_v44, %s1528_s3  ;;  %v1419_v27 = vpop.eup %1418 }
 0x3ca   :  { %v1421_v34 = vpop.eup %1420  ;;  %v433_v47 = vadd.f32 1.0, %v1419_v27 }
 0x3cb   :  { %v457_v48 = vadd.f32 1.0, %v1421_v34 }
 0x3cc   :  { %1422 = vrcp.f32 %v433_v47 }
 0x3cd   :  { %1424 = vrcp.f32 %v457_v48 }
 0x3d6   :  { %v1423_v49 = vpop.eup %1422 }
 0x3d7   :  { %v1425_v51 = vpop.eup %1424  ;;  %v437_v55 = vmul.f32 %v1423_v49, %v1709_v0 }
 0x3d8   :  { %v461_v57 = vmul.f32 %v1425_v51, %v1712_v4 }
 0x43a   :  { %v440_v50 = vpop.permute.xlu0 %439 }
 0x43b   :  { %v442_v52 = vmul.f32 %v1423_v49, %v440_v50  ;;  %v464_v53 = vpop.permute.xlu1 %463 }
 0x43c   :  { %v466_v54 = vmul.f32 %v1425_v51, %v464_v53 }
 0x43d   :  { %444 = vrot.lane.b32.xlu0 %v442_v52, %s1528_s3 }
 0x43e   :  { %468 = vrot.lane.b32.xlu1 %v466_v54, %s1528_s3 }
 0x4af   :  { %v445_v56 = vpop.permute.xlu0 %444 }
 0x4b0   :  { %v1746_v58 = vadd.f32 %v445_v56, %v437_v55  ;;  %v469_v59 = vpop.permute.xlu1 %468 }
 0x4b1   :  { %v1748_v60 = vadd.f32 %v469_v59, %v461_v57 }
 0x4b2   :  { %1426 = vtanh.f32 %v1746_v58 }
 0x4b3   :  { %1428 = vtanh.f32 %v1748_v60 }
 0x4bc   :  { %v1427_v62 = vpop.eup %1426 }
 0x4bd   :  { %v1429_v63 = vpop.eup %1428  ;;  %450 = vrot.lane.b32.xlu0 %v1427_v62, %s1528_s3 }
 0x4be   :  { %474 = vrot.lane.b32.xlu1 %v1429_v63, %s1528_s3 }
 0x52f   :  { %v451_v0 = vpop.permute.xlu0 %450 }
 0x530   :  { %v453_v2 = vmul.f32 %v1423_v49, %v451_v0  ;;  %v475_v3 = vpop.permute.xlu1 %474 }
 0x531   :  { %v477_v4 = vmul.f32 %v1425_v51, %v475_v3 }
 0x532   :  { %479 = vrot.lane.b32.xlu0 %v453_v2, %s1529_s11 }
 0x533   :  { %483 = vrot.lane.b32.xlu1 %v477_v4, %s1530_s12 }
 0x5a4   :  { %v480_v10 = vpop.permute.xlu0 %479 }
 0x5a5   :  { %v484_v20 = vpop.permute.xlu1 %483 }
 0x5a6   :  { %v486_v21 = vsel %vm373_vm1, %v480_v10, %v484_v20  ;;  %v174_v20 = vadd.f32 %v1763_v7, %v1699_v37 }
 0x5a7   :  { %v487_v23 = vpack.c.bf16 %v486_v21, %v486_v21  ;;  %v182_v21 = vadd.f32 %v1678_v24, %v1702_v40 }
 0x5a9   :  { %1291 = vmatmul.mubr.msk.bf16.vlgmr.msra.gmra.mrb[8].mxu0 %vm112_vm0, %v487_v23 }
 0x5aa   :  { %716 = vmatpush1.bf16.msra.mxu0 %v1608_v12  ;;  %747 = vmatprep.mubr.bf16.mxu0 %v1526_v1 }
 0x5ab   :  { %717 = vmatprep.subr.bf16.mxu0 %v1614_v13 }
 0x5ae   :  { %718 = vmatpush1.bf16.msra.mxu0 %v1623_v14 }
 0x5af   :  { %719 = vmatprep.subr.bf16.mxu0 %v1630_v15 }
 0x5b2   :  { %720 = vmatpush1.bf16.msra.mxu0 %v1642_v17 }
 0x5b3   :  { %721 = vmatprep.subr.bf16.mxu0 %v1648_v18 }
 0x5b6   :  { %722 = vmatpush1.bf16.msra.mxu0 %v1657_v19 }
 0x5b7   :  { %927 = vmatprep.subr.bf16.mxu0 %v1597_v9 }
 0x67c   :  { %v525_v32 = vpop.f32.mrb[8].mxu0 }
 0x67d   :  { %v536_v35 = vadd.f32 %v525_v32, %v170_v28  ;;  %v527_v38 = vpop.f32.mrb[9].mxu0 }
 0x67e   :  { %v541_v39 = vadd.f32 %v527_v38, %v186_v31  ;;  %v529_v41 = vpop.f32.mrb[10].mxu0 }
 0x67f   :  { %1430 = vtanh.f32 %v536_v35  ;;  %v530_v42 = vpop.f32.mrb[11].mxu0  ;;  %v1292_v45 = vmul.f32 -1.442695, %v536_v35 }
 0x680   :  { %1432 = vtanh.f32 %v541_v39  ;;  %v1293_v46 = vmul.f32 -1.442695, %v541_v39 }
 0x681   :  { %1434 = vpow2.f32 %v1292_v45 }
 0x682   :  { %1436 = vpow2.f32 %v1293_v46 }
 0x689   :  { %v1431_v43 = vpop.eup %1430 }
 0x68a   :  { %v1433_v44 = vpop.eup %1432  ;;  %551 = vrot.lane.b32.xlu0 %v1431_v43, %s1528_s3 }
 0x68b   :  { %575 = vrot.lane.b32.xlu1 %v1433_v44, %s1528_s3  ;;  %v1435_v27 = vpop.eup %1434 }
 0x68c   :  { %v1437_v29 = vpop.eup %1436  ;;  %v545_v34 = vadd.f32 1.0, %v1435_v27 }
 0x68d   :  { %v569_v47 = vadd.f32 1.0, %v1437_v29 }
 0x68e   :  { %1438 = vrcp.f32 %v545_v34 }
 0x68f   :  { %1440 = vrcp.f32 %v569_v47 }
 0x698   :  { %v1439_v48 = vpop.eup %1438 }
 0x699   :  { %v1441_v50 = vpop.eup %1440  ;;  %v549_v54 = vmul.f32 %v1439_v48, %v1746_v58 }
 0x69a   :  { %v573_v56 = vmul.f32 %v1441_v50, %v1748_v60 }
 0x6fc   :  { %v552_v49 = vpop.permute.xlu0 %551 }
 0x6fd   :  { %v554_v51 = vmul.f32 %v1439_v48, %v552_v49  ;;  %v576_v52 = vpop.permute.xlu1 %575 }
 0x6fe   :  { %v578_v53 = vmul.f32 %v1441_v50, %v576_v52 }
 0x6ff   :  { %556 = vrot.lane.b32.xlu0 %v554_v51, %s1528_s3 }
 0x700   :  { %580 = vrot.lane.b32.xlu1 %v578_v53, %s1528_s3 }
 0x771   :  { %v557_v55 = vpop.permute.xlu0 %556 }
 0x772   :  { %v559_v57 = vadd.f32 %v557_v55, %v549_v54  ;;  %v581_v59 = vpop.permute.xlu1 %580 }
 0x773   :  { %v583_v61 = vadd.f32 %v581_v59, %v573_v56 }
 0x774   :  { %1442 = vtanh.f32 %v559_v57 }
 0x775   :  { %1444 = vtanh.f32 %v583_v61 }
 0x77e   :  { %v1443_v62 = vpop.eup %1442 }
 0x77f   :  { %v1445_v63 = vpop.eup %1444  ;;  %562 = vrot.lane.b32.xlu0 %v1443_v62, %s1528_s3 }
 0x780   :  { %586 = vrot.lane.b32.xlu1 %v1445_v63, %s1528_s3 }
 0x7f1   :  { %v563_v0 = vpop.permute.xlu0 %562 }
 0x7f2   :  { %v565_v2 = vmul.f32 %v1439_v48, %v563_v0  ;;  %v587_v3 = vpop.permute.xlu1 %586 }
 0x7f3   :  { %v589_v4 = vmul.f32 %v1441_v50, %v587_v3  ;;  %v180_v3 = vadd.f32 %v1676_v22, %v1699_v37 }
 0x7f4   :  { %591 = vrot.lane.b32.xlu0 %v565_v2, %s1529_s11 }
 0x7f5   :  { %595 = vrot.lane.b32.xlu1 %v589_v4, %s1530_s12  ;;  %v176_v4 = vadd.f32 %v1765_v8, %v1702_v40 }
 0x866   :  { %v592_v58 = vpop.permute.xlu0 %591 }
 0x867   :  { %v596_v60 = vpop.permute.xlu1 %595 }
 0x868   :  { %v598_v5 = vsel %vm373_vm1, %v592_v58, %v596_v60 }
 0x869   :  { %v599_v10 = vpack.c.bf16 %v598_v5, %v598_v5 }
 0x86b   :  { %1294 = vmatmul.mubr.msk.bf16.vlgmr.msra.gmra.mrb[16].mxu1 %vm112_vm0, %v599_v10 }
 0x86c   :  { %822 = vmatpush1.bf16.msra.mxu1 %v1608_v12  ;;  %853 = vmatprep.mubr.bf16.mxu1 %v1526_v1 }
 0x86d   :  { %823 = vmatprep.subr.bf16.mxu1 %v1614_v13 }
 0x870   :  { %824 = vmatpush1.bf16.msra.mxu1 %v1623_v14 }
 0x871   :  { %825 = vmatprep.subr.bf16.mxu1 %v1630_v15 }
 0x874   :  { %826 = vmatpush1.bf16.msra.mxu1 %v1642_v17 }
 0x875   :  { %827 = vmatprep.subr.bf16.mxu1 %v1648_v18 }
 0x878   :  { %828 = vmatpush1.bf16.msra.mxu1 %v1657_v19 }
 0x879   :  { %1033 = vmatprep.subr.bf16.mxu1 %v1597_v9 }
 0x93e   :  { %v637_v23 = vpop.f32.mrb[16].mxu1 }
 0x93f   :  { %v648_v28 = vadd.f32 %v637_v23, %v174_v20  ;;  %v639_v31 = vpop.f32.mrb[17].mxu1 }
 0x940   :  { %v653_v32 = vadd.f32 %v639_v31, %v182_v21  ;;  %v641_v35 = vpop.f32.mrb[18].mxu1 }
 0x941   :  { %1446 = vtanh.f32 %v648_v28  ;;  %v642_v38 = vpop.f32.mrb[19].mxu1  ;;  %v1295_v9 = vmul.f32 -1.442695, %v648_v28 }
 0x942   :  { %1448 = vtanh.f32 %v653_v32  ;;  %v1296_v42 = vmul.f32 -1.442695, %v653_v32 }
 0x943   :  { %1450 = vpow2.f32 %v1295_v9 }
 0x944   :  { %1452 = vpow2.f32 %v1296_v42 }
 0x94b   :  { %v1447_v39 = vpop.eup %1446 }
 0x94c   :  { %v1449_v41 = vpop.eup %1448  ;;  %663 = vrot.lane.b32.xlu0 %v1447_v39, %s1528_s3 }
 0x94d   :  { %687 = vrot.lane.b32.xlu1 %v1449_v41, %s1528_s3  ;;  %v1451_v7 = vpop.eup %1450 }
 0x94e   :  { %v1453_v24 = vpop.eup %1452  ;;  %v657_v43 = vadd.f32 1.0, %v1451_v7 }
 0x94f   :  { %v681_v44 = vadd.f32 1.0, %v1453_v24 }
 0x950   :  { %1454 = vrcp.f32 %v657_v43 }
 0x951   :  { %1456 = vrcp.f32 %v681_v44 }
 0x95a   :  { %v1455_v45 = vpop.eup %1454 }
 0x95b   :  { %v1457_v27 = vpop.eup %1456  ;;  %v661_v48 = vmul.f32 %v1455_v45, %v559_v57 }
 0x95c   :  { %v685_v50 = vmul.f32 %v1457_v27, %v583_v61 }
 0x9be   :  { %v664_v46 = vpop.permute.xlu0 %663 }
 0x9bf   :  { %v666_v29 = vmul.f32 %v1455_v45, %v664_v46  ;;  %v688_v34 = vpop.permute.xlu1 %687 }
 0x9c0   :  { %v690_v47 = vmul.f32 %v1457_v27, %v688_v34 }
 0x9c1   :  { %668 = vrot.lane.b32.xlu0 %v666_v29, %s1528_s3 }
 0x9c2   :  { %692 = vrot.lane.b32.xlu1 %v690_v47, %s1528_s3 }
 0xa33   :  { %v669_v49 = vpop.permute.xlu0 %668 }
 0xa34   :  { %v671_v51 = vadd.f32 %v669_v49, %v661_v48  ;;  %v693_v52 = vpop.permute.xlu1 %692 }
 0xa35   :  { %v695_v53 = vadd.f32 %v693_v52, %v685_v50 }
 0xa36   :  { %1458 = vtanh.f32 %v671_v51 }
 0xa37   :  { %1460 = vtanh.f32 %v695_v53 }
 0xa40   :  { %v1459_v54 = vpop.eup %1458 }
 0xa41   :  { %v1461_v55 = vpop.eup %1460  ;;  %674 = vrot.lane.b32.xlu0 %v1459_v54, %s1528_s3 }
 0xa42   :  { %698 = vrot.lane.b32.xlu1 %v1461_v55, %s1528_s3 }
 0xab3   :  { %v675_v56 = vpop.permute.xlu0 %674 }
 0xab4   :  { %v677_v59 = vmul.f32 %v1455_v45, %v675_v56  ;;  %v699_v62 = vpop.permute.xlu1 %698  ;;  %v184_v56 = vadd.f32 %v1682_v26, %v1699_v37 }
 0xab5   :  { %v701_v63 = vmul.f32 %v1457_v27, %v699_v62 }
 0xab6   :  { %703 = vrot.lane.b32.xlu0 %v677_v59, %s1529_s11 }
 0xab7   :  { %707 = vrot.lane.b32.xlu1 %v701_v63, %s1530_s12 }
 0xb28   :  { %v704_v57 = vpop.permute.xlu0 %703 }
 0xb29   :  { %v708_v61 = vpop.permute.xlu1 %707 }
 0xb2a   :  { %v710_v0 = vsel %vm373_vm1, %v704_v57, %v708_v61 }
 0xb2b   :  { %v711_v2 = vpack.c.bf16 %v710_v0, %v710_v0 }
 0xb2d   :  { %1297 = vmatmul.mubr.msk.bf16.vlgmr.msra.gmra.mrb[12].mxu0 %vm112_vm0, %v711_v2 }
 0xb2e   :  { %928 = vmatpush1.bf16.msra.mxu0 %v1608_v12  ;;  %959 = vmatprep.mubr.bf16.mxu0 %v1526_v1 }
 0xb2f   :  { %929 = vmatprep.subr.bf16.mxu0 %v1614_v13 }
 0xb32   :  { %930 = vmatpush1.bf16.msra.mxu0 %v1623_v14 }
 0xb33   :  { %931 = vmatprep.subr.bf16.mxu0 %v1630_v15 }
 0xb36   :  { %932 = vmatpush1.bf16.msra.mxu0 %v1642_v17 }
 0xb37   :  { %933 = vmatprep.subr.bf16.mxu0 %v1648_v18 }
 0xb3a   :  { %934 = vmatpush1.bf16.msra.mxu0 %v1657_v19 }
 0xc00   :  { %v749_v58 = vpop.f32.mrb[12].mxu0 }
 0xc01   :  { %v757_v60 = vadd.f32 %v749_v58, %v180_v3  ;;  %v751_v5 = vpop.f32.mrb[13].mxu0 }
 0xc02   :  { %v759_v10 = vadd.f32 %v751_v5, %v176_v4  ;;  %v753_v20 = vpop.f32.mrb[14].mxu0 }
 0xc03   :  { %1462 = vtanh.f32 %v757_v60  ;;  %v754_v21 = vpop.f32.mrb[15].mxu0  ;;  %v1298_v31 = vmul.f32 -1.442695, %v757_v60 }
 0xc04   :  { %1464 = vtanh.f32 %v759_v10  ;;  %v1299_v32 = vmul.f32 -1.442695, %v759_v10 }
 0xc05   :  { %1466 = vpow2.f32 %v1298_v31 }
 0xc06   :  { %1468 = vpow2.f32 %v1299_v32 }
 0xc0d   :  { %v1463_v23 = vpop.eup %1462 }
 0xc0e   :  { %v1465_v28 = vpop.eup %1464  ;;  %769 = vrot.lane.b32.xlu0 %v1463_v23, %s1528_s3 }
 0xc0f   :  { %793 = vrot.lane.b32.xlu1 %v1465_v28, %s1528_s3  ;;  %v1467_v22 = vpop.eup %1466 }
 0xc10   :  { %v1469_v8 = vpop.eup %1468  ;;  %v763_v35 = vadd.f32 1.0, %v1467_v22 }
 0xc11   :  { %v787_v38 = vadd.f32 1.0, %v1469_v8 }
 0xc12   :  { %1470 = vrcp.f32 %v763_v35 }
 0xc13   :  { %1472 = vrcp.f32 %v787_v38 }
 0xc1c   :  { %v1471_v39 = vpop.eup %1470 }
 0xc1d   :  { %v1473_v9 = vpop.eup %1472  ;;  %v767_v43 = vmul.f32 %v1471_v39, %v671_v51 }
 0xc1e   :  { %v791_v45 = vmul.f32 %v1473_v9, %v695_v53 }
 0xc80   :  { %v770_v41 = vpop.permute.xlu0 %769 }
 0xc81   :  { %v772_v42 = vmul.f32 %v1471_v39, %v770_v41  ;;  %v794_v7 = vpop.permute.xlu1 %793 }
 0xc82   :  { %v796_v24 = vmul.f32 %v1473_v9, %v794_v7  ;;  %v190_v7 = vadd.f32 %v1693_v33, %v1699_v37 }
 0xc83   :  { %774 = vrot.lane.b32.xlu0 %v772_v42, %s1528_s3 }
 0xc84   :  { %798 = vrot.lane.b32.xlu1 %v796_v24, %s1528_s3  ;;  %v166_v24 = vadd.f32 %v1688_v30, %v1702_v40 }
 0xcf5   :  { %v775_v44 = vpop.permute.xlu0 %774 }
 0xcf6   :  { %v777_v46 = vadd.f32 %v775_v44, %v767_v43  ;;  %v799_v27 = vpop.permute.xlu1 %798 }
 0xcf7   :  { %v801_v29 = vadd.f32 %v799_v27, %v791_v45 }
 0xcf8   :  { %1474 = vtanh.f32 %v777_v46 }
 0xcf9   :  { %1476 = vtanh.f32 %v801_v29 }
 0xd02   :  { %v1475_v34 = vpop.eup %1474 }
 0xd03   :  { %v1477_v47 = vpop.eup %1476  ;;  %780 = vrot.lane.b32.xlu0 %v1475_v34, %s1528_s3 }
 0xd04   :  { %804 = vrot.lane.b32.xlu1 %v1477_v47, %s1528_s3 }
 0xd75   :  { %v781_v48 = vpop.permute.xlu0 %780 }
 0xd76   :  { %v783_v49 = vmul.f32 %v1471_v39, %v781_v48  ;;  %v805_v50 = vpop.permute.xlu1 %804 }
 0xd77   :  { %v807_v52 = vmul.f32 %v1473_v9, %v805_v50 }
 0xd78   :  { %809 = vrot.lane.b32.xlu0 %v783_v49, %s1529_s11 }
 0xd79   :  { %813 = vrot.lane.b32.xlu1 %v807_v52, %s1530_s12 }
 0xdea   :  { %v810_v51 = vpop.permute.xlu0 %809 }
 0xdeb   :  { %v814_v53 = vpop.permute.xlu1 %813 }
 0xdec   :  { %v816_v54 = vsel %vm373_vm1, %v810_v51, %v814_v53 }
 0xded   :  { %v817_v55 = vpack.c.bf16 %v816_v54, %v816_v54 }
 0xdef   :  { %1300 = vmatmul.mubr.msk.bf16.vlgmr.msra.gmra.mrb[20].mxu1 %vm112_vm0, %v817_v55 }
 0xdf0   :  { %1034 = vmatpush1.bf16.msra.mxu1 %v1608_v12  ;;  %1065 = vmatprep.mubr.bf16.mxu1 %v1526_v1  ;;  %v172_v12 = vadd.f32 %v1761_v6, %v1702_v40 }
 0xdf1   :  { %1035 = vmatprep.subr.bf16.mxu1 %v1614_v13 }
 0xdf4   :  { %1036 = vmatpush1.bf16.msra.mxu1 %v1623_v14 }
 0xdf5   :  { %1037 = vmatprep.subr.bf16.mxu1 %v1630_v15 }
 0xdf8   :  { %1038 = vmatpush1.bf16.msra.mxu1 %v1642_v17 }
 0xdf9   :  { %1039 = vmatprep.subr.bf16.mxu1 %v1648_v18 }
 0xdfc   :  { %1040 = vmatpush1.bf16.msra.mxu1 %v1657_v19 }
 0xec2   :  { %v855_v59 = vpop.f32.mrb[20].mxu1 }
 0xec3   :  { %v863_v1 = vadd.f32 %v855_v59, %v184_v56  ;;  %v857_v62 = vpop.f32.mrb[21].mxu1 }
 0xec4   :  { %v865_v13 = vadd.f32 %v857_v62, %v172_v12  ;;  %v859_v63 = vpop.f32.mrb[22].mxu1 }
 0xec5   :  { %1478 = vtanh.f32 %v863_v1  ;;  %v860_v14 = vpop.f32.mrb[23].mxu1  ;;  %v1301_v18 = vmul.f32 -1.442695, %v863_v1 }
 0xec6   :  { %1480 = vtanh.f32 %v865_v13  ;;  %v1302_v19 = vmul.f32 -1.442695, %v865_v13 }
 0xec7   :  { %1482 = vpow2.f32 %v1301_v18 }
 0xec8   :  { %1484 = vpow2.f32 %v1302_v19 }
 0xecf   :  { %v1479_v15 = vpop.eup %1478 }
 0xed0   :  { %v1481_v17 = vpop.eup %1480  ;;  %875 = vrot.lane.b32.xlu0 %v1479_v15, %s1528_s3 }
 0xed1   :  { %899 = vrot.lane.b32.xlu1 %v1481_v17, %s1528_s3  ;;  %v1483_v26 = vpop.eup %1482 }
 0xed2   :  { %v1485_v6 = vpop.eup %1484  ;;  %v869_v57 = vadd.f32 1.0, %v1483_v26 }
 0xed3   :  { %v893_v61 = vadd.f32 1.0, %v1485_v6 }
 0xed4   :  { %1486 = vrcp.f32 %v869_v57 }
 0xed5   :  { %1488 = vrcp.f32 %v893_v61 }
 0xede   :  { %v1487_v0 = vpop.eup %1486 }
 0xedf   :  { %v1489_v3 = vpop.eup %1488  ;;  %v873_v5 = vmul.f32 %v1487_v0, %v777_v46 }
 0xee0   :  { %v897_v20 = vmul.f32 %v1489_v3, %v801_v29 }
 0xf42   :  { %v876_v2 = vpop.permute.xlu0 %875 }
 0xf43   :  { %v878_v4 = vmul.f32 %v1487_v0, %v876_v2  ;;  %v900_v58 = vpop.permute.xlu1 %899 }
 0xf44   :  { %v902_v60 = vmul.f32 %v1489_v3, %v900_v58 }
 0xf45   :  { %880 = vrot.lane.b32.xlu0 %v878_v4, %s1528_s3  ;;  %v162_v4 = vadd.f32 %v1680_v25, %v1702_v40 }
 0xf46   :  { %904 = vrot.lane.b32.xlu1 %v902_v60, %s1528_s3 }
 0xfb7   :  { %v881_v10 = vpop.permute.xlu0 %880 }
 0xfb8   :  { %v883_v21 = vadd.f32 %v881_v10, %v873_v5  ;;  %v905_v23 = vpop.permute.xlu1 %904 }
 0xfb9   :  { %v907_v28 = vadd.f32 %v905_v23, %v897_v20 }
 0xfba   :  { %1490 = vtanh.f32 %v883_v21 }
 0xfbb   :  { %1492 = vtanh.f32 %v907_v28 }
 0xfc4   :  { %v1491_v31 = vpop.eup %1490 }
 0xfc5   :  { %v1493_v32 = vpop.eup %1492  ;;  %886 = vrot.lane.b32.xlu0 %v1491_v31, %s1528_s3 }
 0xfc6   :  { %910 = vrot.lane.b32.xlu1 %v1493_v32, %s1528_s3 }
0x1037   :  { %v887_v22 = vpop.permute.xlu0 %886 }
0x1038   :  { %v889_v8 = vmul.f32 %v1487_v0, %v887_v22  ;;  %v911_v35 = vpop.permute.xlu1 %910 }
0x1039   :  { %v913_v38 = vmul.f32 %v1489_v3, %v911_v35  ;;  %v194_v3 = vadd.f32 %v1697_v36, %v1699_v37 }
0x103a   :  { %915 = vrot.lane.b32.xlu0 %v889_v8, %s1529_s11 }
0x103b   :  { %919 = vrot.lane.b32.xlu1 %v913_v38, %s1530_s12 }
0x10ac   :  { %v916_v39 = vpop.permute.xlu0 %915 }
0x10ad   :  { %v920_v41 = vpop.permute.xlu1 %919 }
0x10ae   :  { %v922_v9 = vsel %vm373_vm1, %v916_v39, %v920_v41 }
0x10af   :  { %v923_v42 = vpack.c.bf16 %v922_v9, %v922_v9 }
0x10b1   :  { %1303 = vmatmul.mubr.msk.bf16.vlgmr.msra.gmra.mrb[16].mxu0 %vm112_vm0, %v923_v42 }
0x1184   :  { %v961_v43 = vpop.f32.mrb[16].mxu0 }
0x1185   :  { %v969_v44 = vadd.f32 %v961_v43, %v190_v7  ;;  %v963_v45 = vpop.f32.mrb[17].mxu0 }
0x1186   :  { %v971_v46 = vadd.f32 %v963_v45, %v166_v24  ;;  %v965_v27 = vpop.f32.mrb[18].mxu0  ;;  %v1531_v45 = vmov 0.0  }
0x1187   :  { %1494 = vtanh.f32 %v969_v44  ;;  %v966_v29 = vpop.f32.mrb[19].mxu0  ;;  %v1304_v48 = vmul.f32 -1.442695, %v969_v44  ;;  %1327 = vmatprep.subr.bf16.mxu0 %v1531_v45  ;;  %v1391_v27 = vld [vmem:[%s1924_s4 + $0x8] sm:$0xff]   ;;  %1343 = vmatprep.mubr.msk.bf16.mxu0 %vm1532_vm2, %v1531_v45 }
0x1188   :  { %1496 = vtanh.f32 %v971_v46  ;;  %v1305_v49 = vmul.f32 -1.442695, %v971_v46  ;;  %v1390_v46 = vld [vmem:[%s1924_s4] sm:$0xff]   ;;  %v1392_v29 = vld [vmem:[%s1924_s4 + $0x10] sm:$0xff]  }
0x1189   :  { %1498 = vpow2.f32 %v1304_v48  ;;  %1328 = vmatpush3.bf16.msra.mxu0 %v1390_v46  ;;  %v1393_v48 = vld [vmem:[%s1924_s4 + $0x18] sm:$0xff]  }
0x118a   :  { %1500 = vpow2.f32 %v1305_v49  ;;  %1329 = vmatprep.subr.bf16.mxu0 %v1531_v45  ;;  %v1394_v49 = vld [vmem:[%s1924_s4 + $0x20] sm:$0xff]  }
0x118d   :  { %1330 = vmatpush3.bf16.msra.mxu0 %v1391_v27 }
0x118e   :  { %1331 = vmatprep.subr.bf16.mxu0 %v1531_v45 }
0x1191   :  { %v1495_v34 = vpop.eup %1494  ;;  %1332 = vmatpush3.bf16.msra.mxu0 %v1392_v29 }
0x1192   :  { %v1497_v47 = vpop.eup %1496  ;;  %981 = vrot.lane.b32.xlu0 %v1495_v34, %s1528_s3  ;;  %1333 = vmatprep.subr.bf16.mxu0 %v1531_v45 }
0x1193   :  { %1005 = vrot.lane.b32.xlu1 %v1497_v47, %s1528_s3  ;;  %v1499_v33 = vpop.eup %1498 }
0x1194   :  { %v1501_v30 = vpop.eup %1500  ;;  %v975_v50 = vadd.f32 1.0, %v1499_v33  ;;  %v1395_v33 = vld [vmem:[%s1924_s4 + $0x28] sm:$0xff]  }
0x1195   :  { %v999_v52 = vadd.f32 1.0, %v1501_v30  ;;  %1334 = vmatpush3.bf16.msra.mxu0 %v1393_v48  ;;  %v1396_v30 = vld [vmem:[%s1924_s4 + $0x30] sm:$0xff]  }
0x1196   :  { %1502 = vrcp.f32 %v975_v50  ;;  %1335 = vmatprep.subr.bf16.mxu0 %v1531_v45 }
0x1197   :  { %1504 = vrcp.f32 %v999_v52 }
0x1199   :  { %1336 = vmatpush3.bf16.msra.mxu0 %v1394_v49 }
0x119a   :  { %1337 = vmatprep.subr.bf16.mxu0 %v1531_v45 }
0x119d   :  { %1338 = vmatpush3.bf16.msra.mxu0 %v1395_v33 }
0x119e   :  { %1339 = vmatprep.subr.bf16.mxu0 %v1531_v45 }
0x11a0   :  { %v1503_v51 = vpop.eup %1502 }
0x11a1   :  { %v1505_v54 = vpop.eup %1504  ;;  %v979_v59 = vmul.f32 %v1503_v51, %v883_v21  ;;  %1340 = vmatpush3.bf16.msra.mxu0 %v1396_v30 }
0x11a2   :  { %v1003_v62 = vmul.f32 %v1505_v54, %v907_v28  ;;  %1341 = vmatprep.subr.bf16.mxu0 %v1531_v45 }
0x1204   :  { %v982_v53 = vpop.permute.xlu0 %981 }
0x1205   :  { %v984_v55 = vmul.f32 %v1503_v51, %v982_v53  ;;  %v1006_v56 = vpop.permute.xlu1 %1005 }
0x1206   :  { %v1008_v12 = vmul.f32 %v1505_v54, %v1006_v56 }
0x1207   :  { %986 = vrot.lane.b32.xlu0 %v984_v55, %s1528_s3 }
0x1208   :  { %1010 = vrot.lane.b32.xlu1 %v1008_v12, %s1528_s3 }
0x1279   :  { %v987_v1 = vpop.permute.xlu0 %986 }
0x127a   :  { %v989_v13 = vadd.f32 %v987_v1, %v979_v59  ;;  %v1011_v63 = vpop.permute.xlu1 %1010 }
0x127b   :  { %v1013_v14 = vadd.f32 %v1011_v63, %v1003_v62  ;;  %v1309_v62 = vld [vmem:[%s1925_s5] ss:$0 sm:$0xff] }
0x127c   :  { %1506 = vtanh.f32 %v989_v13 }
0x127d   :  { %1508 = vtanh.f32 %v1013_v14 }
0x1286   :  { %v1507_v15 = vpop.eup %1506 }
0x1287   :  { %v1509_v17 = vpop.eup %1508  ;;  %992 = vrot.lane.b32.xlu0 %v1507_v15, %s1528_s3 }
0x1288   :  { %1016 = vrot.lane.b32.xlu1 %v1509_v17, %s1528_s3 }
0x12f9   :  { %v993_v18 = vpop.permute.xlu0 %992 }
0x12fa   :  { %v995_v19 = vmul.f32 %v1503_v51, %v993_v18  ;;  %v1017_v26 = vpop.permute.xlu1 %1016 }
0x12fb   :  { %v1019_v6 = vmul.f32 %v1505_v54, %v1017_v26 }
0x12fc   :  { %1021 = vrot.lane.b32.xlu0 %v995_v19, %s1529_s11 }
0x12fd   :  { %1025 = vrot.lane.b32.xlu1 %v1019_v6, %s1530_s12 }
0x136e   :  { %v1022_v57 = vpop.permute.xlu0 %1021 }
0x136f   :  { %v1026_v61 = vpop.permute.xlu1 %1025 }
0x1370   :  { %v1028_v0 = vsel %vm373_vm1, %v1022_v57, %v1026_v61 }
0x1371   :  { %v1029_v2 = vpack.c.bf16 %v1028_v0, %v1028_v0 }
0x1373   :  { %1306 = vmatmul.mubr.msk.bf16.vlgmr.msra.gmra.mrb[24].mxu1 %vm112_vm0, %v1029_v2 }
0x1446   :  { %v1067_v58 = vpop.f32.mrb[24].mxu1 }
0x1447   :  { %v1075_v60 = vadd.f32 %v1067_v58, %v194_v3  ;;  %v1069_v5 = vpop.f32.mrb[25].mxu1 }
0x1448   :  { %v1077_v10 = vadd.f32 %v1069_v5, %v162_v4  ;;  %v1071_v20 = vpop.f32.mrb[26].mxu1 }
0x1449   :  { %1510 = vtanh.f32 %v1075_v60  ;;  %v1072_v21 = vpop.f32.mrb[27].mxu1  ;;  %v1307_v31 = vmul.f32 -1.442695, %v1075_v60 }
0x144a   :  { %1512 = vtanh.f32 %v1077_v10  ;;  %v1308_v32 = vmul.f32 -1.442695, %v1077_v10 }
0x144b   :  { %1514 = vpow2.f32 %v1307_v31 }
0x144c   :  { %1516 = vpow2.f32 %v1308_v32 }
0x1453   :  { %v1511_v23 = vpop.eup %1510 }
0x1454   :  { %v1513_v28 = vpop.eup %1512  ;;  %1087 = vrot.lane.b32.xlu1 %v1511_v23, %s1528_s3 }
0x1455   :  { %1111 = vrot.lane.b32.xlu0 %v1513_v28, %s1528_s3  ;;  %v1515_v36 = vpop.eup %1514 }
0x1456   :  { %v1517_v25 = vpop.eup %1516  ;;  %v1081_v37 = vadd.f32 1.0, %v1515_v36 }
0x1457   :  { %v1105_v40 = vadd.f32 1.0, %v1517_v25 }
0x1458   :  { %1518 = vrcp.f32 %v1081_v37 }
0x1459   :  { %1520 = vrcp.f32 %v1105_v40 }
0x1462   :  { %v1519_v22 = vpop.eup %1518 }
0x1463   :  { %v1521_v35 = vpop.eup %1520  ;;  %v1085_v9 = vmul.f32 %v1519_v22, %v989_v13 }
0x1464   :  { %v1109_v7 = vmul.f32 %v1521_v35, %v1013_v14 }
0x14c6   :  { %v1088_v8 = vpop.permute.xlu1 %1087 }
0x14c7   :  { %v1090_v38 = vmul.f32 %v1519_v22, %v1088_v8  ;;  %v1112_v39 = vpop.permute.xlu0 %1111 }
0x14c8   :  { %v1114_v41 = vmul.f32 %v1521_v35, %v1112_v39 }
0x14c9   :  { %1092 = vrot.lane.b32.xlu1 %v1090_v38, %s1528_s3 }
0x14ca   :  { %1116 = vrot.lane.b32.xlu0 %v1114_v41, %s1528_s3 }
0x153b   :  { %v1093_v42 = vpop.permute.xlu1 %1092 }
0x153c   :  { %v1095_v24 = vadd.f32 %v1093_v42, %v1085_v9  ;;  %v1117_v43 = vpop.permute.xlu0 %1116 }
0x153d   :  { %v1119_v44 = vadd.f32 %v1117_v43, %v1109_v7 }
0x153e   :  { %1522 = vtanh.f32 %v1095_v24 }
0x153f   :  { %1524 = vtanh.f32 %v1119_v44 }
0x1548   :  { %v1523_v34 = vpop.eup %1522 }
0x1549   :  { %v1525_v47 = vpop.eup %1524  ;;  %1098 = vrot.lane.b32.xlu1 %v1523_v34, %s1528_s3 }
0x154a   :  { %1122 = vrot.lane.b32.xlu0 %v1525_v47, %s1528_s3 }
0x154d   :  { %1130 = vrot.lane.b32.xlu1 %v1718_v11, %s1528_s3  ;;  %v1397_v11 = vld [vmem:[%s1924_s4 + $0x38] sm:$0xff]  }
0x154e   :  { %1342 = vmatpush3.bf16.msra.mxu0 %v1397_v11 }
0x15bb   :  { %v1099_v51 = vpop.permute.xlu1 %1098 }
0x15bc   :  { %v1123_v50 = vpop.permute.xlu0 %1122  ;;  %v1101_v53 = vmul.f32 %v1519_v22, %v1099_v51 }
0x15bd   :  { %v1125_v52 = vmul.f32 %v1521_v35, %v1123_v50 }
0x15bf   :  { %1127 = vrot.lane.b32.xlu0 %v1125_v52, %s1530_s12  ;;  %v1131_v56 = vpop.permute.xlu1 %1130 }
0x1631   :  { %v1128_v54 = vpop.permute.xlu0 %1127 }
0x1632   :  { %v1133_v55 = vsel %vm373_vm1, %v1722_v16, %v1128_v54 }
0x1633   :  { %v1134_v12 = vsel %vm112_vm0, %v1133_v55, %v1101_v53 }
0x1634   :  { %v1136_v59 = vsel %vm1135_vm3, %v1134_v12, %v1131_v56 }
0x1635   :  { %v1137_v1 = vpack.c.bf16 %v1136_v59, %v1136_v59 }
0x1637   :  { %1344 = vmatmul.mubr.bf16.vlgmr.msra.gmra.mrb[20].mxu0 %v1137_v1 }
0x170a   :  { %v1243_v13 = vpop.f32.mrb[20].mxu0 }
0x170b   :  { %v1244_v63 = vadd.f32 %v1309_v62, %v1243_v13  ;;  %v1345_v14 = vpop.f32.mrb[21].mxu0 }
0x170c   :  { %v1246_v15 = vpop.f32.mrb[22].mxu0 }
0x170d   :  { %1250 = vst.msk [vmem:[%s1926_s6] sm:$0xff] %vm1249_vm4, %v1244_v63  ;;  %v1346_v16 = vpop.f32.mrb[23].mxu0 }

// kernel: birnn_forward.2
= control target key start
LH: loop header
LB: loop body
LE: loop exit
PB: predicated region body
PF: predicated region fallthrough
CT: control target
= control target key end

     0   :  { %v1402_v1 = vmov 0   ;;  %vm82_vm0 = vcmask 261120   ;;  %v1403_v15 = vmov 0.0|0.0   ;;  %v32_v18 = vlaneseq  ;;  %s1406_s21 = smov 96   ;;  %s1759_s1 = inlined_call_operand.vmem [shape: bf16[32,256], index: 1, kind: input, shape index: {}]   ;;  %s1760_s2 = inlined_call_operand.vmem [shape: bf16[64,256], index: 2, kind: input, shape index: {}]   ;;  %s1761_s0 = inlined_call_operand.vmem [shape: bf16[64,32], index: 0, kind: input, shape index: {}]   ;;  %s1762_s3 = inlined_call_operand.vmem [shape: f32[1,256], index: 3, kind: input, shape index: {}]   ;;  %s1763_s4 = inlined_call_operand.vmem [shape: bf16[64,64], index: 4, kind: output, shape index: {}]  }
   0x1   :  { %v1252_v0 = vld [vmem:[%s1759_s1 + $0x4] ss:$8 sps:$4 sm:$0xff]   ;;  %127 = vmatprep.mubr.bf16.mxu0 %v1402_v1  ;;  %269 = vmatprep.mubr.bf16.mxu1 %v1402_v1  ;;  %v1256_v3 = vld [vmem:[%s1759_s1] ss:$8 sps:$4 sm:$0xff]   ;;  %v1258_v5 = vld [vmem:[%s1759_s1 + $0x14] ss:$8 sps:$4 sm:$0xff]  }
   0x2   :  { %v1440_v2 = vld [vmem:[%s1760_s2 + $0x4] ss:$8 sps:$4 sm:$0xff]   ;;  %95 = vmatprep.subr.bf16.mxu0 %v1252_v0  ;;  %v1448_v4 = vld [vmem:[%s1760_s2] ss:$8 sps:$4 sm:$0xff]   ;;  %v1458_v6 = vld [vmem:[%s1760_s2 + $0x14] ss:$8 sps:$4 sm:$0xff]  }
   0x3   :  { %237 = vmatprep.subr.bf16.mxu1 %v1440_v2  ;;  %96 = vmatpush1.bf16.msra.mxu0 %v1256_v3  ;;  %v1262_v7 = vld [vmem:[%s1759_s1 + $0x10] ss:$8 sps:$4 sm:$0xff]   ;;  %v1264_v9 = vld [vmem:[%s1761_s0] sm:$0xff]   ;;  %v1487_v12 = vld [vmem:[%s1760_s2 + $0x34] ss:$8 sps:$4 sm:$0xff]   ;;  %v33_v19 = vshrl.u32 %v32_v18, 7 }
   0x4   :  { %238 = vmatpush1.bf16.msra.mxu1 %v1448_v4  ;;  %97 = vmatprep.subr.bf16.mxu0 %v1258_v5  ;;  %v1466_v8 = vld [vmem:[%s1760_s2 + $0x10] ss:$8 sps:$4 sm:$0xff]   ;;  %v1475_v10 = vld [vmem:[%s1760_s2 + $0x24] ss:$8 sps:$4 sm:$0xff]   ;;  %v1481_v11 = vld [vmem:[%s1760_s2 + $0x20] ss:$8 sps:$4 sm:$0xff]  }
   0x5   :  { %239 = vmatprep.subr.bf16.mxu1 %v1458_v6  ;;  %v1495_v13 = vld [vmem:[%s1760_s2 + $0x30] ss:$8 sps:$4 sm:$0xff]   ;;  %v1271_v14 = vld [vmem:[%s1761_s0 + $0x8] sm:$0xff]   ;;  %v38_v20 = vsub.s32 1, %v33_v19  ;;  %v30_v21 = vld [vmem:[%s1762_s3] sm:$0x3] }
   0x6   :  { %v1272_v16 = vld [vmem:[%s1761_s0 + $0x10] sm:$0xff]   ;;  %v1273_v17 = vld [vmem:[%s1761_s0 + $0x18] sm:$0xff]   ;;  %v34_v22 = vsub.s32 0, %v33_v19  ;;  %s1404_s0 = smov 32   ;;  %s1405_s3 = smov 64   ;;  %vm346_vm1 = vcmask 523520  }
   0x7   :  { %98 = vmatpush1.bf16.msra.mxu0 %v1262_v7  ;;  %v39_v23 = vrot.slane %v30_v21, %v38_v20  ;;  %vm233_vm2 = vcmask 523264   ;;  %vm1168_vm3 = vcmask 519168  }
   0x8   :  { %240 = vmatpush1.bf16.msra.mxu1 %v1466_v8  ;;  %469 = vmatprep.subr.bf16.mxu0 %v1440_v2  ;;  %v35_v25 = vrot.slane %v30_v21, %v34_v22 }
   0x9   :  { %241 = vmatprep.subr.bf16.mxu1 %v1475_v10 }
   0xa   :  { %1196 = vmatmul.mubr.msk.bf16.vlgmr.msra.gmra.mrb[0].mxu0 %vm82_vm0, %v1264_v9 }
   0xb   :  { %137 = vmatprep.mubr.bf16.mxu0 %v1402_v1  ;;  %470 = vmatpush1.bf16.msra.mxu0 %v1448_v4 }
   0xc   :  { %242 = vmatpush1.bf16.msra.mxu1 %v1481_v11  ;;  %471 = vmatprep.subr.bf16.mxu0 %v1458_v6 }
   0xd   :  { %243 = vmatprep.subr.bf16.mxu1 %v1487_v12 }
   0xf   :  { %472 = vmatpush1.bf16.msra.mxu0 %v1466_v8 }
  0x10   :  { %244 = vmatpush1.bf16.msra.mxu1 %v1495_v13  ;;  %473 = vmatprep.subr.bf16.mxu0 %v1475_v10 }
  0x11   :  { %353 = vmatprep.subr.bf16.mxu1 %v1440_v2 }
  0x12   :  { %1197 = vmatmul.mubr.msk.bf16.gmra.mrb[4].mxu0 %vm82_vm0, %v1271_v14 }
  0x13   :  { %270 = vmatmul.mubr.bf16.vlgmr.msra.gmra.mrb[0].mxu1 %v1403_v15  ;;  %147 = vmatprep.mubr.bf16.mxu0 %v1402_v1 }
  0x14   :  { %354 = vmatpush1.bf16.msra.mxu1 %v1448_v4  ;;  %385 = vmatprep.mubr.bf16.mxu1 %v1402_v1 }
  0x15   :  { %355 = vmatprep.subr.bf16.mxu1 %v1458_v6  ;;  %474 = vmatpush1.bf16.msra.mxu0 %v1481_v11 }
  0x16   :  { %475 = vmatprep.subr.bf16.mxu0 %v1487_v12 }
  0x18   :  { %356 = vmatpush1.bf16.msra.mxu1 %v1466_v8 }
  0x19   :  { %357 = vmatprep.subr.bf16.mxu1 %v1475_v10  ;;  %476 = vmatpush1.bf16.msra.mxu0 %v1495_v13 }
  0x1a   :  { %1198 = vmatmul.mubr.msk.bf16.gmra.mrb[8].mxu0 %vm82_vm0, %v1272_v16  ;;  %701 = vmatprep.subr.bf16.mxu0 %v1440_v2 }
  0x1b   :  { %157 = vmatprep.mubr.bf16.mxu0 %v1402_v1 }
  0x1c   :  { %358 = vmatpush1.bf16.msra.mxu1 %v1481_v11 }
  0x1d   :  { %359 = vmatprep.subr.bf16.mxu1 %v1487_v12 }
  0x20   :  { %360 = vmatpush1.bf16.msra.mxu1 %v1495_v13 }
  0x21   :  { %585 = vmatprep.subr.bf16.mxu1 %v1440_v2 }
  0x22   :  { %1199 = vmatmul.mubr.msk.bf16.gmra.mrb[12].mxu0 %vm82_vm0, %v1273_v17 }
  0x23   :  { %501 = vmatprep.mubr.bf16.mxu0 %v1402_v1 }
  0xdd   :  { %v129_v24 = vpop.f32.mrb[0].mxu0 }
  0xde   :  { %v131_v26 = vpop.f32.mrb[1].mxu0  ;;  %v130_v32 = vadd.f32 %v129_v24, %v35_v25 }
  0xdf   :  { %v1536_v27 = vadd.f32 %v131_v26, %v39_v23  ;;  %v133_v28 = vpop.f32.mrb[2].mxu0 }
  0xe0   :  { %v1538_v29 = vadd.f32 %v133_v28, %v35_v25  ;;  %v135_v30 = vpop.f32.mrb[3].mxu0 }
  0xe1   :  { %v1540_v31 = vadd.f32 %v135_v30, %v39_v23 }
  0xe5   :  { %v139_v33 = vpop.f32.mrb[4].mxu0 }
  0xe6   :  { %v271_v34 = vpop.f32.mrb[0].mxu1  ;;  %v1542_v35 = vadd.f32 %v139_v33, %v35_v25  ;;  %v141_v37 = vpop.f32.mrb[5].mxu0 }
  0xe7   :  { %v282_v36 = vadd.f32 %v271_v34, %v130_v32  ;;  %v273_v38 = vpop.f32.mrb[1].mxu1  ;;  %v1544_v39 = vadd.f32 %v141_v37, %v39_v23  ;;  %v143_v40 = vpop.f32.mrb[6].mxu0 }
  0xe8   :  { %v275_v41 = vpop.f32.mrb[2].mxu1  ;;  %v1546_v42 = vadd.f32 %v143_v40, %v35_v25  ;;  %v145_v43 = vpop.f32.mrb[7].mxu0 }
  0xe9   :  { %1274 = vtanh.f32 %v282_v36  ;;  %v276_v44 = vpop.f32.mrb[3].mxu1  ;;  %v1548_v45 = vadd.f32 %v145_v43, %v39_v23  ;;  %v1208_v3 = vmul.f32 -1.442695, %v282_v36 }
  0xed   :  { %v149_v46 = vpop.f32.mrb[8].mxu0 }
  0xee   :  { %v1550_v47 = vadd.f32 %v149_v46, %v35_v25  ;;  %v151_v48 = vpop.f32.mrb[9].mxu0 }
  0xef   :  { %v1552_v49 = vadd.f32 %v151_v48, %v39_v23  ;;  %v153_v50 = vpop.f32.mrb[10].mxu0 }
  0xf0   :  { %v1554_v51 = vadd.f32 %v153_v50, %v35_v25  ;;  %v155_v52 = vpop.f32.mrb[11].mxu0 }
  0xf1   :  { %v1556_v53 = vadd.f32 %v155_v52, %v39_v23 }
  0xf3   :  { %v1275_v54 = vpop.eup %1274 }
  0xf4   :  { %297 = vrot.lane.b32.xlu0 %v1275_v54, %s1404_s0 }
  0xf5   :  { %v159_v55 = vpop.f32.mrb[12].mxu0 }
  0xf6   :  { %v1559_v56 = vadd.f32 %v159_v55, %v35_v25  ;;  %v161_v57 = vpop.f32.mrb[13].mxu0 }
  0xf7   :  { %v1561_v58 = vadd.f32 %v161_v57, %v39_v23  ;;  %v163_v59 = vpop.f32.mrb[14].mxu0 }
  0xf8   :  { %v1563_v60 = vadd.f32 %v163_v59, %v35_v25  ;;  %v165_v61 = vpop.f32.mrb[15].mxu0 }
  0xf9   :  { %v166_v62 = vadd.f32 %v165_v61, %v39_v23 }
  0xfb   :  { %v287_v63 = vadd.f32 %v273_v38, %v166_v62 }
  0xfd   :  { %1276 = vtanh.f32 %v287_v63  ;;  %v1209_v9 = vmul.f32 -1.442695, %v287_v63 }
  0xfe   :  { %1278 = vpow2.f32 %v1208_v3 }
 0x107   :  { %v1277_v0 = vpop.eup %1276 }
 0x108   :  { %321 = vrot.lane.b32.xlu0 %v1277_v0, %s1404_s0  ;;  %v1279_v5 = vpop.eup %1278 }
 0x109   :  { %v291_v7 = vadd.f32 1.0, %v1279_v5 }
 0x10b   :  { %1280 = vrcp.f32 %v291_v7 }
 0x10c   :  { %1282 = vpow2.f32 %v1209_v9 }
 0x115   :  { %v1281_v14 = vpop.eup %1280 }
 0x116   :  { %v1283_v17 = vpop.eup %1282  ;;  %v295_v22 = vmul.f32 0.0, %v1281_v14 }
 0x117   :  { %v315_v18 = vadd.f32 1.0, %v1283_v17 }
 0x119   :  { %1284 = vrcp.f32 %v315_v18 }
 0x123   :  { %v1285_v19 = vpop.eup %1284 }
 0x124   :  { %v319_v26 = vmul.f32 0.0, %v1285_v19 }
 0x166   :  { %v298_v15 = vpop.permute.xlu0 %297 }
 0x167   :  { %v300_v16 = vmul.f32 %v1281_v14, %v298_v15 }
 0x169   :  { %302 = vrot.lane.b32.xlu1 %v300_v16, %s1404_s0 }
 0x17a   :  { %v322_v20 = vpop.permute.xlu0 %321 }
 0x17b   :  { %v324_v21 = vmul.f32 %v1285_v19, %v322_v20 }
 0x17d   :  { %326 = vrot.lane.b32.xlu1 %v324_v21, %s1404_s0 }
 0x1db   :  { %v303_v23 = vpop.permute.xlu1 %302 }
 0x1dc   :  { %v1568_v24 = vadd.f32 %v303_v23, %v295_v22 }
 0x1de   :  { %1286 = vtanh.f32 %v1568_v24 }
 0x1e8   :  { %v1287_v25 = vpop.eup %1286 }
 0x1e9   :  { %308 = vrot.lane.b32.xlu0 %v1287_v25, %s1404_s0 }
 0x1ef   :  { %v327_v28 = vpop.permute.xlu1 %326 }
 0x1f0   :  { %v329_v30 = vadd.f32 %v327_v28, %v319_v26 }
 0x1f2   :  { %1288 = vtanh.f32 %v329_v30 }
 0x1fc   :  { %v1289_v32 = vpop.eup %1288 }
 0x1fd   :  { %332 = vrot.lane.b32.xlu1 %v1289_v32, %s1404_s0 }
 0x25b   :  { %v309_v33 = vpop.permute.xlu0 %308 }
 0x25c   :  { %v311_v34 = vmul.f32 %v1281_v14, %v309_v33 }
 0x25e   :  { %337 = vrot.lane.b32.xlu0 %v311_v34, %s1405_s3 }
 0x26f   :  { %v333_v36 = vpop.permute.xlu1 %332 }
 0x270   :  { %v335_v37 = vmul.f32 %v1285_v19, %v333_v36 }
 0x272   :  { %342 = vrot.lane.b32.xlu1 %v335_v37, %s1406_s21 }
 0x2d0   :  { %v338_v38 = vpop.permute.xlu0 %337 }
 0x2d1   :  { %340 = vst.msk [vmem:[#allocation3] sm:$0xff] %vm82_vm0, %v338_v38 }
 0x2e4   :  { %v343_v40 = vpop.permute.xlu1 %342 }
 0x2e5   :  { %347 = vst.msk [vmem:[#allocation3 + $0x38] sm:$0xff] %vm346_vm1, %v343_v40  ;;  %v348_v41 = vsel %vm82_vm0, %v338_v38, %v343_v40 }
 0x2e6   :  { %v349_v43 = vpack.c.bf16 %v348_v41, %v348_v41 }
 0x2e8   :  { %1210 = vmatmul.mubr.msk.bf16.vlgmr.msra.gmra.mrb[4].mxu1 %vm233_vm2, %v349_v43 }
 0x2e9   :  { %586 = vmatpush1.bf16.msra.mxu1 %v1448_v4  ;;  %617 = vmatprep.mubr.bf16.mxu1 %v1402_v1 }
 0x2ea   :  { %587 = vmatprep.subr.bf16.mxu1 %v1458_v6 }
 0x2ed   :  { %588 = vmatpush1.bf16.msra.mxu1 %v1466_v8 }
 0x2ee   :  { %589 = vmatprep.subr.bf16.mxu1 %v1475_v10 }
 0x2f1   :  { %590 = vmatpush1.bf16.msra.mxu1 %v1481_v11 }
 0x2f2   :  { %591 = vmatprep.subr.bf16.mxu1 %v1487_v12 }
 0x2f5   :  { %592 = vmatpush1.bf16.msra.mxu1 %v1495_v13 }
 0x2f6   :  { %809 = vmatprep.subr.bf16.mxu1 %v1440_v2 }
 0x3bb   :  { %v387_v44 = vpop.f32.mrb[4].mxu1 }
 0x3bc   :  { %v398_v46 = vadd.f32 %v387_v44, %v1538_v29  ;;  %v389_v48 = vpop.f32.mrb[5].mxu1 }
 0x3bd   :  { %v403_v50 = vadd.f32 %v389_v48, %v1561_v58  ;;  %v391_v52 = vpop.f32.mrb[6].mxu1 }
 0x3be   :  { %1290 = vtanh.f32 %v398_v46  ;;  %v392_v54 = vpop.f32.mrb[7].mxu1  ;;  %v1211_v59 = vmul.f32 -1.442695, %v398_v46 }
 0x3bf   :  { %1292 = vtanh.f32 %v403_v50  ;;  %v1212_v61 = vmul.f32 -1.442695, %v403_v50 }
 0x3c0   :  { %1294 = vpow2.f32 %v1211_v59 }
 0x3c1   :  { %1296 = vpow2.f32 %v1212_v61 }
 0x3c8   :  { %v1291_v55 = vpop.eup %1290 }
 0x3c9   :  { %v1293_v57 = vpop.eup %1292  ;;  %413 = vrot.lane.b32.xlu0 %v1291_v55, %s1404_s0 }
 0x3ca   :  { %437 = vrot.lane.b32.xlu1 %v1293_v57, %s1404_s0  ;;  %v1295_v62 = vpop.eup %1294 }
 0x3cb   :  { %v1297_v63 = vpop.eup %1296  ;;  %v407_v29 = vadd.f32 1.0, %v1295_v62 }
 0x3cc   :  { %v431_v0 = vadd.f32 1.0, %v1297_v63 }
 0x3cd   :  { %1298 = vrcp.f32 %v407_v29 }
 0x3ce   :  { %1300 = vrcp.f32 %v431_v0 }
 0x3d7   :  { %v1299_v58 = vpop.eup %1298 }
 0x3d8   :  { %v1301_v5 = vpop.eup %1300  ;;  %v411_v15 = vmul.f32 %v1299_v58, %v1568_v24 }
 0x3d9   :  { %v435_v17 = vmul.f32 %v1301_v5, %v329_v30 }
 0x43b   :  { %v414_v3 = vpop.permute.xlu0 %413 }
 0x43c   :  { %v416_v7 = vmul.f32 %v1299_v58, %v414_v3  ;;  %v438_v9 = vpop.permute.xlu1 %437 }
 0x43d   :  { %v440_v14 = vmul.f32 %v1301_v5, %v438_v9 }
 0x43e   :  { %418 = vrot.lane.b32.xlu0 %v416_v7, %s1404_s0 }
 0x43f   :  { %442 = vrot.lane.b32.xlu1 %v440_v14, %s1404_s0 }
 0x4b0   :  { %v419_v16 = vpop.permute.xlu0 %418 }
 0x4b1   :  { %v421_v18 = vadd.f32 %v419_v16, %v411_v15  ;;  %v443_v19 = vpop.permute.xlu1 %442 }
 0x4b2   :  { %v445_v20 = vadd.f32 %v443_v19, %v435_v17 }
 0x4b3   :  { %1302 = vtanh.f32 %v421_v18 }
 0x4b4   :  { %1304 = vtanh.f32 %v445_v20 }
 0x4bd   :  { %v1303_v21 = vpop.eup %1302 }
 0x4be   :  { %v1305_v22 = vpop.eup %1304  ;;  %424 = vrot.lane.b32.xlu0 %v1303_v21, %s1404_s0 }
 0x4bf   :  { %448 = vrot.lane.b32.xlu1 %v1305_v22, %s1404_s0 }
 0x530   :  { %v425_v23 = vpop.permute.xlu0 %424 }
 0x531   :  { %v427_v25 = vmul.f32 %v1299_v58, %v425_v23  ;;  %v449_v26 = vpop.permute.xlu1 %448 }
 0x532   :  { %v451_v28 = vmul.f32 %v1301_v5, %v449_v26 }
 0x533   :  { %453 = vrot.lane.b32.xlu0 %v427_v25, %s1405_s3 }
 0x534   :  { %459 = vrot.lane.b32.xlu1 %v451_v28, %s1406_s21 }
 0x5a5   :  { %v454_v24 = vpop.permute.xlu0 %453 }
 0x5a6   :  { %457 = vst.msk [vmem:[#allocation3 + $0x8] sm:$0xff] %vm82_vm0, %v454_v24  ;;  %v460_v30 = vpop.permute.xlu1 %459 }
 0x5a7   :  { %463 = vst.msk [vmem:[#allocation3 + $0x30] sm:$0xff] %vm346_vm1, %v460_v30  ;;  %v464_v32 = vsel %vm82_vm0, %v454_v24, %v460_v30 }
 0x5a8   :  { %v465_v33 = vpack.c.bf16 %v464_v32, %v464_v32 }
 0x5aa   :  { %1213 = vmatmul.mubr.msk.bf16.vlgmr.msra.gmra.mrb[16].mxu0 %vm233_vm2, %v465_v33 }
 0x5ab   :  { %702 = vmatpush1.bf16.msra.mxu0 %v1448_v4  ;;  %733 = vmatprep.mubr.bf16.mxu0 %v1402_v1 }
 0x5ac   :  { %703 = vmatprep.subr.bf16.mxu0 %v1458_v6 }
 0x5af   :  { %704 = vmatpush1.bf16.msra.mxu0 %v1466_v8 }
 0x5b0   :  { %705 = vmatprep.subr.bf16.mxu0 %v1475_v10 }
 0x5b3   :  { %706 = vmatpush1.bf16.msra.mxu0 %v1481_v11 }
 0x5b4   :  { %707 = vmatprep.subr.bf16.mxu0 %v1487_v12 }
 0x5b7   :  { %708 = vmatpush1.bf16.msra.mxu0 %v1495_v13 }
 0x5b8   :  { %917 = vmatprep.subr.bf16.mxu0 %v1440_v2 }
 0x67d   :  { %v503_v34 = vpop.f32.mrb[16].mxu0 }
 0x67e   :  { %v514_v36 = vadd.f32 %v503_v34, %v1542_v35  ;;  %v505_v37 = vpop.f32.mrb[17].mxu0 }
 0x67f   :  { %v519_v38 = vadd.f32 %v505_v37, %v1556_v53  ;;  %v507_v40 = vpop.f32.mrb[18].mxu0 }
 0x680   :  { %1306 = vtanh.f32 %v514_v36  ;;  %v508_v41 = vpop.f32.mrb[19].mxu0  ;;  %v1214_v46 = vmul.f32 -1.442695, %v514_v36 }
 0x681   :  { %1308 = vtanh.f32 %v519_v38  ;;  %v1215_v48 = vmul.f32 -1.442695, %v519_v38 }
 0x682   :  { %1310 = vpow2.f32 %v1214_v46 }
 0x683   :  { %1312 = vpow2.f32 %v1215_v48 }
 0x68a   :  { %v1307_v43 = vpop.eup %1306 }
 0x68b   :  { %v1309_v44 = vpop.eup %1308  ;;  %529 = vrot.lane.b32.xlu0 %v1307_v43, %s1404_s0 }
 0x68c   :  { %553 = vrot.lane.b32.xlu1 %v1309_v44, %s1404_s0  ;;  %v1311_v50 = vpop.eup %1310 }
 0x68d   :  { %v1313_v52 = vpop.eup %1312  ;;  %v523_v35 = vadd.f32 1.0, %v1311_v50 }
 0x68e   :  { %v547_v54 = vadd.f32 1.0, %v1313_v52 }
 0x68f   :  { %1314 = vrcp.f32 %v523_v35 }
 0x690   :  { %1316 = vrcp.f32 %v547_v54 }
 0x699   :  { %v1315_v53 = vpop.eup %1314 }
 0x69a   :  { %v1317_v57 = vpop.eup %1316  ;;  %v527_v63 = vmul.f32 %v1315_v53, %v421_v18 }
 0x69b   :  { %v551_v0 = vmul.f32 %v1317_v57, %v445_v20 }
 0x6fd   :  { %v530_v55 = vpop.permute.xlu0 %529 }
 0x6fe   :  { %v532_v59 = vmul.f32 %v1315_v53, %v530_v55  ;;  %v554_v61 = vpop.permute.xlu1 %553 }
 0x6ff   :  { %v556_v62 = vmul.f32 %v1317_v57, %v554_v61 }
 0x700   :  { %534 = vrot.lane.b32.xlu0 %v532_v59, %s1404_s0 }
 0x701   :  { %558 = vrot.lane.b32.xlu1 %v556_v62, %s1404_s0 }
 0x772   :  { %v535_v29 = vpop.permute.xlu0 %534 }
 0x773   :  { %v537_v58 = vadd.f32 %v535_v29, %v527_v63  ;;  %v559_v3 = vpop.permute.xlu1 %558 }
 0x774   :  { %v561_v5 = vadd.f32 %v559_v3, %v551_v0 }
 0x775   :  { %1318 = vtanh.f32 %v537_v58 }
 0x776   :  { %1320 = vtanh.f32 %v561_v5 }
 0x77f   :  { %v1319_v7 = vpop.eup %1318 }
 0x780   :  { %v1321_v9 = vpop.eup %1320  ;;  %540 = vrot.lane.b32.xlu0 %v1319_v7, %s1404_s0 }
 0x781   :  { %564 = vrot.lane.b32.xlu1 %v1321_v9, %s1404_s0 }
 0x7f2   :  { %v541_v14 = vpop.permute.xlu0 %540 }
 0x7f3   :  { %v543_v15 = vmul.f32 %v1315_v53, %v541_v14  ;;  %v565_v16 = vpop.permute.xlu1 %564 }
 0x7f4   :  { %v567_v17 = vmul.f32 %v1317_v57, %v565_v16 }
 0x7f5   :  { %569 = vrot.lane.b32.xlu0 %v543_v15, %s1405_s3 }
 0x7f6   :  { %575 = vrot.lane.b32.xlu1 %v567_v17, %s1406_s21 }
 0x867   :  { %v570_v18 = vpop.permute.xlu0 %569 }
 0x868   :  { %573 = vst.msk [vmem:[#allocation3 + $0x10] sm:$0xff] %vm82_vm0, %v570_v18  ;;  %v576_v19 = vpop.permute.xlu1 %575 }
 0x869   :  { %579 = vst.msk [vmem:[#allocation3 + $0x28] sm:$0xff] %vm346_vm1, %v576_v19  ;;  %v580_v20 = vsel %vm82_vm0, %v570_v18, %v576_v19 }
 0x86a   :  { %v581_v21 = vpack.c.bf16 %v580_v20, %v580_v20 }
 0x86c   :  { %1216 = vmatmul.mubr.msk.bf16.vlgmr.msra.gmra.mrb[8].mxu1 %vm233_vm2, %v581_v21 }
 0x86d   :  { %810 = vmatpush1.bf16.msra.mxu1 %v1448_v4  ;;  %841 = vmatprep.mubr.bf16.mxu1 %v1402_v1 }
 0x86e   :  { %811 = vmatprep.subr.bf16.mxu1 %v1458_v6 }
 0x871   :  { %812 = vmatpush1.bf16.msra.mxu1 %v1466_v8 }
 0x872   :  { %813 = vmatprep.subr.bf16.mxu1 %v1475_v10 }
 0x875   :  { %814 = vmatpush1.bf16.msra.mxu1 %v1481_v11 }
 0x876   :  { %815 = vmatprep.subr.bf16.mxu1 %v1487_v12 }
 0x879   :  { %816 = vmatpush1.bf16.msra.mxu1 %v1495_v13 }
 0x87a   :  { %1025 = vmatprep.subr.bf16.mxu1 %v1440_v2 }
 0x93f   :  { %v619_v22 = vpop.f32.mrb[8].mxu1 }
 0x940   :  { %v630_v23 = vadd.f32 %v619_v22, %v1546_v42  ;;  %v621_v25 = vpop.f32.mrb[9].mxu1 }
 0x941   :  { %v635_v26 = vadd.f32 %v621_v25, %v1552_v49  ;;  %v623_v28 = vpop.f32.mrb[10].mxu1 }
 0x942   :  { %1322 = vtanh.f32 %v630_v23  ;;  %v624_v24 = vpop.f32.mrb[11].mxu1  ;;  %v1217_v33 = vmul.f32 -1.442695, %v630_v23 }
 0x943   :  { %1324 = vtanh.f32 %v635_v26  ;;  %v1218_v34 = vmul.f32 -1.442695, %v635_v26 }
 0x944   :  { %1326 = vpow2.f32 %v1217_v33 }
 0x945   :  { %1328 = vpow2.f32 %v1218_v34 }
 0x94c   :  { %v1323_v30 = vpop.eup %1322 }
 0x94d   :  { %v1325_v32 = vpop.eup %1324  ;;  %645 = vrot.lane.b32.xlu0 %v1323_v30, %s1404_s0 }
 0x94e   :  { %669 = vrot.lane.b32.xlu1 %v1325_v32, %s1404_s0  ;;  %v1327_v2 = vpop.eup %1326 }
 0x94f   :  { %v1329_v36 = vpop.eup %1328  ;;  %v639_v42 = vadd.f32 1.0, %v1327_v2 }
 0x950   :  { %v663_v37 = vadd.f32 1.0, %v1329_v36 }
 0x951   :  { %1330 = vrcp.f32 %v639_v42 }
 0x952   :  { %1332 = vrcp.f32 %v663_v37 }
 0x95b   :  { %v1331_v49 = vpop.eup %1330 }
 0x95c   :  { %v1333_v40 = vpop.eup %1332  ;;  %v643_v46 = vmul.f32 %v1331_v49, %v537_v58 }
 0x95d   :  { %v667_v50 = vmul.f32 %v1333_v40, %v561_v5 }
 0x9bf   :  { %v646_v38 = vpop.permute.xlu0 %645 }
 0x9c0   :  { %v648_v41 = vmul.f32 %v1331_v49, %v646_v38  ;;  %v670_v43 = vpop.permute.xlu1 %669 }
 0x9c1   :  { %v672_v44 = vmul.f32 %v1333_v40, %v670_v43 }
 0x9c2   :  { %650 = vrot.lane.b32.xlu0 %v648_v41, %s1404_s0 }
 0x9c3   :  { %674 = vrot.lane.b32.xlu1 %v672_v44, %s1404_s0 }
 0xa34   :  { %v651_v48 = vpop.permute.xlu0 %650 }
 0xa35   :  { %v653_v52 = vadd.f32 %v651_v48, %v643_v46  ;;  %v675_v35 = vpop.permute.xlu1 %674 }
 0xa36   :  { %v677_v54 = vadd.f32 %v675_v35, %v667_v50 }
 0xa37   :  { %1334 = vtanh.f32 %v653_v52 }
 0xa38   :  { %1336 = vtanh.f32 %v677_v54 }
 0xa41   :  { %v1335_v53 = vpop.eup %1334 }
 0xa42   :  { %v1337_v55 = vpop.eup %1336  ;;  %656 = vrot.lane.b32.xlu0 %v1335_v53, %s1404_s0 }
 0xa43   :  { %680 = vrot.lane.b32.xlu1 %v1337_v55, %s1404_s0 }
 0xab4   :  { %v657_v57 = vpop.permute.xlu0 %656 }
 0xab5   :  { %v659_v59 = vmul.f32 %v1331_v49, %v657_v57  ;;  %v681_v61 = vpop.permute.xlu1 %680 }
 0xab6   :  { %v683_v62 = vmul.f32 %v1333_v40, %v681_v61 }
 0xab7   :  { %685 = vrot.lane.b32.xlu0 %v659_v59, %s1405_s3 }
 0xab8   :  { %691 = vrot.lane.b32.xlu1 %v683_v62, %s1406_s21 }
 0xb29   :  { %v686_v63 = vpop.permute.xlu0 %685 }
 0xb2a   :  { %689 = vst.msk [vmem:[#allocation3 + $0x18] sm:$0xff] %vm82_vm0, %v686_v63  ;;  %v692_v29 = vpop.permute.xlu1 %691 }
 0xb2b   :  { %695 = vst.msk [vmem:[#allocation3 + $0x20] sm:$0xff] %vm346_vm1, %v692_v29  ;;  %v696_v0 = vsel %vm82_vm0, %v686_v63, %v692_v29 }
 0xb2c   :  { %v697_v58 = vpack.c.bf16 %v696_v0, %v696_v0 }
 0xb2e   :  { %1219 = vmatmul.mubr.msk.bf16.vlgmr.msra.gmra.mrb[20].mxu0 %vm233_vm2, %v697_v58 }
 0xb2f   :  { %918 = vmatpush1.bf16.msra.mxu0 %v1448_v4  ;;  %949 = vmatprep.mubr.bf16.mxu0 %v1402_v1 }
 0xb30   :  { %919 = vmatprep.subr.bf16.mxu0 %v1458_v6 }
 0xb33   :  { %920 = vmatpush1.bf16.msra.mxu0 %v1466_v8 }
 0xb34   :  { %921 = vmatprep.subr.bf16.mxu0 %v1475_v10 }
 0xb37   :  { %922 = vmatpush1.bf16.msra.mxu0 %v1481_v11 }
 0xb38   :  { %923 = vmatprep.subr.bf16.mxu0 %v1487_v12 }
 0xb3b   :  { %924 = vmatpush1.bf16.msra.mxu0 %v1495_v13 }
 0xc01   :  { %v735_v3 = vpop.f32.mrb[20].mxu0 }
 0xc02   :  { %v743_v5 = vadd.f32 %v735_v3, %v1550_v47  ;;  %v737_v7 = vpop.f32.mrb[21].mxu0 }
 0xc03   :  { %v745_v9 = vadd.f32 %v737_v7, %v1548_v45  ;;  %v739_v14 = vpop.f32.mrb[22].mxu0 }
 0xc04   :  { %1338 = vtanh.f32 %v743_v5  ;;  %v740_v15 = vpop.f32.mrb[23].mxu0  ;;  %v1220_v18 = vmul.f32 -1.442695, %v743_v5 }
 0xc05   :  { %1340 = vtanh.f32 %v745_v9  ;;  %v1221_v19 = vmul.f32 -1.442695, %v745_v9 }
 0xc06   :  { %1342 = vpow2.f32 %v1220_v18 }
 0xc07   :  { %1344 = vpow2.f32 %v1221_v19 }
 0xc0e   :  { %v1339_v16 = vpop.eup %1338 }
 0xc0f   :  { %v1341_v17 = vpop.eup %1340  ;;  %755 = vrot.lane.b32.xlu0 %v1339_v16, %s1404_s0 }
 0xc10   :  { %779 = vrot.lane.b32.xlu1 %v1341_v17, %s1404_s0  ;;  %v1343_v20 = vpop.eup %1342 }
 0xc11   :  { %v1345_v21 = vpop.eup %1344  ;;  %v749_v47 = vadd.f32 1.0, %v1343_v20 }
 0xc12   :  { %v773_v22 = vadd.f32 1.0, %v1345_v21 }
 0xc13   :  { %1346 = vrcp.f32 %v749_v47 }
 0xc14   :  { %1348 = vrcp.f32 %v773_v22 }
 0xc1d   :  { %v1347_v45 = vpop.eup %1346 }
 0xc1e   :  { %v1349_v25 = vpop.eup %1348  ;;  %v753_v30 = vmul.f32 %v1347_v45, %v653_v52 }
 0xc1f   :  { %v777_v33 = vmul.f32 %v1349_v25, %v677_v54 }
 0xc81   :  { %v756_v23 = vpop.permute.xlu0 %755 }
 0xc82   :  { %v758_v26 = vmul.f32 %v1347_v45, %v756_v23  ;;  %v780_v28 = vpop.permute.xlu1 %779 }
 0xc83   :  { %v782_v24 = vmul.f32 %v1349_v25, %v780_v28 }
 0xc84   :  { %760 = vrot.lane.b32.xlu0 %v758_v26, %s1404_s0 }
 0xc85   :  { %784 = vrot.lane.b32.xlu1 %v782_v24, %s1404_s0 }
 0xcf6   :  { %v761_v32 = vpop.permute.xlu0 %760 }
 0xcf7   :  { %v1663_v34 = vadd.f32 %v761_v32, %v753_v30  ;;  %v785_v2 = vpop.permute.xlu1 %784 }
 0xcf8   :  { %v1665_v36 = vadd.f32 %v785_v2, %v777_v33 }
 0xcf9   :  { %1350 = vtanh.f32 %v1663_v34 }
 0xcfa   :  { %1352 = vtanh.f32 %v1665_v36 }
 0xd03   :  { %v1351_v42 = vpop.eup %1350 }
 0xd04   :  { %v1353_v37 = vpop.eup %1352  ;;  %766 = vrot.lane.b32.xlu0 %v1351_v42, %s1404_s0 }
 0xd05   :  { %790 = vrot.lane.b32.xlu1 %v1353_v37, %s1404_s0 }
 0xd76   :  { %v767_v49 = vpop.permute.xlu0 %766 }
 0xd77   :  { %v769_v38 = vmul.f32 %v1347_v45, %v767_v49  ;;  %v791_v40 = vpop.permute.xlu1 %790 }
 0xd78   :  { %v793_v41 = vmul.f32 %v1349_v25, %v791_v40 }
 0xd79   :  { %795 = vrot.lane.b32.xlu0 %v769_v38, %s1405_s3 }
 0xd7a   :  { %800 = vrot.lane.b32.xlu1 %v793_v41, %s1406_s21 }
 0xdeb   :  { %v796_v43 = vpop.permute.xlu0 %795 }
 0xdec   :  { %798 = vst.msk [vmem:[#allocation3 + $0x20] sm:$0xff] %vm82_vm0, %v796_v43  ;;  %v801_v44 = vpop.permute.xlu1 %800 }
 0xded   :  { %803 = vst.msk [vmem:[#allocation3 + $0x18] sm:$0xff] %vm346_vm1, %v801_v44  ;;  %v804_v46 = vsel %vm82_vm0, %v796_v43, %v801_v44 }
 0xdee   :  { %v805_v48 = vpack.c.bf16 %v804_v46, %v804_v46 }
 0xdf0   :  { %1222 = vmatmul.mubr.msk.bf16.vlgmr.msra.gmra.mrb[12].mxu1 %vm233_vm2, %v805_v48 }
 0xdf1   :  { %1026 = vmatpush1.bf16.msra.mxu1 %v1448_v4  ;;  %1057 = vmatprep.mubr.bf16.mxu1 %v1402_v1 }
 0xdf2   :  { %1027 = vmatprep.subr.bf16.mxu1 %v1458_v6 }
 0xdf3   :  { %v1132_v50 = vld [vmem:[#allocation3 + $0x20] sm:$0xff] }
 0xdf4   :  { %v1243_v52 = vpack.c.bf16 %v1132_v50, %v1132_v50  ;;  %v1131_v35 = vld [vmem:[#allocation3 + $0x18] sm:$0xff] }
 0xdf5   :  { %v1242_v54 = vpack.c.bf16 %v1131_v35, %v1131_v35  ;;  %1028 = vmatpush1.bf16.msra.mxu1 %v1466_v8 }
 0xdf6   :  { %1173 = vst.msk [vmem:[%s1763_s4 + $0x10] sm:$0xf] %vm1168_vm3, %v1243_v52  ;;  %1029 = vmatprep.subr.bf16.mxu1 %v1475_v10 }
 0xdf7   :  { %1172 = vst.msk [vmem:[%s1763_s4 + $0xc] sm:$0xf] %vm1168_vm3, %v1242_v54 }
 0xdf9   :  { %1030 = vmatpush1.bf16.msra.mxu1 %v1481_v11 }
 0xdfa   :  { %1031 = vmatprep.subr.bf16.mxu1 %v1487_v12 }
 0xdfd   :  { %1032 = vmatpush1.bf16.msra.mxu1 %v1495_v13 }
 0xec3   :  { %v843_v1 = vpop.f32.mrb[12].mxu1 }
 0xec4   :  { %v851_v4 = vadd.f32 %v843_v1, %v1554_v51  ;;  %v845_v6 = vpop.f32.mrb[13].mxu1 }
 0xec5   :  { %v853_v8 = vadd.f32 %v845_v6, %v1544_v39  ;;  %v847_v53 = vpop.f32.mrb[14].mxu1 }
 0xec6   :  { %1354 = vtanh.f32 %v851_v4  ;;  %v848_v10 = vpop.f32.mrb[15].mxu1  ;;  %v1223_v11 = vmul.f32 -1.442695, %v851_v4 }
 0xec7   :  { %1356 = vtanh.f32 %v853_v8  ;;  %v1224_v12 = vmul.f32 -1.442695, %v853_v8 }
 0xec8   :  { %1358 = vpow2.f32 %v1223_v11 }
 0xec9   :  { %1360 = vpow2.f32 %v1224_v12 }
 0xed0   :  { %v1355_v55 = vpop.eup %1354 }
 0xed1   :  { %v1357_v57 = vpop.eup %1356  ;;  %863 = vrot.lane.b32.xlu0 %v1355_v55, %s1404_s0 }
 0xed2   :  { %887 = vrot.lane.b32.xlu1 %v1357_v57, %s1404_s0  ;;  %v1359_v13 = vpop.eup %1358 }
 0xed3   :  { %v1361_v59 = vpop.eup %1360  ;;  %v857_v51 = vadd.f32 1.0, %v1359_v13 }
 0xed4   :  { %v881_v61 = vadd.f32 1.0, %v1361_v59 }
 0xed5   :  { %1362 = vrcp.f32 %v857_v51 }
 0xed6   :  { %1364 = vrcp.f32 %v881_v61 }
 0xedf   :  { %v1363_v39 = vpop.eup %1362 }
 0xee0   :  { %v1365_v63 = vpop.eup %1364  ;;  %v861_v3 = vmul.f32 %v1363_v39, %v1663_v34 }
 0xee1   :  { %v885_v7 = vmul.f32 %v1365_v63, %v1665_v36 }
 0xf43   :  { %v864_v62 = vpop.permute.xlu0 %863 }
 0xf44   :  { %v866_v29 = vmul.f32 %v1363_v39, %v864_v62  ;;  %v888_v0 = vpop.permute.xlu1 %887 }
 0xf45   :  { %v890_v58 = vmul.f32 %v1365_v63, %v888_v0 }
 0xf46   :  { %868 = vrot.lane.b32.xlu0 %v866_v29, %s1404_s0 }
 0xf47   :  { %892 = vrot.lane.b32.xlu1 %v890_v58, %s1404_s0 }
 0xfb8   :  { %v869_v5 = vpop.permute.xlu0 %868 }
 0xfb9   :  { %v871_v9 = vadd.f32 %v869_v5, %v861_v3  ;;  %v893_v14 = vpop.permute.xlu1 %892 }
 0xfba   :  { %v895_v15 = vadd.f32 %v893_v14, %v885_v7 }
 0xfbb   :  { %1366 = vtanh.f32 %v871_v9 }
 0xfbc   :  { %1368 = vtanh.f32 %v895_v15 }
 0xfc5   :  { %v1367_v16 = vpop.eup %1366 }
 0xfc6   :  { %v1369_v17 = vpop.eup %1368  ;;  %874 = vrot.lane.b32.xlu0 %v1367_v16, %s1404_s0 }
 0xfc7   :  { %898 = vrot.lane.b32.xlu1 %v1369_v17, %s1404_s0 }
0x1038   :  { %v875_v18 = vpop.permute.xlu0 %874 }
0x1039   :  { %v877_v19 = vmul.f32 %v1363_v39, %v875_v18  ;;  %v899_v20 = vpop.permute.xlu1 %898 }
0x103a   :  { %v901_v21 = vmul.f32 %v1365_v63, %v899_v20 }
0x103b   :  { %903 = vrot.lane.b32.xlu0 %v877_v19, %s1405_s3 }
0x103c   :  { %908 = vrot.lane.b32.xlu1 %v901_v21, %s1406_s21 }
0x10ad   :  { %v904_v47 = vpop.permute.xlu0 %903 }
0x10ae   :  { %906 = vst.msk [vmem:[#allocation3 + $0x28] sm:$0xff] %vm82_vm0, %v904_v47  ;;  %v909_v22 = vpop.permute.xlu1 %908 }
0x10af   :  { %911 = vst.msk [vmem:[#allocation3 + $0x10] sm:$0xff] %vm346_vm1, %v909_v22  ;;  %v912_v45 = vsel %vm82_vm0, %v904_v47, %v909_v22 }
0x10b0   :  { %v913_v23 = vpack.c.bf16 %v912_v45, %v912_v45 }
0x10b2   :  { %1225 = vmatmul.mubr.msk.bf16.vlgmr.msra.gmra.mrb[24].mxu0 %vm233_vm2, %v913_v23 }
0x10b5   :  { %v1133_v25 = vld [vmem:[#allocation3 + $0x28] sm:$0xff] }
0x10b6   :  { %v1244_v26 = vpack.c.bf16 %v1133_v25, %v1133_v25  ;;  %v1130_v28 = vld [vmem:[#allocation3 + $0x10] sm:$0xff] }
0x10b7   :  { %v1241_v24 = vpack.c.bf16 %v1130_v28, %v1130_v28 }
0x10b8   :  { %1174 = vst.msk [vmem:[%s1763_s4 + $0x14] sm:$0xf] %vm1168_vm3, %v1244_v26 }
0x10b9   :  { %1171 = vst.msk [vmem:[%s1763_s4 + $0x8] sm:$0xf] %vm1168_vm3, %v1241_v24 }
0x1185   :  { %v951_v30 = vpop.f32.mrb[24].mxu0 }
0x1186   :  { %v959_v32 = vadd.f32 %v951_v30, %v1559_v56  ;;  %v953_v33 = vpop.f32.mrb[25].mxu0 }
0x1187   :  { %v961_v34 = vadd.f32 %v953_v33, %v1540_v31  ;;  %v955_v2 = vpop.f32.mrb[26].mxu0 }
0x1188   :  { %1370 = vtanh.f32 %v959_v32  ;;  %v956_v36 = vpop.f32.mrb[27].mxu0  ;;  %v1226_v49 = vmul.f32 -1.442695, %v959_v32 }
0x1189   :  { %1372 = vtanh.f32 %v961_v34  ;;  %v1227_v38 = vmul.f32 -1.442695, %v961_v34 }
0x118a   :  { %1374 = vpow2.f32 %v1226_v49 }
0x118b   :  { %1376 = vpow2.f32 %v1227_v38 }
0x1192   :  { %v1371_v42 = vpop.eup %1370 }
0x1193   :  { %v1373_v37 = vpop.eup %1372  ;;  %971 = vrot.lane.b32.xlu0 %v1371_v42, %s1404_s0 }
0x1194   :  { %995 = vrot.lane.b32.xlu1 %v1373_v37, %s1404_s0  ;;  %v1375_v40 = vpop.eup %1374 }
0x1195   :  { %v1377_v41 = vpop.eup %1376  ;;  %v965_v56 = vadd.f32 1.0, %v1375_v40 }
0x1196   :  { %v989_v43 = vadd.f32 1.0, %v1377_v41 }
0x1197   :  { %1378 = vrcp.f32 %v965_v56 }
0x1198   :  { %1380 = vrcp.f32 %v989_v43 }
0x11a1   :  { %v1379_v31 = vpop.eup %1378 }
0x11a2   :  { %v1381_v46 = vpop.eup %1380  ;;  %v969_v35 = vmul.f32 %v1379_v31, %v871_v9 }
0x11a3   :  { %v993_v1 = vmul.f32 %v1381_v46, %v895_v15 }
0x1205   :  { %v972_v44 = vpop.permute.xlu0 %971 }
0x1206   :  { %v974_v48 = vmul.f32 %v1379_v31, %v972_v44  ;;  %v996_v50 = vpop.permute.xlu1 %995 }
0x1207   :  { %v998_v52 = vmul.f32 %v1381_v46, %v996_v50 }
0x1208   :  { %976 = vrot.lane.b32.xlu0 %v974_v48, %s1404_s0 }
0x1209   :  { %1000 = vrot.lane.b32.xlu1 %v998_v52, %s1404_s0 }
0x127a   :  { %v977_v54 = vpop.permute.xlu0 %976 }
0x127b   :  { %v979_v4 = vadd.f32 %v977_v54, %v969_v35  ;;  %v1001_v6 = vpop.permute.xlu1 %1000 }
0x127c   :  { %v1003_v8 = vadd.f32 %v1001_v6, %v993_v1 }
0x127d   :  { %1382 = vtanh.f32 %v979_v4 }
0x127e   :  { %1384 = vtanh.f32 %v1003_v8 }
0x1287   :  { %v1383_v53 = vpop.eup %1382 }
0x1288   :  { %v1385_v10 = vpop.eup %1384  ;;  %982 = vrot.lane.b32.xlu0 %v1383_v53, %s1404_s0 }
0x1289   :  { %1006 = vrot.lane.b32.xlu1 %v1385_v10, %s1404_s0 }
0x12fa   :  { %v983_v55 = vpop.permute.xlu0 %982 }
0x12fb   :  { %v985_v57 = vmul.f32 %v1379_v31, %v983_v55  ;;  %v1007_v11 = vpop.permute.xlu1 %1006 }
0x12fc   :  { %v1009_v12 = vmul.f32 %v1381_v46, %v1007_v11 }
0x12fd   :  { %1011 = vrot.lane.b32.xlu0 %v985_v57, %s1405_s3 }
0x12fe   :  { %1016 = vrot.lane.b32.xlu1 %v1009_v12, %s1406_s21 }
0x136f   :  { %v1012_v13 = vpop.permute.xlu0 %1011 }
0x1370   :  { %1014 = vst.msk [vmem:[#allocation3 + $0x30] sm:$0xff] %vm82_vm0, %v1012_v13  ;;  %v1017_v59 = vpop.permute.xlu1 %1016 }
0x1371   :  { %1019 = vst.msk [vmem:[#allocation3 + $0x8] sm:$0xff] %vm346_vm1, %v1017_v59  ;;  %v1020_v51 = vsel %vm82_vm0, %v1012_v13, %v1017_v59 }
0x1372   :  { %v1021_v61 = vpack.c.bf16 %v1020_v51, %v1020_v51 }
0x1374   :  { %1228 = vmatmul.mubr.msk.bf16.vlgmr.msra.gmra.mrb[16].mxu1 %vm233_vm2, %v1021_v61 }
0x1377   :  { %v1134_v39 = vld [vmem:[#allocation3 + $0x30] sm:$0xff] }
0x1378   :  { %v1245_v62 = vpack.c.bf16 %v1134_v39, %v1134_v39  ;;  %v1129_v63 = vld [vmem:[#allocation3 + $0x8] sm:$0xff] }
0x1379   :  { %v1240_v29 = vpack.c.bf16 %v1129_v63, %v1129_v63 }
0x137a   :  { %1175 = vst.msk [vmem:[%s1763_s4 + $0x18] sm:$0xf] %vm1168_vm3, %v1245_v62 }
0x137b   :  { %1170 = vst.msk [vmem:[%s1763_s4 + $0x4] sm:$0xf] %vm1168_vm3, %v1240_v29 }
0x1447   :  { %v1059_v0 = vpop.f32.mrb[16].mxu1 }
0x1448   :  { %v1067_v58 = vadd.f32 %v1059_v0, %v1563_v60  ;;  %v1061_v3 = vpop.f32.mrb[17].mxu1 }
0x1449   :  { %v1069_v5 = vadd.f32 %v1061_v3, %v1536_v27  ;;  %v1063_v7 = vpop.f32.mrb[18].mxu1 }
0x144a   :  { %1386 = vtanh.f32 %v1067_v58  ;;  %v1064_v9 = vpop.f32.mrb[19].mxu1  ;;  %v1229_v16 = vmul.f32 -1.442695, %v1067_v58 }
0x144b   :  { %1388 = vtanh.f32 %v1069_v5  ;;  %v1230_v17 = vmul.f32 -1.442695, %v1069_v5 }
0x144c   :  { %1390 = vpow2.f32 %v1229_v16 }
0x144d   :  { %1392 = vpow2.f32 %v1230_v17 }
0x1454   :  { %v1387_v14 = vpop.eup %1386 }
0x1455   :  { %v1389_v15 = vpop.eup %1388  ;;  %1079 = vrot.lane.b32.xlu0 %v1387_v14, %s1404_s0 }
0x1456   :  { %1103 = vrot.lane.b32.xlu1 %v1389_v15, %s1404_s0  ;;  %v1391_v18 = vpop.eup %1390 }
0x1457   :  { %v1393_v19 = vpop.eup %1392  ;;  %v1073_v60 = vadd.f32 1.0, %v1391_v18 }
0x1458   :  { %v1097_v20 = vadd.f32 1.0, %v1393_v19 }
0x1459   :  { %1394 = vrcp.f32 %v1073_v60 }
0x145a   :  { %1396 = vrcp.f32 %v1097_v20 }
0x1463   :  { %v1395_v27 = vpop.eup %1394 }
0x1464   :  { %v1397_v47 = vpop.eup %1396  ;;  %v1077_v25 = vmul.f32 %v1395_v27, %v979_v4 }
0x1465   :  { %v1101_v28 = vmul.f32 %v1397_v47, %v1003_v8 }
0x14c7   :  { %v1080_v21 = vpop.permute.xlu0 %1079 }
0x14c8   :  { %v1082_v22 = vmul.f32 %v1395_v27, %v1080_v21  ;;  %v1104_v45 = vpop.permute.xlu1 %1103 }
0x14c9   :  { %v1106_v23 = vmul.f32 %v1397_v47, %v1104_v45 }
0x14ca   :  { %1084 = vrot.lane.b32.xlu0 %v1082_v22, %s1404_s0 }
0x14cb   :  { %1108 = vrot.lane.b32.xlu1 %v1106_v23, %s1404_s0 }
0x153c   :  { %v1085_v26 = vpop.permute.xlu0 %1084 }
0x153d   :  { %v1087_v24 = vadd.f32 %v1085_v26, %v1077_v25  ;;  %v1109_v30 = vpop.permute.xlu1 %1108 }
0x153e   :  { %v1111_v32 = vadd.f32 %v1109_v30, %v1101_v28 }
0x153f   :  { %1398 = vtanh.f32 %v1087_v24 }
0x1540   :  { %1400 = vtanh.f32 %v1111_v32 }
0x1549   :  { %v1399_v33 = vpop.eup %1398 }
0x154a   :  { %v1401_v34 = vpop.eup %1400  ;;  %1090 = vrot.lane.b32.xlu0 %v1399_v33, %s1404_s0 }
0x154b   :  { %1114 = vrot.lane.b32.xlu1 %v1401_v34, %s1404_s0 }
0x15bc   :  { %v1091_v2 = vpop.permute.xlu0 %1090 }
0x15bd   :  { %v1093_v36 = vmul.f32 %v1395_v27, %v1091_v2  ;;  %v1115_v42 = vpop.permute.xlu1 %1114 }
0x15be   :  { %v1117_v37 = vmul.f32 %v1397_v47, %v1115_v42 }
0x15bf   :  { %1119 = vrot.lane.b32.xlu0 %v1093_v36, %s1405_s3 }
0x15c0   :  { %1124 = vrot.lane.b32.xlu1 %v1117_v37, %s1406_s21 }
0x1631   :  { %v1120_v49 = vpop.permute.xlu0 %1119 }
0x1632   :  { %1122 = vst.msk [vmem:[#allocation3 + $0x38] sm:$0xff] %vm82_vm0, %v1120_v49  ;;  %v1125_v38 = vpop.permute.xlu1 %1124 }
0x1633   :  { %1127 = vst.msk [vmem:[#allocation3] sm:$0xff] %vm346_vm1, %v1125_v38 }
0x1639   :  { %v1135_v40 = vld [vmem:[#allocation3 + $0x38] sm:$0xff] }
0x163a   :  { %v1246_v41 = vpack.c.bf16 %v1135_v40, %v1135_v40  ;;  %v1128_v56 = vld [vmem:[#allocation3] sm:$0xff] }
0x163b   :  { %v1239_v43 = vpack.c.bf16 %v1128_v56, %v1128_v56 }
0x163c   :  { %1176 = vst.msk [vmem:[%s1763_s4 + $0x1c] sm:$0xf] %vm1168_vm3, %v1246_v41 }
0x163d   :  { %1169 = vst.msk [vmem:[%s1763_s4] sm:$0xf] %vm1168_vm3, %v1239_v43 }

</bundles_post_ra>
